<compile_context>
chip_gen: v7x
topology: tpu7x:2x2x1
jax: 0.10.0
libtpu: 0.0.40
codegen_flags: <defaults>
</compile_context>

<pallas_src>
import jax
import jax.numpy as jnp
from jax.experimental import pallas as pl
from jax.experimental.pallas import tpu as pltpu

INPUT_SIZE = 5
HIDDEN = 50      # hidden_layer_size
GP = 128         # gate pitch: each gate padded to its own 128-lane block
BP = 8           # batch padded to one full sublane tile


def lstm_kernel(x_ref, wih1_ref, whh1_ref, b1_ref, wih2_ref, whh2_ref, b2_ref,
                wfc_ref, bfc_ref, out_ref):
    """Whole forward pass in one invocation (no grid, everything VMEM-resident)."""
    TB = x_ref.shape[0]          # T * BP
    T = TB // BP

    def cell(pre_t, h, c, whh_ref):
        # pre_t: (BP, 4*GP) f32 precomputed input projection with bias folded in.
        # Only the K=128 recurrent matmul sits on the serial chain.
        gates = pre_t + jnp.dot(h.astype(jnp.bfloat16), whh_ref[...],
                                preferred_element_type=jnp.float32)
        # Packed gate order (i, f, o, g): one sigmoid slab + one tanh slab.
        sig = jax.nn.sigmoid(gates[:, :3 * GP])
        g = jnp.tanh(gates[:, 3 * GP:])
        i_g = sig[:, 0 * GP:1 * GP]
        f_g = sig[:, 1 * GP:2 * GP]
        o_g = sig[:, 2 * GP:3 * GP]
        c_new = f_g * c + i_g * g
        h_new = o_g * jnp.tanh(c_new)
        return h_new, c_new

    z = jnp.zeros((BP, GP), jnp.float32)

    # ---- layer 1 ----
    # Hoisted input projection: ONE (T*BP, GP) @ (GP, 4*GP) bf16 matmul, bias folded.
    pre1 = jnp.dot(x_ref[...].astype(jnp.bfloat16), wih1_ref[...],
                   preferred_element_type=jnp.float32) + b1_ref[...]
    h1, c1 = z, z
    h1_steps = []
    for t in range(T):                       # fully unrolled recurrence (T static)
        h1, c1 = cell(pre1[t * BP:(t + 1) * BP, :], h1, c1, whh1_ref)
        h1_steps.append(h1)
    h1_seq = jnp.concatenate(h1_steps, axis=0)      # (T*BP, GP), tile-aligned concat

    # ---- layer 2 ----
    pre2 = jnp.dot(h1_seq.astype(jnp.bfloat16), wih2_ref[...],
                   preferred_element_type=jnp.float32) + b2_ref[...]
    h2, c2 = z, z
    for t in range(T):
        h2, c2 = cell(pre2[t * BP:(t + 1) * BP, :], h2, c2, whh2_ref)

    # Dropout(p=0.2) is identity in eval/inference mode.
    # fc on the last timestep's layer-2 hidden state: lane-reduce, f32, once.
    out_ref[...] = (jnp.sum(h2 * wfc_ref[...], axis=-1, keepdims=True)
                    + bfc_ref[...])


def lstm_model_forward(x, packed):
    """x: (B, T, I) batch-first float32.  Returns (B, 1)."""
    B, T, I = x.shape
    assert B <= BP and I <= GP
    wih1, whh1, b1, wih2, whh2, b2, wfc_p, bfc_p = packed

    # Time-major, pad batch to one sublane tile and features to one lane block,
    # then flatten (T, BP) -> T*BP so every per-step slice is (8,128)-tile aligned.
    x_tm = jnp.transpose(x, (1, 0, 2))                          # (T, B, I)
    x_pad = jnp.pad(x_tm, ((0, 0), (0, BP - B), (0, GP - I)))   # (T, BP, GP)
    x_flat = x_pad.reshape(T * BP, GP)                          # (T*BP, GP)

    vmem = pl.BlockSpec(memory_space=pltpu.MemorySpace.VMEM)
    out_pad = pl.pallas_call(
        lstm_kernel,
        out_shape=jax.ShapeDtypeStruct((BP, 1), jnp.float32),
        in_specs=[vmem] * 8 + [vmem],
        out_specs=vmem,
    )(x_flat, wih1, whh1, b1, wih2, whh2, b2, wfc_p, bfc_p)
    return out_pad[:B]


def make_raw_params(key):
    """Random params in PyTorch nn.LSTM / nn.Linear layout (W_ih: (4H, in), W_hh: (4H, H))."""
    H, I = HIDDEN, INPUT_SIZE
    ks = jax.random.split(key, 9)
    s = 0.1
    wih1 = s * jax.random.normal(ks[0], (4 * H, I), jnp.float32)
    whh1 = s * jax.random.normal(ks[1], (4 * H, H), jnp.float32)
    bih1 = s * jax.random.normal(ks[2], (4 * H,), jnp.float32)
    bhh1 = s * jax.random.normal(ks[3], (4 * H,), jnp.float32)
    wih2 = s * jax.random.normal(ks[4], (4 * H, H), jnp.float32)
    whh2 = s * jax.random.normal(ks[5], (4 * H, H), jnp.float32)
    bih2 = s * jax.random.normal(ks[6], (4 * H,), jnp.float32)
    bhh2 = s * jax.random.normal(ks[7], (4 * H,), jnp.float32)
    wfc = s * jax.random.normal(ks[8], (1, H), jnp.float32)
    bfc = jnp.zeros((1,), jnp.float32)
    return (wih1, whh1, bih1, bhh1, wih2, whh2, bih2, bhh2, wfc, bfc)


def pack_params(raw):
    """Pack PyTorch-layout params into 128-lane-aligned blocks for the kernel.

    Gate blocks are reordered (i, f, g, o) -> (i, f, o, g) so the three sigmoid
    gates are one contiguous 3*GP slab.  W_ih and W_hh are kept separate
    (layer-by-layer hoisted input projection) and stored in bf16 for the MXU.
    Padded rows / columns are zero, which keeps padded lanes of c and h at
    exactly zero throughout the recurrence.
    """
    wih1, whh1, bih1, bhh1, wih2, whh2, bih2, bhh2, wfc, bfc = raw
    H, I = HIDDEN, INPUT_SIZE
    packed_order = (0, 1, 3, 2)   # PyTorch blocks i, f, g, o -> packed i, f, o, g

    def pack_layer(wih, whh, bih, bhh, in_width):
        w_in = jnp.zeros((GP, 4 * GP), jnp.float32)
        w_hh = jnp.zeros((GP, 4 * GP), jnp.float32)
        b = jnp.zeros((1, 4 * GP), jnp.float32)
        for blk, g in enumerate(packed_order):
            w_in = w_in.at[:in_width, blk * GP:blk * GP + H].set(
                wih[g * H:(g + 1) * H, :].T)
            w_hh = w_hh.at[:H, blk * GP:blk * GP + H].set(
                whh[g * H:(g + 1) * H, :].T)
            b = b.at[0, blk * GP:blk * GP + H].set(
                bih[g * H:(g + 1) * H] + bhh[g * H:(g + 1) * H])
        # MXU operands in bf16; accumulation and all elementwise math stay f32.
        return w_in.astype(jnp.bfloat16), w_hh.astype(jnp.bfloat16), b

    wih1_p, whh1_p, b1 = pack_layer(wih1, whh1, bih1, bhh1, I)
    wih2_p, whh2_p, b2 = pack_layer(wih2, whh2, bih2, bhh2, H)

    wfc_p = jnp.zeros((1, GP), jnp.float32).at[0, :H].set(wfc[0, :])   # (1, 128) f32
    bfc_p = bfc.reshape(1, 1)
    return (wih1_p, whh1_p, b1, wih2_p, whh2_p, b2, wfc_p, bfc_p)


def lstm_ref(x, raw):
    """Pure-JAX f32 reference matching torch.nn.LSTM (batch_first) + Linear (eval mode)."""
    wih1, whh1, bih1, bhh1, wih2, whh2, bih2, bhh2, wfc, bfc = raw
    B, T, _ = x.shape
    H = HIDDEN

    def step(inp, h, c, wih, whh, bih, bhh):
        g = inp @ wih.T + bih + h @ whh.T + bhh
        i = jax.nn.sigmoid(g[:, :H])
        f = jax.nn.sigmoid(g[:, H:2 * H])
        gg = jnp.tanh(g[:, 2 * H:3 * H])
        o = jax.nn.sigmoid(g[:, 3 * H:])
        c = f * c + i * gg
        h = o * jnp.tanh(c)
        return h, c

    h1 = c1 = h2 = c2 = jnp.zeros((B, H), jnp.float32)
    for t in range(T):
        h1, c1 = step(x[:, t, :], h1, c1, wih1, whh1, bih1, bhh1)
        h2, c2 = step(h1, h2, c2, wih2, whh2, bih2, bhh2)
    return h2 @ wfc.T + bfc


if __name__ == "__main__":
    key = jax.random.PRNGKey(0)
    kx, kp = jax.random.split(key)

    B, T = 2, 8
    x = jax.random.normal(kx, (B, T, INPUT_SIZE), jnp.float32)

    raw = make_raw_params(kp)
    packed = pack_params(raw)

    out = lstm_model_forward(x, packed)
    out = jax.block_until_ready(out)

    ref = lstm_ref(x, raw)
    assert out.shape == (B, 1)
    # Tolerance accounts for bf16 MXU operands (f32 accumulation) vs f32 reference.
    assert jnp.allclose(out, ref, rtol=1e-2, atol=2e-3), (out, ref)

    print("KERNEL_OK")
</pallas_src>

<mosaic_0001>
module attributes {stable_mosaic.version = 11 : i64} {
  func.func @lstm_kernel(%arg0: memref<64x128xf32, #tpu.memory_space<vmem>>, %arg1: memref<128x512xbf16, #tpu.memory_space<vmem>>, %arg2: memref<128x512xbf16, #tpu.memory_space<vmem>>, %arg3: memref<1x512xf32, #tpu.memory_space<vmem>>, %arg4: memref<128x512xbf16, #tpu.memory_space<vmem>>, %arg5: memref<128x512xbf16, #tpu.memory_space<vmem>>, %arg6: memref<1x512xf32, #tpu.memory_space<vmem>>, %arg7: memref<1x128xf32, #tpu.memory_space<vmem>>, %arg8: memref<1x1xf32, #tpu.memory_space<vmem>>, %arg9: memref<8x1xf32, #tpu.memory_space<vmem>>) attributes {dimension_semantics = [], scalar_prefetch = 0 : i64, scratch_operands = 0 : i64, tpu.core_type = #tpu.core_type<tc>} {
    %cst = arith.constant 0.000000e+00 : f32
    %0 = vector.broadcast %cst : f32 to vector<8x128xf32>
    %c0 = arith.constant 0 : index
    %c0_0 = arith.constant 0 : index
    %1 = vector.load %arg0[%c0, %c0_0] : memref<64x128xf32, #tpu.memory_space<vmem>>, vector<64x128xf32>
    %2 = arith.truncf %1 : vector<64x128xf32> to vector<64x128xbf16>
    %c0_1 = arith.constant 0 : index
    %c0_2 = arith.constant 0 : index
    %3 = vector.load %arg1[%c0_1, %c0_2] : memref<128x512xbf16, #tpu.memory_space<vmem>>, vector<128x512xbf16>
    %cst_3 = arith.constant dense<0.000000e+00> : vector<64x512xf32>
    %4 = tpu.matmul %2, %3, %cst_3 {dimension_numbers = #tpu.dot_dimension_numbers<[1], [0], [0], [1], [0, 0, 1, 1], [], []>} : vector<64x128xbf16>, vector<128x512xbf16>, vector<64x512xf32> -> vector<64x512xf32>
    %c0_4 = arith.constant 0 : index
    %c0_5 = arith.constant 0 : index
    %5 = vector.load %arg3[%c0_4, %c0_5] : memref<1x512xf32, #tpu.memory_space<vmem>>, vector<1x512xf32>
    %6 = vector.broadcast %5 : vector<1x512xf32> to vector<64x512xf32>
    %7 = arith.addf %4, %6 : vector<64x512xf32>
    %8 = vector.extract_strided_slice %7 {offsets = [0, 0], sizes = [8, 512], strides = [1, 1]} : vector<64x512xf32> to vector<8x512xf32>
    %9 = arith.truncf %0 : vector<8x128xf32> to vector<8x128xbf16>
    %c0_6 = arith.constant 0 : index
    %c0_7 = arith.constant 0 : index
    %10 = vector.load %arg2[%c0_6, %c0_7] : memref<128x512xbf16, #tpu.memory_space<vmem>>, vector<128x512xbf16>
    %cst_8 = arith.constant dense<0.000000e+00> : vector<8x512xf32>
    %11 = tpu.matmul %9, %10, %cst_8 {dimension_numbers = #tpu.dot_dimension_numbers<[1], [0], [0], [1], [0, 0, 1, 1], [], []>} : vector<8x128xbf16>, vector<128x512xbf16>, vector<8x512xf32> -> vector<8x512xf32>
    %12 = arith.addf %8, %11 : vector<8x512xf32>
    %13 = vector.extract_strided_slice %12 {offsets = [0, 0], sizes = [8, 384], strides = [1, 1]} : vector<8x512xf32> to vector<8x384xf32>
    %14 = arith.negf %13 : vector<8x384xf32>
    %15 = math.exp %14 : vector<8x384xf32>
    %cst_9 = arith.constant 1.000000e+00 : f32
    %16 = vector.broadcast %cst_9 : f32 to vector<8x384xf32>
    %17 = arith.addf %16, %15 : vector<8x384xf32>
    %18 = arith.divf %16, %17 : vector<8x384xf32>
    %19 = vector.extract_strided_slice %12 {offsets = [0, 384], sizes = [8, 128], strides = [1, 1]} : vector<8x512xf32> to vector<8x128xf32>
    %20 = math.tanh %19 : vector<8x128xf32>
    %21 = vector.extract_strided_slice %18 {offsets = [0, 0], sizes = [8, 128], strides = [1, 1]} : vector<8x384xf32> to vector<8x128xf32>
    %22 = vector.extract_strided_slice %18 {offsets = [0, 128], sizes = [8, 128], strides = [1, 1]} : vector<8x384xf32> to vector<8x128xf32>
    %23 = vector.extract_strided_slice %18 {offsets = [0, 256], sizes = [8, 128], strides = [1, 1]} : vector<8x384xf32> to vector<8x128xf32>
    %24 = arith.mulf %22, %0 : vector<8x128xf32>
    %25 = arith.mulf %21, %20 : vector<8x128xf32>
    %26 = arith.addf %24, %25 : vector<8x128xf32>
    %27 = math.tanh %26 : vector<8x128xf32>
    %28 = arith.mulf %23, %27 : vector<8x128xf32>
    %29 = vector.extract_strided_slice %7 {offsets = [8, 0], sizes = [8, 512], strides = [1, 1]} : vector<64x512xf32> to vector<8x512xf32>
    %30 = arith.truncf %28 : vector<8x128xf32> to vector<8x128xbf16>
    %c0_10 = arith.constant 0 : index
    %c0_11 = arith.constant 0 : index
    %31 = vector.load %arg2[%c0_10, %c0_11] : memref<128x512xbf16, #tpu.memory_space<vmem>>, vector<128x512xbf16>
    %cst_12 = arith.constant dense<0.000000e+00> : vector<8x512xf32>
    %32 = tpu.matmul %30, %31, %cst_12 {dimension_numbers = #tpu.dot_dimension_numbers<[1], [0], [0], [1], [0, 0, 1, 1], [], []>} : vector<8x128xbf16>, vector<128x512xbf16>, vector<8x512xf32> -> vector<8x512xf32>
    %33 = arith.addf %29, %32 : vector<8x512xf32>
    %34 = vector.extract_strided_slice %33 {offsets = [0, 0], sizes = [8, 384], strides = [1, 1]} : vector<8x512xf32> to vector<8x384xf32>
    %35 = arith.negf %34 : vector<8x384xf32>
    %36 = math.exp %35 : vector<8x384xf32>
    %cst_13 = arith.constant 1.000000e+00 : f32
    %37 = vector.broadcast %cst_13 : f32 to vector<8x384xf32>
    %38 = arith.addf %37, %36 : vector<8x384xf32>
    %39 = arith.divf %37, %38 : vector<8x384xf32>
    %40 = vector.extract_strided_slice %33 {offsets = [0, 384], sizes = [8, 128], strides = [1, 1]} : vector<8x512xf32> to vector<8x128xf32>
    %41 = math.tanh %40 : vector<8x128xf32>
    %42 = vector.extract_strided_slice %39 {offsets = [0, 0], sizes = [8, 128], strides = [1, 1]} : vector<8x384xf32> to vector<8x128xf32>
    %43 = vector.extract_strided_slice %39 {offsets = [0, 128], sizes = [8, 128], strides = [1, 1]} : vector<8x384xf32> to vector<8x128xf32>
    %44 = vector.extract_strided_slice %39 {offsets = [0, 256], sizes = [8, 128], strides = [1, 1]} : vector<8x384xf32> to vector<8x128xf32>
    %45 = arith.mulf %43, %26 : vector<8x128xf32>
    %46 = arith.mulf %42, %41 : vector<8x128xf32>
    %47 = arith.addf %45, %46 : vector<8x128xf32>
    %48 = math.tanh %47 : vector<8x128xf32>
    %49 = arith.mulf %44, %48 : vector<8x128xf32>
    %50 = vector.extract_strided_slice %7 {offsets = [16, 0], sizes = [8, 512], strides = [1, 1]} : vector<64x512xf32> to vector<8x512xf32>
    %51 = arith.truncf %49 : vector<8x128xf32> to vector<8x128xbf16>
    %c0_14 = arith.constant 0 : index
    %c0_15 = arith.constant 0 : index
    %52 = vector.load %arg2[%c0_14, %c0_15] : memref<128x512xbf16, #tpu.memory_space<vmem>>, vector<128x512xbf16>
    %cst_16 = arith.constant dense<0.000000e+00> : vector<8x512xf32>
    %53 = tpu.matmul %51, %52, %cst_16 {dimension_numbers = #tpu.dot_dimension_numbers<[1], [0], [0], [1], [0, 0, 1, 1], [], []>} : vector<8x128xbf16>, vector<128x512xbf16>, vector<8x512xf32> -> vector<8x512xf32>
    %54 = arith.addf %50, %53 : vector<8x512xf32>
    %55 = vector.extract_strided_slice %54 {offsets = [0, 0], sizes = [8, 384], strides = [1, 1]} : vector<8x512xf32> to vector<8x384xf32>
    %56 = arith.negf %55 : vector<8x384xf32>
    %57 = math.exp %56 : vector<8x384xf32>
    %cst_17 = arith.constant 1.000000e+00 : f32
    %58 = vector.broadcast %cst_17 : f32 to vector<8x384xf32>
    %59 = arith.addf %58, %57 : vector<8x384xf32>
    %60 = arith.divf %58, %59 : vector<8x384xf32>
    %61 = vector.extract_strided_slice %54 {offsets = [0, 384], sizes = [8, 128], strides = [1, 1]} : vector<8x512xf32> to vector<8x128xf32>
    %62 = math.tanh %61 : vector<8x128xf32>
    %63 = vector.extract_strided_slice %60 {offsets = [0, 0], sizes = [8, 128], strides = [1, 1]} : vector<8x384xf32> to vector<8x128xf32>
    %64 = vector.extract_strided_slice %60 {offsets = [0, 128], sizes = [8, 128], strides = [1, 1]} : vector<8x384xf32> to vector<8x128xf32>
    %65 = vector.extract_strided_slice %60 {offsets = [0, 256], sizes = [8, 128], strides = [1, 1]} : vector<8x384xf32> to vector<8x128xf32>
    %66 = arith.mulf %64, %47 : vector<8x128xf32>
    %67 = arith.mulf %63, %62 : vector<8x128xf32>
    %68 = arith.addf %66, %67 : vector<8x128xf32>
    %69 = math.tanh %68 : vector<8x128xf32>
    %70 = arith.mulf %65, %69 : vector<8x128xf32>
    %71 = vector.extract_strided_slice %7 {offsets = [24, 0], sizes = [8, 512], strides = [1, 1]} : vector<64x512xf32> to vector<8x512xf32>
    %72 = arith.truncf %70 : vector<8x128xf32> to vector<8x128xbf16>
    %c0_18 = arith.constant 0 : index
    %c0_19 = arith.constant 0 : index
    %73 = vector.load %arg2[%c0_18, %c0_19] : memref<128x512xbf16, #tpu.memory_space<vmem>>, vector<128x512xbf16>
    %cst_20 = arith.constant dense<0.000000e+00> : vector<8x512xf32>
    %74 = tpu.matmul %72, %73, %cst_20 {dimension_numbers = #tpu.dot_dimension_numbers<[1], [0], [0], [1], [0, 0, 1, 1], [], []>} : vector<8x128xbf16>, vector<128x512xbf16>, vector<8x512xf32> -> vector<8x512xf32>
    %75 = arith.addf %71, %74 : vector<8x512xf32>
    %76 = vector.extract_strided_slice %75 {offsets = [0, 0], sizes = [8, 384], strides = [1, 1]} : vector<8x512xf32> to vector<8x384xf32>
    %77 = arith.negf %76 : vector<8x384xf32>
    %78 = math.exp %77 : vector<8x384xf32>
    %cst_21 = arith.constant 1.000000e+00 : f32
    %79 = vector.broadcast %cst_21 : f32 to vector<8x384xf32>
    %80 = arith.addf %79, %78 : vector<8x384xf32>
    %81 = arith.divf %79, %80 : vector<8x384xf32>
    %82 = vector.extract_strided_slice %75 {offsets = [0, 384], sizes = [8, 128], strides = [1, 1]} : vector<8x512xf32> to vector<8x128xf32>
    %83 = math.tanh %82 : vector<8x128xf32>
    %84 = vector.extract_strided_slice %81 {offsets = [0, 0], sizes = [8, 128], strides = [1, 1]} : vector<8x384xf32> to vector<8x128xf32>
    %85 = vector.extract_strided_slice %81 {offsets = [0, 128], sizes = [8, 128], strides = [1, 1]} : vector<8x384xf32> to vector<8x128xf32>
    %86 = vector.extract_strided_slice %81 {offsets = [0, 256], sizes = [8, 128], strides = [1, 1]} : vector<8x384xf32> to vector<8x128xf32>
    %87 = arith.mulf %85, %68 : vector<8x128xf32>
    %88 = arith.mulf %84, %83 : vector<8x128xf32>
    %89 = arith.addf %87, %88 : vector<8x128xf32>
    %90 = math.tanh %89 : vector<8x128xf32>
    %91 = arith.mulf %86, %90 : vector<8x128xf32>
    %92 = vector.extract_strided_slice %7 {offsets = [32, 0], sizes = [8, 512], strides = [1, 1]} : vector<64x512xf32> to vector<8x512xf32>
    %93 = arith.truncf %91 : vector<8x128xf32> to vector<8x128xbf16>
    %c0_22 = arith.constant 0 : index
    %c0_23 = arith.constant 0 : index
    %94 = vector.load %arg2[%c0_22, %c0_23] : memref<128x512xbf16, #tpu.memory_space<vmem>>, vector<128x512xbf16>
    %cst_24 = arith.constant dense<0.000000e+00> : vector<8x512xf32>
    %95 = tpu.matmul %93, %94, %cst_24 {dimension_numbers = #tpu.dot_dimension_numbers<[1], [0], [0], [1], [0, 0, 1, 1], [], []>} : vector<8x128xbf16>, vector<128x512xbf16>, vector<8x512xf32> -> vector<8x512xf32>
    %96 = arith.addf %92, %95 : vector<8x512xf32>
    %97 = vector.extract_strided_slice %96 {offsets = [0, 0], sizes = [8, 384], strides = [1, 1]} : vector<8x512xf32> to vector<8x384xf32>
    %98 = arith.negf %97 : vector<8x384xf32>
    %99 = math.exp %98 : vector<8x384xf32>
    %cst_25 = arith.constant 1.000000e+00 : f32
    %100 = vector.broadcast %cst_25 : f32 to vector<8x384xf32>
    %101 = arith.addf %100, %99 : vector<8x384xf32>
    %102 = arith.divf %100, %101 : vector<8x384xf32>
    %103 = vector.extract_strided_slice %96 {offsets = [0, 384], sizes = [8, 128], strides = [1, 1]} : vector<8x512xf32> to vector<8x128xf32>
    %104 = math.tanh %103 : vector<8x128xf32>
    %105 = vector.extract_strided_slice %102 {offsets = [0, 0], sizes = [8, 128], strides = [1, 1]} : vector<8x384xf32> to vector<8x128xf32>
    %106 = vector.extract_strided_slice %102 {offsets = [0, 128], sizes = [8, 128], strides = [1, 1]} : vector<8x384xf32> to vector<8x128xf32>
    %107 = vector.extract_strided_slice %102 {offsets = [0, 256], sizes = [8, 128], strides = [1, 1]} : vector<8x384xf32> to vector<8x128xf32>
    %108 = arith.mulf %106, %89 : vector<8x128xf32>
    %109 = arith.mulf %105, %104 : vector<8x128xf32>
    %110 = arith.addf %108, %109 : vector<8x128xf32>
    %111 = math.tanh %110 : vector<8x128xf32>
    %112 = arith.mulf %107, %111 : vector<8x128xf32>
    %113 = vector.extract_strided_slice %7 {offsets = [40, 0], sizes = [8, 512], strides = [1, 1]} : vector<64x512xf32> to vector<8x512xf32>
    %114 = arith.truncf %112 : vector<8x128xf32> to vector<8x128xbf16>
    %c0_26 = arith.constant 0 : index
    %c0_27 = arith.constant 0 : index
    %115 = vector.load %arg2[%c0_26, %c0_27] : memref<128x512xbf16, #tpu.memory_space<vmem>>, vector<128x512xbf16>
    %cst_28 = arith.constant dense<0.000000e+00> : vector<8x512xf32>
    %116 = tpu.matmul %114, %115, %cst_28 {dimension_numbers = #tpu.dot_dimension_numbers<[1], [0], [0], [1], [0, 0, 1, 1], [], []>} : vector<8x128xbf16>, vector<128x512xbf16>, vector<8x512xf32> -> vector<8x512xf32>
    %117 = arith.addf %113, %116 : vector<8x512xf32>
    %118 = vector.extract_strided_slice %117 {offsets = [0, 0], sizes = [8, 384], strides = [1, 1]} : vector<8x512xf32> to vector<8x384xf32>
    %119 = arith.negf %118 : vector<8x384xf32>
    %120 = math.exp %119 : vector<8x384xf32>
    %cst_29 = arith.constant 1.000000e+00 : f32
    %121 = vector.broadcast %cst_29 : f32 to vector<8x384xf32>
    %122 = arith.addf %121, %120 : vector<8x384xf32>
    %123 = arith.divf %121, %122 : vector<8x384xf32>
    %124 = vector.extract_strided_slice %117 {offsets = [0, 384], sizes = [8, 128], strides = [1, 1]} : vector<8x512xf32> to vector<8x128xf32>
    %125 = math.tanh %124 : vector<8x128xf32>
    %126 = vector.extract_strided_slice %123 {offsets = [0, 0], sizes = [8, 128], strides = [1, 1]} : vector<8x384xf32> to vector<8x128xf32>
    %127 = vector.extract_strided_slice %123 {offsets = [0, 128], sizes = [8, 128], strides = [1, 1]} : vector<8x384xf32> to vector<8x128xf32>
    %128 = vector.extract_strided_slice %123 {offsets = [0, 256], sizes = [8, 128], strides = [1, 1]} : vector<8x384xf32> to vector<8x128xf32>
    %129 = arith.mulf %127, %110 : vector<8x128xf32>
    %130 = arith.mulf %126, %125 : vector<8x128xf32>
    %131 = arith.addf %129, %130 : vector<8x128xf32>
    %132 = math.tanh %131 : vector<8x128xf32>
    %133 = arith.mulf %128, %132 : vector<8x128xf32>
    %134 = vector.extract_strided_slice %7 {offsets = [48, 0], sizes = [8, 512], strides = [1, 1]} : vector<64x512xf32> to vector<8x512xf32>
    %135 = arith.truncf %133 : vector<8x128xf32> to vector<8x128xbf16>
    %c0_30 = arith.constant 0 : index
    %c0_31 = arith.constant 0 : index
    %136 = vector.load %arg2[%c0_30, %c0_31] : memref<128x512xbf16, #tpu.memory_space<vmem>>, vector<128x512xbf16>
    %cst_32 = arith.constant dense<0.000000e+00> : vector<8x512xf32>
    %137 = tpu.matmul %135, %136, %cst_32 {dimension_numbers = #tpu.dot_dimension_numbers<[1], [0], [0], [1], [0, 0, 1, 1], [], []>} : vector<8x128xbf16>, vector<128x512xbf16>, vector<8x512xf32> -> vector<8x512xf32>
    %138 = arith.addf %134, %137 : vector<8x512xf32>
    %139 = vector.extract_strided_slice %138 {offsets = [0, 0], sizes = [8, 384], strides = [1, 1]} : vector<8x512xf32> to vector<8x384xf32>
    %140 = arith.negf %139 : vector<8x384xf32>
    %141 = math.exp %140 : vector<8x384xf32>
    %cst_33 = arith.constant 1.000000e+00 : f32
    %142 = vector.broadcast %cst_33 : f32 to vector<8x384xf32>
    %143 = arith.addf %142, %141 : vector<8x384xf32>
    %144 = arith.divf %142, %143 : vector<8x384xf32>
    %145 = vector.extract_strided_slice %138 {offsets = [0, 384], sizes = [8, 128], strides = [1, 1]} : vector<8x512xf32> to vector<8x128xf32>
    %146 = math.tanh %145 : vector<8x128xf32>
    %147 = vector.extract_strided_slice %144 {offsets = [0, 0], sizes = [8, 128], strides = [1, 1]} : vector<8x384xf32> to vector<8x128xf32>
    %148 = vector.extract_strided_slice %144 {offsets = [0, 128], sizes = [8, 128], strides = [1, 1]} : vector<8x384xf32> to vector<8x128xf32>
    %149 = vector.extract_strided_slice %144 {offsets = [0, 256], sizes = [8, 128], strides = [1, 1]} : vector<8x384xf32> to vector<8x128xf32>
    %150 = arith.mulf %148, %131 : vector<8x128xf32>
    %151 = arith.mulf %147, %146 : vector<8x128xf32>
    %152 = arith.addf %150, %151 : vector<8x128xf32>
    %153 = math.tanh %152 : vector<8x128xf32>
    %154 = arith.mulf %149, %153 : vector<8x128xf32>
    %155 = vector.extract_strided_slice %7 {offsets = [56, 0], sizes = [8, 512], strides = [1, 1]} : vector<64x512xf32> to vector<8x512xf32>
    %156 = arith.truncf %154 : vector<8x128xf32> to vector<8x128xbf16>
    %c0_34 = arith.constant 0 : index
    %c0_35 = arith.constant 0 : index
    %157 = vector.load %arg2[%c0_34, %c0_35] : memref<128x512xbf16, #tpu.memory_space<vmem>>, vector<128x512xbf16>
    %cst_36 = arith.constant dense<0.000000e+00> : vector<8x512xf32>
    %158 = tpu.matmul %156, %157, %cst_36 {dimension_numbers = #tpu.dot_dimension_numbers<[1], [0], [0], [1], [0, 0, 1, 1], [], []>} : vector<8x128xbf16>, vector<128x512xbf16>, vector<8x512xf32> -> vector<8x512xf32>
    %159 = arith.addf %155, %158 : vector<8x512xf32>
    %160 = vector.extract_strided_slice %159 {offsets = [0, 0], sizes = [8, 384], strides = [1, 1]} : vector<8x512xf32> to vector<8x384xf32>
    %161 = arith.negf %160 : vector<8x384xf32>
    %162 = math.exp %161 : vector<8x384xf32>
    %cst_37 = arith.constant 1.000000e+00 : f32
    %163 = vector.broadcast %cst_37 : f32 to vector<8x384xf32>
    %164 = arith.addf %163, %162 : vector<8x384xf32>
    %165 = arith.divf %163, %164 : vector<8x384xf32>
    %166 = vector.extract_strided_slice %159 {offsets = [0, 384], sizes = [8, 128], strides = [1, 1]} : vector<8x512xf32> to vector<8x128xf32>
    %167 = math.tanh %166 : vector<8x128xf32>
    %168 = vector.extract_strided_slice %165 {offsets = [0, 0], sizes = [8, 128], strides = [1, 1]} : vector<8x384xf32> to vector<8x128xf32>
    %169 = vector.extract_strided_slice %165 {offsets = [0, 128], sizes = [8, 128], strides = [1, 1]} : vector<8x384xf32> to vector<8x128xf32>
    %170 = vector.extract_strided_slice %165 {offsets = [0, 256], sizes = [8, 128], strides = [1, 1]} : vector<8x384xf32> to vector<8x128xf32>
    %171 = arith.mulf %169, %152 : vector<8x128xf32>
    %172 = arith.mulf %168, %167 : vector<8x128xf32>
    %173 = arith.addf %171, %172 : vector<8x128xf32>
    %174 = math.tanh %173 : vector<8x128xf32>
    %175 = arith.mulf %170, %174 : vector<8x128xf32>
    %176 = tpu.concatenate %28, %49, %70, %91, %112, %133, %154, %175 in 0 : vector<8x128xf32>, vector<8x128xf32>, vector<8x128xf32>, vector<8x128xf32>, vector<8x128xf32>, vector<8x128xf32>, vector<8x128xf32>, vector<8x128xf32> -> vector<64x128xf32>
    %177 = arith.truncf %176 : vector<64x128xf32> to vector<64x128xbf16>
    %c0_38 = arith.constant 0 : index
    %c0_39 = arith.constant 0 : index
    %178 = vector.load %arg4[%c0_38, %c0_39] : memref<128x512xbf16, #tpu.memory_space<vmem>>, vector<128x512xbf16>
    %cst_40 = arith.constant dense<0.000000e+00> : vector<64x512xf32>
    %179 = tpu.matmul %177, %178, %cst_40 {dimension_numbers = #tpu.dot_dimension_numbers<[1], [0], [0], [1], [0, 0, 1, 1], [], []>} : vector<64x128xbf16>, vector<128x512xbf16>, vector<64x512xf32> -> vector<64x512xf32>
    %c0_41 = arith.constant 0 : index
    %c0_42 = arith.constant 0 : index
    %180 = vector.load %arg6[%c0_41, %c0_42] : memref<1x512xf32, #tpu.memory_space<vmem>>, vector<1x512xf32>
    %181 = vector.broadcast %180 : vector<1x512xf32> to vector<64x512xf32>
    %182 = arith.addf %179, %181 : vector<64x512xf32>
    %183 = vector.extract_strided_slice %182 {offsets = [0, 0], sizes = [8, 512], strides = [1, 1]} : vector<64x512xf32> to vector<8x512xf32>
    %184 = arith.truncf %0 : vector<8x128xf32> to vector<8x128xbf16>
    %c0_43 = arith.constant 0 : index
    %c0_44 = arith.constant 0 : index
    %185 = vector.load %arg5[%c0_43, %c0_44] : memref<128x512xbf16, #tpu.memory_space<vmem>>, vector<128x512xbf16>
    %cst_45 = arith.constant dense<0.000000e+00> : vector<8x512xf32>
    %186 = tpu.matmul %184, %185, %cst_45 {dimension_numbers = #tpu.dot_dimension_numbers<[1], [0], [0], [1], [0, 0, 1, 1], [], []>} : vector<8x128xbf16>, vector<128x512xbf16>, vector<8x512xf32> -> vector<8x512xf32>
    %187 = arith.addf %183, %186 : vector<8x512xf32>
    %188 = vector.extract_strided_slice %187 {offsets = [0, 0], sizes = [8, 384], strides = [1, 1]} : vector<8x512xf32> to vector<8x384xf32>
    %189 = arith.negf %188 : vector<8x384xf32>
    %190 = math.exp %189 : vector<8x384xf32>
    %cst_46 = arith.constant 1.000000e+00 : f32
    %191 = vector.broadcast %cst_46 : f32 to vector<8x384xf32>
    %192 = arith.addf %191, %190 : vector<8x384xf32>
    %193 = arith.divf %191, %192 : vector<8x384xf32>
    %194 = vector.extract_strided_slice %187 {offsets = [0, 384], sizes = [8, 128], strides = [1, 1]} : vector<8x512xf32> to vector<8x128xf32>
    %195 = math.tanh %194 : vector<8x128xf32>
    %196 = vector.extract_strided_slice %193 {offsets = [0, 0], sizes = [8, 128], strides = [1, 1]} : vector<8x384xf32> to vector<8x128xf32>
    %197 = vector.extract_strided_slice %193 {offsets = [0, 128], sizes = [8, 128], strides = [1, 1]} : vector<8x384xf32> to vector<8x128xf32>
    %198 = vector.extract_strided_slice %193 {offsets = [0, 256], sizes = [8, 128], strides = [1, 1]} : vector<8x384xf32> to vector<8x128xf32>
    %199 = arith.mulf %197, %0 : vector<8x128xf32>
    %200 = arith.mulf %196, %195 : vector<8x128xf32>
    %201 = arith.addf %199, %200 : vector<8x128xf32>
    %202 = math.tanh %201 : vector<8x128xf32>
    %203 = arith.mulf %198, %202 : vector<8x128xf32>
    %204 = vector.extract_strided_slice %182 {offsets = [8, 0], sizes = [8, 512], strides = [1, 1]} : vector<64x512xf32> to vector<8x512xf32>
    %205 = arith.truncf %203 : vector<8x128xf32> to vector<8x128xbf16>
    %c0_47 = arith.constant 0 : index
    %c0_48 = arith.constant 0 : index
    %206 = vector.load %arg5[%c0_47, %c0_48] : memref<128x512xbf16, #tpu.memory_space<vmem>>, vector<128x512xbf16>
    %cst_49 = arith.constant dense<0.000000e+00> : vector<8x512xf32>
    %207 = tpu.matmul %205, %206, %cst_49 {dimension_numbers = #tpu.dot_dimension_numbers<[1], [0], [0], [1], [0, 0, 1, 1], [], []>} : vector<8x128xbf16>, vector<128x512xbf16>, vector<8x512xf32> -> vector<8x512xf32>
    %208 = arith.addf %204, %207 : vector<8x512xf32>
    %209 = vector.extract_strided_slice %208 {offsets = [0, 0], sizes = [8, 384], strides = [1, 1]} : vector<8x512xf32> to vector<8x384xf32>
    %210 = arith.negf %209 : vector<8x384xf32>
    %211 = math.exp %210 : vector<8x384xf32>
    %cst_50 = arith.constant 1.000000e+00 : f32
    %212 = vector.broadcast %cst_50 : f32 to vector<8x384xf32>
    %213 = arith.addf %212, %211 : vector<8x384xf32>
    %214 = arith.divf %212, %213 : vector<8x384xf32>
    %215 = vector.extract_strided_slice %208 {offsets = [0, 384], sizes = [8, 128], strides = [1, 1]} : vector<8x512xf32> to vector<8x128xf32>
    %216 = math.tanh %215 : vector<8x128xf32>
    %217 = vector.extract_strided_slice %214 {offsets = [0, 0], sizes = [8, 128], strides = [1, 1]} : vector<8x384xf32> to vector<8x128xf32>
    %218 = vector.extract_strided_slice %214 {offsets = [0, 128], sizes = [8, 128], strides = [1, 1]} : vector<8x384xf32> to vector<8x128xf32>
    %219 = vector.extract_strided_slice %214 {offsets = [0, 256], sizes = [8, 128], strides = [1, 1]} : vector<8x384xf32> to vector<8x128xf32>
    %220 = arith.mulf %218, %201 : vector<8x128xf32>
    %221 = arith.mulf %217, %216 : vector<8x128xf32>
    %222 = arith.addf %220, %221 : vector<8x128xf32>
    %223 = math.tanh %222 : vector<8x128xf32>
    %224 = arith.mulf %219, %223 : vector<8x128xf32>
    %225 = vector.extract_strided_slice %182 {offsets = [16, 0], sizes = [8, 512], strides = [1, 1]} : vector<64x512xf32> to vector<8x512xf32>
    %226 = arith.truncf %224 : vector<8x128xf32> to vector<8x128xbf16>
    %c0_51 = arith.constant 0 : index
    %c0_52 = arith.constant 0 : index
    %227 = vector.load %arg5[%c0_51, %c0_52] : memref<128x512xbf16, #tpu.memory_space<vmem>>, vector<128x512xbf16>
    %cst_53 = arith.constant dense<0.000000e+00> : vector<8x512xf32>
    %228 = tpu.matmul %226, %227, %cst_53 {dimension_numbers = #tpu.dot_dimension_numbers<[1], [0], [0], [1], [0, 0, 1, 1], [], []>} : vector<8x128xbf16>, vector<128x512xbf16>, vector<8x512xf32> -> vector<8x512xf32>
    %229 = arith.addf %225, %228 : vector<8x512xf32>
    %230 = vector.extract_strided_slice %229 {offsets = [0, 0], sizes = [8, 384], strides = [1, 1]} : vector<8x512xf32> to vector<8x384xf32>
    %231 = arith.negf %230 : vector<8x384xf32>
    %232 = math.exp %231 : vector<8x384xf32>
    %cst_54 = arith.constant 1.000000e+00 : f32
    %233 = vector.broadcast %cst_54 : f32 to vector<8x384xf32>
    %234 = arith.addf %233, %232 : vector<8x384xf32>
    %235 = arith.divf %233, %234 : vector<8x384xf32>
    %236 = vector.extract_strided_slice %229 {offsets = [0, 384], sizes = [8, 128], strides = [1, 1]} : vector<8x512xf32> to vector<8x128xf32>
    %237 = math.tanh %236 : vector<8x128xf32>
    %238 = vector.extract_strided_slice %235 {offsets = [0, 0], sizes = [8, 128], strides = [1, 1]} : vector<8x384xf32> to vector<8x128xf32>
    %239 = vector.extract_strided_slice %235 {offsets = [0, 128], sizes = [8, 128], strides = [1, 1]} : vector<8x384xf32> to vector<8x128xf32>
    %240 = vector.extract_strided_slice %235 {offsets = [0, 256], sizes = [8, 128], strides = [1, 1]} : vector<8x384xf32> to vector<8x128xf32>
    %241 = arith.mulf %239, %222 : vector<8x128xf32>
    %242 = arith.mulf %238, %237 : vector<8x128xf32>
    %243 = arith.addf %241, %242 : vector<8x128xf32>
    %244 = math.tanh %243 : vector<8x128xf32>
    %245 = arith.mulf %240, %244 : vector<8x128xf32>
    %246 = vector.extract_strided_slice %182 {offsets = [24, 0], sizes = [8, 512], strides = [1, 1]} : vector<64x512xf32> to vector<8x512xf32>
    %247 = arith.truncf %245 : vector<8x128xf32> to vector<8x128xbf16>
    %c0_55 = arith.constant 0 : index
    %c0_56 = arith.constant 0 : index
    %248 = vector.load %arg5[%c0_55, %c0_56] : memref<128x512xbf16, #tpu.memory_space<vmem>>, vector<128x512xbf16>
    %cst_57 = arith.constant dense<0.000000e+00> : vector<8x512xf32>
    %249 = tpu.matmul %247, %248, %cst_57 {dimension_numbers = #tpu.dot_dimension_numbers<[1], [0], [0], [1], [0, 0, 1, 1], [], []>} : vector<8x128xbf16>, vector<128x512xbf16>, vector<8x512xf32> -> vector<8x512xf32>
    %250 = arith.addf %246, %249 : vector<8x512xf32>
    %251 = vector.extract_strided_slice %250 {offsets = [0, 0], sizes = [8, 384], strides = [1, 1]} : vector<8x512xf32> to vector<8x384xf32>
    %252 = arith.negf %251 : vector<8x384xf32>
    %253 = math.exp %252 : vector<8x384xf32>
    %cst_58 = arith.constant 1.000000e+00 : f32
    %254 = vector.broadcast %cst_58 : f32 to vector<8x384xf32>
    %255 = arith.addf %254, %253 : vector<8x384xf32>
    %256 = arith.divf %254, %255 : vector<8x384xf32>
    %257 = vector.extract_strided_slice %250 {offsets = [0, 384], sizes = [8, 128], strides = [1, 1]} : vector<8x512xf32> to vector<8x128xf32>
    %258 = math.tanh %257 : vector<8x128xf32>
    %259 = vector.extract_strided_slice %256 {offsets = [0, 0], sizes = [8, 128], strides = [1, 1]} : vector<8x384xf32> to vector<8x128xf32>
    %260 = vector.extract_strided_slice %256 {offsets = [0, 128], sizes = [8, 128], strides = [1, 1]} : vector<8x384xf32> to vector<8x128xf32>
    %261 = vector.extract_strided_slice %256 {offsets = [0, 256], sizes = [8, 128], strides = [1, 1]} : vector<8x384xf32> to vector<8x128xf32>
    %262 = arith.mulf %260, %243 : vector<8x128xf32>
    %263 = arith.mulf %259, %258 : vector<8x128xf32>
    %264 = arith.addf %262, %263 : vector<8x128xf32>
    %265 = math.tanh %264 : vector<8x128xf32>
    %266 = arith.mulf %261, %265 : vector<8x128xf32>
    %267 = vector.extract_strided_slice %182 {offsets = [32, 0], sizes = [8, 512], strides = [1, 1]} : vector<64x512xf32> to vector<8x512xf32>
    %268 = arith.truncf %266 : vector<8x128xf32> to vector<8x128xbf16>
    %c0_59 = arith.constant 0 : index
    %c0_60 = arith.constant 0 : index
    %269 = vector.load %arg5[%c0_59, %c0_60] : memref<128x512xbf16, #tpu.memory_space<vmem>>, vector<128x512xbf16>
    %cst_61 = arith.constant dense<0.000000e+00> : vector<8x512xf32>
    %270 = tpu.matmul %268, %269, %cst_61 {dimension_numbers = #tpu.dot_dimension_numbers<[1], [0], [0], [1], [0, 0, 1, 1], [], []>} : vector<8x128xbf16>, vector<128x512xbf16>, vector<8x512xf32> -> vector<8x512xf32>
    %271 = arith.addf %267, %270 : vector<8x512xf32>
    %272 = vector.extract_strided_slice %271 {offsets = [0, 0], sizes = [8, 384], strides = [1, 1]} : vector<8x512xf32> to vector<8x384xf32>
    %273 = arith.negf %272 : vector<8x384xf32>
    %274 = math.exp %273 : vector<8x384xf32>
    %cst_62 = arith.constant 1.000000e+00 : f32
    %275 = vector.broadcast %cst_62 : f32 to vector<8x384xf32>
    %276 = arith.addf %275, %274 : vector<8x384xf32>
    %277 = arith.divf %275, %276 : vector<8x384xf32>
    %278 = vector.extract_strided_slice %271 {offsets = [0, 384], sizes = [8, 128], strides = [1, 1]} : vector<8x512xf32> to vector<8x128xf32>
    %279 = math.tanh %278 : vector<8x128xf32>
    %280 = vector.extract_strided_slice %277 {offsets = [0, 0], sizes = [8, 128], strides = [1, 1]} : vector<8x384xf32> to vector<8x128xf32>
    %281 = vector.extract_strided_slice %277 {offsets = [0, 128], sizes = [8, 128], strides = [1, 1]} : vector<8x384xf32> to vector<8x128xf32>
    %282 = vector.extract_strided_slice %277 {offsets = [0, 256], sizes = [8, 128], strides = [1, 1]} : vector<8x384xf32> to vector<8x128xf32>
    %283 = arith.mulf %281, %264 : vector<8x128xf32>
    %284 = arith.mulf %280, %279 : vector<8x128xf32>
    %285 = arith.addf %283, %284 : vector<8x128xf32>
    %286 = math.tanh %285 : vector<8x128xf32>
    %287 = arith.mulf %282, %286 : vector<8x128xf32>
    %288 = vector.extract_strided_slice %182 {offsets = [40, 0], sizes = [8, 512], strides = [1, 1]} : vector<64x512xf32> to vector<8x512xf32>
    %289 = arith.truncf %287 : vector<8x128xf32> to vector<8x128xbf16>
    %c0_63 = arith.constant 0 : index
    %c0_64 = arith.constant 0 : index
    %290 = vector.load %arg5[%c0_63, %c0_64] : memref<128x512xbf16, #tpu.memory_space<vmem>>, vector<128x512xbf16>
    %cst_65 = arith.constant dense<0.000000e+00> : vector<8x512xf32>
    %291 = tpu.matmul %289, %290, %cst_65 {dimension_numbers = #tpu.dot_dimension_numbers<[1], [0], [0], [1], [0, 0, 1, 1], [], []>} : vector<8x128xbf16>, vector<128x512xbf16>, vector<8x512xf32> -> vector<8x512xf32>
    %292 = arith.addf %288, %291 : vector<8x512xf32>
    %293 = vector.extract_strided_slice %292 {offsets = [0, 0], sizes = [8, 384], strides = [1, 1]} : vector<8x512xf32> to vector<8x384xf32>
    %294 = arith.negf %293 : vector<8x384xf32>
    %295 = math.exp %294 : vector<8x384xf32>
    %cst_66 = arith.constant 1.000000e+00 : f32
    %296 = vector.broadcast %cst_66 : f32 to vector<8x384xf32>
    %297 = arith.addf %296, %295 : vector<8x384xf32>
    %298 = arith.divf %296, %297 : vector<8x384xf32>
    %299 = vector.extract_strided_slice %292 {offsets = [0, 384], sizes = [8, 128], strides = [1, 1]} : vector<8x512xf32> to vector<8x128xf32>
    %300 = math.tanh %299 : vector<8x128xf32>
    %301 = vector.extract_strided_slice %298 {offsets = [0, 0], sizes = [8, 128], strides = [1, 1]} : vector<8x384xf32> to vector<8x128xf32>
    %302 = vector.extract_strided_slice %298 {offsets = [0, 128], sizes = [8, 128], strides = [1, 1]} : vector<8x384xf32> to vector<8x128xf32>
    %303 = vector.extract_strided_slice %298 {offsets = [0, 256], sizes = [8, 128], strides = [1, 1]} : vector<8x384xf32> to vector<8x128xf32>
    %304 = arith.mulf %302, %285 : vector<8x128xf32>
    %305 = arith.mulf %301, %300 : vector<8x128xf32>
    %306 = arith.addf %304, %305 : vector<8x128xf32>
    %307 = math.tanh %306 : vector<8x128xf32>
    %308 = arith.mulf %303, %307 : vector<8x128xf32>
    %309 = vector.extract_strided_slice %182 {offsets = [48, 0], sizes = [8, 512], strides = [1, 1]} : vector<64x512xf32> to vector<8x512xf32>
    %310 = arith.truncf %308 : vector<8x128xf32> to vector<8x128xbf16>
    %c0_67 = arith.constant 0 : index
    %c0_68 = arith.constant 0 : index
    %311 = vector.load %arg5[%c0_67, %c0_68] : memref<128x512xbf16, #tpu.memory_space<vmem>>, vector<128x512xbf16>
    %cst_69 = arith.constant dense<0.000000e+00> : vector<8x512xf32>
    %312 = tpu.matmul %310, %311, %cst_69 {dimension_numbers = #tpu.dot_dimension_numbers<[1], [0], [0], [1], [0, 0, 1, 1], [], []>} : vector<8x128xbf16>, vector<128x512xbf16>, vector<8x512xf32> -> vector<8x512xf32>
    %313 = arith.addf %309, %312 : vector<8x512xf32>
    %314 = vector.extract_strided_slice %313 {offsets = [0, 0], sizes = [8, 384], strides = [1, 1]} : vector<8x512xf32> to vector<8x384xf32>
    %315 = arith.negf %314 : vector<8x384xf32>
    %316 = math.exp %315 : vector<8x384xf32>
    %cst_70 = arith.constant 1.000000e+00 : f32
    %317 = vector.broadcast %cst_70 : f32 to vector<8x384xf32>
    %318 = arith.addf %317, %316 : vector<8x384xf32>
    %319 = arith.divf %317, %318 : vector<8x384xf32>
    %320 = vector.extract_strided_slice %313 {offsets = [0, 384], sizes = [8, 128], strides = [1, 1]} : vector<8x512xf32> to vector<8x128xf32>
    %321 = math.tanh %320 : vector<8x128xf32>
    %322 = vector.extract_strided_slice %319 {offsets = [0, 0], sizes = [8, 128], strides = [1, 1]} : vector<8x384xf32> to vector<8x128xf32>
    %323 = vector.extract_strided_slice %319 {offsets = [0, 128], sizes = [8, 128], strides = [1, 1]} : vector<8x384xf32> to vector<8x128xf32>
    %324 = vector.extract_strided_slice %319 {offsets = [0, 256], sizes = [8, 128], strides = [1, 1]} : vector<8x384xf32> to vector<8x128xf32>
    %325 = arith.mulf %323, %306 : vector<8x128xf32>
    %326 = arith.mulf %322, %321 : vector<8x128xf32>
    %327 = arith.addf %325, %326 : vector<8x128xf32>
    %328 = math.tanh %327 : vector<8x128xf32>
    %329 = arith.mulf %324, %328 : vector<8x128xf32>
    %330 = vector.extract_strided_slice %182 {offsets = [56, 0], sizes = [8, 512], strides = [1, 1]} : vector<64x512xf32> to vector<8x512xf32>
    %331 = arith.truncf %329 : vector<8x128xf32> to vector<8x128xbf16>
    %c0_71 = arith.constant 0 : index
    %c0_72 = arith.constant 0 : index
    %332 = vector.load %arg5[%c0_71, %c0_72] : memref<128x512xbf16, #tpu.memory_space<vmem>>, vector<128x512xbf16>
    %cst_73 = arith.constant dense<0.000000e+00> : vector<8x512xf32>
    %333 = tpu.matmul %331, %332, %cst_73 {dimension_numbers = #tpu.dot_dimension_numbers<[1], [0], [0], [1], [0, 0, 1, 1], [], []>} : vector<8x128xbf16>, vector<128x512xbf16>, vector<8x512xf32> -> vector<8x512xf32>
    %334 = arith.addf %330, %333 : vector<8x512xf32>
    %335 = vector.extract_strided_slice %334 {offsets = [0, 0], sizes = [8, 384], strides = [1, 1]} : vector<8x512xf32> to vector<8x384xf32>
    %336 = arith.negf %335 : vector<8x384xf32>
    %337 = math.exp %336 : vector<8x384xf32>
    %cst_74 = arith.constant 1.000000e+00 : f32
    %338 = vector.broadcast %cst_74 : f32 to vector<8x384xf32>
    %339 = arith.addf %338, %337 : vector<8x384xf32>
    %340 = arith.divf %338, %339 : vector<8x384xf32>
    %341 = vector.extract_strided_slice %334 {offsets = [0, 384], sizes = [8, 128], strides = [1, 1]} : vector<8x512xf32> to vector<8x128xf32>
    %342 = math.tanh %341 : vector<8x128xf32>
    %343 = vector.extract_strided_slice %340 {offsets = [0, 0], sizes = [8, 128], strides = [1, 1]} : vector<8x384xf32> to vector<8x128xf32>
    %344 = vector.extract_strided_slice %340 {offsets = [0, 128], sizes = [8, 128], strides = [1, 1]} : vector<8x384xf32> to vector<8x128xf32>
    %345 = vector.extract_strided_slice %340 {offsets = [0, 256], sizes = [8, 128], strides = [1, 1]} : vector<8x384xf32> to vector<8x128xf32>
    %346 = arith.mulf %344, %327 : vector<8x128xf32>
    %347 = arith.mulf %343, %342 : vector<8x128xf32>
    %348 = arith.addf %346, %347 : vector<8x128xf32>
    %349 = math.tanh %348 : vector<8x128xf32>
    %350 = arith.mulf %345, %349 : vector<8x128xf32>
    %c0_75 = arith.constant 0 : index
    %c0_76 = arith.constant 0 : index
    %351 = vector.load %arg7[%c0_75, %c0_76] : memref<1x128xf32, #tpu.memory_space<vmem>>, vector<1x128xf32>
    %352 = vector.broadcast %351 : vector<1x128xf32> to vector<8x128xf32>
    %353 = arith.mulf %350, %352 : vector<8x128xf32>
    %cst_77 = arith.constant dense<0.000000e+00> : vector<8xf32>
    %354 = vector.multi_reduction <add>, %353, %cst_77 [1] : vector<8x128xf32> to vector<8xf32>
    %355 = vector.shape_cast %354 : vector<8xf32> to vector<8x1xf32>
    %c0_78 = arith.constant 0 : index
    %c0_79 = arith.constant 0 : index
    %356 = vector.load %arg8[%c0_78, %c0_79] : memref<1x1xf32, #tpu.memory_space<vmem>>, vector<1x1xf32>
    %357 = vector.broadcast %356 : vector<1x1xf32> to vector<8x1xf32>
    %358 = arith.addf %355, %357 : vector<8x1xf32>
    %c0_80 = arith.constant 0 : index
    %c0_81 = arith.constant 0 : index
    %359 = vector.load %arg9[%c0_80, %c0_81] : memref<8x1xf32, #tpu.memory_space<vmem>>, vector<8x1xf32>
    tpu.vector_store %arg9[%c0_80, %c0_81], %358 {strides = array<i32>} : memref<8x1xf32, #tpu.memory_space<vmem>>, vector<8x1xf32>,
    return
  }
}

</mosaic_0001>

<bundles_post_ra>
// kernel: tpu_custom_call.1
= control target key start
LH: loop header
LB: loop body
LE: loop exit
PB: predicated region body
PF: predicated region fallthrough
CT: control target
= control target key end

     0   :  { %s5156_s0 = inlined_call_operand.hbm [shape: f32[64,128], index: 0, kind: input, shape index: {}]   ;;  %s5157_s1 = inlined_call_operand.hbm [shape: bf16[128,512], index: 1, kind: input, shape index: {}]   ;;  %s5158_s2 = inlined_call_operand.hbm [shape: bf16[128,512], index: 2, kind: input, shape index: {}]   ;;  %s5159_s3 = inlined_call_operand.vmem [shape: f32[1,512], index: 3, kind: input, shape index: {}]   ;;  %s5160_s4 = inlined_call_operand.hbm [shape: bf16[128,512], index: 4, kind: input, shape index: {}]   ;;  %s5161_s5 = inlined_call_operand.hbm [shape: bf16[128,512], index: 5, kind: input, shape index: {}]   ;;  %s5162_s6 = inlined_call_operand.vmem [shape: f32[1,512], index: 6, kind: input, shape index: {}]   ;;  %s5163_s7 = inlined_call_operand.vmem [shape: f32[1,128], index: 7, kind: input, shape index: {}]   ;;  %s5164_s8 = inlined_call_operand.<no memory space> [shape: f32[1,1], index: 8, kind: input, shape index: {}]   ;;  %s5165_s9 = inlined_call_operand.vmem [shape: f32[8,1], index: 9, kind: output, shape index: {}]  }
   0x1   :  { %v14_v0 = vstv %s5164_s8 }
   0x2   :  { %15 = vst [vmem:[#allocation2] sm:$0x1] %v14_v0 }
   0x3   :  { %16 = vsyncpa [#allocation4], 0 }
   0x4   :  { %17 = vsyncpa [#allocation6], 0 }
   0x5   :  { %18 = vsyncpa [#allocation9], 0  ;;  %s3840_s11 = smov [#allocation5]   ;;  %s3724_s15 = scalar_lea.hbm %s5157_s1, 4096 }
   0x6   :  { %s36_s12 = sshll.u32 %s3840_s11, 4  ;;  %p3725_p0 = scmp.ne.s32.totalorder %s5157_s1, %s3724_s15  ;;  %s37_s12 = int_to_ptr.vmem [resolvable:$true] %s36_s12 }
   0x7   :  { %p3728_p1 = scmp.lt.u32.totalorder %s3724_s15, %s5157_s1 }
   0x9   :  { %p3730_p2 = pnand %p3728_p1, %p3725_p0 }
   0xb   :  { %3733 = shalt.err (!%p3730_p2)
}
   0xc   :  { %s3734_s8 = scalar_lea.vmem %s37_s12, 4096  ;;  %p3739_p4 = scmp.lt.s32.totalorder %s37_s12, %s37_s12 }
   0xd   :  { %p3735_p3 = scmp.ne.s32.totalorder %s37_s12, %s3734_s8  ;;  %p3740_p5 = scmp.lt.s32.totalorder %s3734_s8, %s3734_s8 }
   0xf   :  { %p3741_p6 = por %p3740_p5, %p3739_p4 }
  0x11   :  { %p3742_p7 = pnand %p3741_p6, %p3735_p3 }
  0x13   :  { %3745 = shalt.err (!%p3742_p7)
}
  0x14   :  { %s3841_s20 = smov 256   ;;  %s3842_s21 = smov 16  }
  0x15   :  { %42 = dma.hbm_to_vmem [thread:$0]  %s5157_s1, 4096, %s37_s12, [#allocation6], %s3841_s20, %s3841_s20, %s3842_s21  }
  0x16   :  { %s3843_s24 = smov [#allocation8]   ;;  %s3844_s26 = smov [#allocation3]  }
  0x17   :  { %s62_s25 = sshll.u32 %s3843_s24, 4  ;;  %s24_s27 = sshll.u32 %s3844_s26, 4  ;;  %s63_s25 = int_to_ptr.vmem [resolvable:$true] %s62_s25  ;;  %s25_s27 = int_to_ptr.vmem [resolvable:$true] %s24_s27 }
  0x18   :  { %s3746_s30 = scalar_lea.hbm %s5160_s4, 4096 }
  0x19   :  { %p3747_p8 = scmp.ne.s32.totalorder %s5160_s4, %s3746_s30  ;;  %p3750_p9 = scmp.lt.u32.totalorder %s3746_s30, %s5160_s4 }
  0x1b   :  { %p3752_p10 = pnand %p3750_p9, %p3747_p8 }
  0x1d   :  { %3755 = shalt.err (!%p3752_p10)
}
  0x1e   :  { %s3756_s1 = scalar_lea.vmem %s63_s25, 4096  ;;  %p3761_p12 = scmp.lt.s32.totalorder %s63_s25, %s63_s25 }
  0x1f   :  { %p3757_p11 = scmp.ne.s32.totalorder %s63_s25, %s3756_s1  ;;  %p3762_p13 = scmp.lt.s32.totalorder %s3756_s1, %s3756_s1 }
  0x21   :  { %p3763_p0 = por %p3762_p13, %p3761_p12 }
  0x23   :  { %p3764_p1 = pnand %p3763_p0, %p3757_p11 }
  0x25   :  { %3767 = shalt.err (!%p3764_p1)
}
  0x26   :  { %68 = dma.hbm_to_vmem [thread:$0]  %s5160_s4, 4096, %s63_s25, [#allocation9], %s3841_s20, %s3841_s20, %s3842_s21  }
  0x27   :  { %s3768_s18 = scalar_lea.hbm %s5156_s0, 1024 }
  0x28   :  { %p3769_p2 = scmp.ne.s32.totalorder %s5156_s0, %s3768_s18  ;;  %p3772_p3 = scmp.lt.u32.totalorder %s3768_s18, %s5156_s0 }
  0x2a   :  { %p3774_p4 = pnand %p3772_p3, %p3769_p2 }
  0x2c   :  { %3777 = shalt.err (!%p3774_p4)
}
  0x2d   :  { %s3778_s24 = scalar_lea.vmem %s25_s27, 1024  ;;  %p3783_p6 = scmp.lt.s32.totalorder %s25_s27, %s25_s27 }
  0x2e   :  { %p3779_p5 = scmp.ne.s32.totalorder %s25_s27, %s3778_s24  ;;  %p3784_p7 = scmp.lt.s32.totalorder %s3778_s24, %s3778_s24 }
  0x30   :  { %p3785_p8 = por %p3784_p7, %p3783_p6 }
  0x32   :  { %p3786_p9 = pnand %p3785_p8, %p3779_p5 }
  0x34   :  { %3789 = shalt.err (!%p3786_p9)
}
  0x35   :  { %s3845_s4 = smov 128   ;;  %s3846_s25 = smov 8  }
  0x36   :  { %30 = dma.hbm_to_vmem [thread:$0]  %s5156_s0, 1024, %s25_s27, [#allocation4], %s3845_s4, %s3845_s4, %s3846_s25  }
  0x37   :  { %s3847_s29 = smov [#allocation7]   ;;  %s3848_s10 = smov [#allocation10]  }
  0x38   :  { %s48_s30 = sshll.u32 %s3847_s29, 4  ;;  %s74_s11 = sshll.u32 %s3848_s10, 4  ;;  %s49_s30 = int_to_ptr.vmem [resolvable:$true] %s48_s30  ;;  %s75_s11 = int_to_ptr.vmem [resolvable:$true] %s74_s11 }
  0x39   :  { %s3790_s1 = scalar_lea.hbm %s5158_s2, 4096 }
  0x3a   :  { %p3791_p10 = scmp.ne.s32.totalorder %s5158_s2, %s3790_s1  ;;  %p3794_p11 = scmp.lt.u32.totalorder %s3790_s1, %s5158_s2 }
  0x3c   :  { %p3796_p12 = pnand %p3794_p11, %p3791_p10 }
  0x3e   :  { %3799 = shalt.err (!%p3796_p12)
}
  0x3f   :  { %s3800_s0 = scalar_lea.vmem %s49_s30, 4096  ;;  %p3805_p0 = scmp.lt.s32.totalorder %s49_s30, %s49_s30 }
  0x40   :  { %p3801_p13 = scmp.ne.s32.totalorder %s49_s30, %s3800_s0  ;;  %p3806_p1 = scmp.lt.s32.totalorder %s3800_s0, %s3800_s0 }
  0x42   :  { %p3807_p2 = por %p3806_p1, %p3805_p0 }
  0x44   :  { %p3808_p3 = pnand %p3807_p2, %p3801_p13 }
  0x46   :  { %3811 = shalt.err (!%p3808_p3)
}
  0x47   :  { %54 = dma.hbm_to_vmem [thread:$0]  %s5158_s2, 4096, %s49_s30, [#allocation6], %s3841_s20, %s3841_s20, %s3842_s21  }
  0x48   :  { %s3812_s22 = scalar_lea.hbm %s5161_s5, 4096 }
  0x49   :  { %p3813_p4 = scmp.ne.s32.totalorder %s5161_s5, %s3812_s22  ;;  %p3816_p5 = scmp.lt.u32.totalorder %s3812_s22, %s5161_s5 }
  0x4b   :  { %p3818_p6 = pnand %p3816_p5, %p3813_p4 }
  0x4d   :  { %3821 = shalt.err (!%p3818_p6)
}
  0x4e   :  { %s3822_s26 = scalar_lea.vmem %s75_s11, 4096  ;;  %p3827_p8 = scmp.lt.s32.totalorder %s75_s11, %s75_s11 }
  0x4f   :  { %p3823_p7 = scmp.ne.s32.totalorder %s75_s11, %s3822_s26  ;;  %p3828_p9 = scmp.lt.s32.totalorder %s3822_s26, %s3822_s26 }
  0x51   :  { %p3829_p10 = por %p3828_p9, %p3827_p8 }
  0x53   :  { %p3830_p11 = pnand %p3829_p10, %p3823_p7 }
  0x55   :  { %3833 = shalt.err (!%p3830_p11)
}
  0x56   :  { %80 = dma.hbm_to_vmem [thread:$0]  %s5161_s5, 4096, %s75_s11, [#allocation9], %s3841_s20, %s3841_s20, %s3842_s21  }
  0x57   :  { %3834 = dma.done.wait [#allocation4], 1024  }
  0x58   :  { %3835 = vsyncadd [#allocation4], 4294966272 }
  0x59   :  { %3836 = dma.done.wait [#allocation6], 8192  }
  0x5a   :  { %3837 = vsyncadd [#allocation6], 4294959104 }
  0x5b   :  { %3838 = dma.done.wait [#allocation9], 8192  }
  0x5c   :  { %3839 = vsyncadd [#allocation9], 4294959104  ;;  %v5170_v1 = vmov 0   ;;  %v3212_v2 = vld [vmem:[#allocation5 + $0x4] ss:$16 sps:$4 sm:$0xff]   ;;  %v104_v35 = vld [vmem:[#allocation3 + $0x8] sm:$0xff] }
  0x5d   :  { %361 = vmatprep.mubr.bf16.mxu0 %v5170_v1  ;;  %434 = vmatprep.mubr.bf16.mxu1 %v5170_v1  ;;  %v3214_v3 = vld [vmem:[#allocation5 + $0xc] ss:$16 sps:$4 sm:$0xff]   ;;  %v3216_v4 = vld [vmem:[#allocation5] ss:$16 sps:$4 sm:$0xff]   ;;  %v3217_v5 = vld [vmem:[#allocation5 + $0x8] ss:$16 sps:$4 sm:$0xff]  }
  0x5e   :  { %329 = vmatprep.subr.bf16.mxu0 %v3212_v2  ;;  %402 = vmatprep.subr.bf16.mxu1 %v3214_v3  ;;  %v3218_v6 = vld [vmem:[#allocation5 + $0x24] ss:$16 sps:$4 sm:$0xff]   ;;  %v3220_v7 = vld [vmem:[#allocation5 + $0x2c] ss:$16 sps:$4 sm:$0xff]   ;;  %v3222_v8 = vld [vmem:[#allocation5 + $0x20] ss:$16 sps:$4 sm:$0xff]  }
  0x5f   :  { %330 = vmatpush1.bf16.msra.mxu0 %v3216_v4  ;;  %403 = vmatpush1.bf16.msra.mxu1 %v3217_v5  ;;  %v3223_v9 = vld [vmem:[#allocation5 + $0x28] ss:$16 sps:$4 sm:$0xff]   ;;  %v3224_v10 = vld [vmem:[#allocation5 + $0x44] ss:$16 sps:$4 sm:$0xff]   ;;  %v3226_v11 = vld [vmem:[#allocation5 + $0x4c] ss:$16 sps:$4 sm:$0xff]  }
  0x60   :  { %331 = vmatprep.subr.bf16.mxu0 %v3218_v6  ;;  %404 = vmatprep.subr.bf16.mxu1 %v3220_v7  ;;  %v3228_v12 = vld [vmem:[#allocation5 + $0x40] ss:$16 sps:$4 sm:$0xff]   ;;  %v3229_v13 = vld [vmem:[#allocation5 + $0x48] ss:$16 sps:$4 sm:$0xff]   ;;  %v3230_v14 = vld [vmem:[#allocation5 + $0x64] ss:$16 sps:$4 sm:$0xff]  }
  0x61   :  { %v3232_v15 = vld [vmem:[#allocation5 + $0x6c] ss:$16 sps:$4 sm:$0xff]   ;;  %v3234_v16 = vld [vmem:[#allocation5 + $0x60] ss:$16 sps:$4 sm:$0xff]   ;;  %v3235_v17 = vld [vmem:[#allocation5 + $0x68] ss:$16 sps:$4 sm:$0xff]  }
  0x62   :  { %v3236_v18 = vld [vmem:[#allocation5 + $0x84] ss:$16 sps:$4 sm:$0xff]   ;;  %v3238_v19 = vld [vmem:[#allocation5 + $0x8c] ss:$16 sps:$4 sm:$0xff]   ;;  %v3240_v20 = vld [vmem:[#allocation5 + $0x80] ss:$16 sps:$4 sm:$0xff]  }
  0x63   :  { %332 = vmatpush1.bf16.msra.mxu0 %v3222_v8  ;;  %405 = vmatpush1.bf16.msra.mxu1 %v3223_v9  ;;  %v3241_v21 = vld [vmem:[#allocation5 + $0x88] ss:$16 sps:$4 sm:$0xff]   ;;  %v3242_v22 = vld [vmem:[#allocation5 + $0xa4] ss:$16 sps:$4 sm:$0xff]   ;;  %v3244_v23 = vld [vmem:[#allocation5 + $0xac] ss:$16 sps:$4 sm:$0xff]  }
  0x64   :  { %333 = vmatprep.subr.bf16.mxu0 %v3224_v10  ;;  %406 = vmatprep.subr.bf16.mxu1 %v3226_v11  ;;  %v3246_v24 = vld [vmem:[#allocation5 + $0xa0] ss:$16 sps:$4 sm:$0xff]   ;;  %v3247_v25 = vld [vmem:[#allocation5 + $0xa8] ss:$16 sps:$4 sm:$0xff]   ;;  %v3248_v26 = vld [vmem:[#allocation5 + $0xc4] ss:$16 sps:$4 sm:$0xff]  }
  0x65   :  { %v3250_v27 = vld [vmem:[#allocation5 + $0xcc] ss:$16 sps:$4 sm:$0xff]   ;;  %v3252_v28 = vld [vmem:[#allocation5 + $0xc0] ss:$16 sps:$4 sm:$0xff]   ;;  %v3253_v29 = vld [vmem:[#allocation5 + $0xc8] ss:$16 sps:$4 sm:$0xff]  }
  0x66   :  { %v3254_v30 = vld [vmem:[#allocation5 + $0xe4] ss:$16 sps:$4 sm:$0xff]   ;;  %v3256_v31 = vld [vmem:[#allocation5 + $0xec] ss:$16 sps:$4 sm:$0xff]   ;;  %v3258_v32 = vld [vmem:[#allocation5 + $0xe0] ss:$16 sps:$4 sm:$0xff]  }
  0x67   :  { %334 = vmatpush1.bf16.msra.mxu0 %v3228_v12  ;;  %407 = vmatpush1.bf16.msra.mxu1 %v3229_v13  ;;  %v3259_v33 = vld [vmem:[#allocation5 + $0xe8] ss:$16 sps:$4 sm:$0xff]   ;;  %v103_v34 = vld [vmem:[#allocation3] sm:$0xff]  ;;  %v3979_v37 = vld [vmem:[#allocation7 + $0xc] ss:$16 sps:$4 sm:$0xff]   ;;  %vm3015_vm0 = vcmask 7168  }
  0x68   :  { %335 = vmatprep.subr.bf16.mxu0 %v3230_v14  ;;  %408 = vmatprep.subr.bf16.mxu1 %v3232_v15  ;;  %v3977_v36 = vld [vmem:[#allocation7 + $0x4] ss:$16 sps:$4 sm:$0xff]   ;;  %v111_v38 = vpack.c.bf16 %v104_v35, %v103_v34  ;;  %v3981_v39 = vld [vmem:[#allocation7] ss:$16 sps:$4 sm:$0xff]   ;;  %v3983_v40 = vld [vmem:[#allocation7 + $0x8] ss:$16 sps:$4 sm:$0xff]   ;;  %v149_v15 = vlaneseq }
  0x69   :  { %v3987_v41 = vld [vmem:[#allocation7 + $0x24] ss:$16 sps:$4 sm:$0xff]   ;;  %v3989_v42 = vld [vmem:[#allocation7 + $0x2c] ss:$16 sps:$4 sm:$0xff]   ;;  %v3991_v43 = vld [vmem:[#allocation7 + $0x20] ss:$16 sps:$4 sm:$0xff]  }
  0x6a   :  { %v3993_v44 = vld [vmem:[#allocation7 + $0x28] ss:$16 sps:$4 sm:$0xff]   ;;  %v105_v45 = vld [vmem:[#allocation3 + $0x10] sm:$0xff]  ;;  %v4001_v48 = vld [vmem:[#allocation7 + $0x4c] ss:$16 sps:$4 sm:$0xff]  }
  0x6b   :  { %336 = vmatpush1.bf16.msra.mxu0 %v3234_v16  ;;  %409 = vmatpush1.bf16.msra.mxu1 %v3235_v17  ;;  %v106_v46 = vld [vmem:[#allocation3 + $0x18] sm:$0xff]  ;;  %v3997_v47 = vld [vmem:[#allocation7 + $0x44] ss:$16 sps:$4 sm:$0xff]   ;;  %v4005_v50 = vld [vmem:[#allocation7 + $0x40] ss:$16 sps:$4 sm:$0xff]   ;;  %v4119_v16 = vshrl.u32 %v149_v15, 7 }
  0x6c   :  { %337 = vmatprep.subr.bf16.mxu0 %v3236_v18  ;;  %410 = vmatprep.subr.bf16.mxu1 %v3238_v19  ;;  %v112_v49 = vpack.c.bf16 %v106_v46, %v105_v45  ;;  %v4007_v51 = vld [vmem:[#allocation7 + $0x48] ss:$16 sps:$4 sm:$0xff]   ;;  %v4011_v52 = vld [vmem:[#allocation7 + $0x64] ss:$16 sps:$4 sm:$0xff]   ;;  %v4015_v53 = vld [vmem:[#allocation7 + $0x6c] ss:$16 sps:$4 sm:$0xff]  }
  0x6d   :  { %v4017_v54 = vld [vmem:[#allocation7 + $0x60] ss:$16 sps:$4 sm:$0xff]   ;;  %v4019_v55 = vld [vmem:[#allocation7 + $0x68] ss:$16 sps:$4 sm:$0xff]   ;;  %v4025_v58 = vld [vmem:[#allocation7 + $0x84] ss:$16 sps:$4 sm:$0xff]  }
  0x6e   :  { %v107_v56 = vld [vmem:[#allocation3 + $0x20] sm:$0xff]  ;;  %v108_v57 = vld [vmem:[#allocation3 + $0x28] sm:$0xff]  ;;  %v109_v4 = vld [vmem:[#allocation3 + $0x30] sm:$0xff]  ;;  %5174 = vst [vmem:[#allocation14_spill] sm:$0xff] %v4119_v16  ;;  %v5168_v17 = vsub.s32 2, %v4119_v16  ;;  %v5166_v18 = vsub.s32 3, %v4119_v16 }
  0x6f   :  { %338 = vmatpush1.bf16.msra.mxu0 %v3240_v20  ;;  %411 = vmatpush1.bf16.msra.mxu1 %v3241_v21  ;;  %v4027_v59 = vld [vmem:[#allocation7 + $0x8c] ss:$16 sps:$4 sm:$0xff]   ;;  %v4031_v60 = vld [vmem:[#allocation7 + $0x80] ss:$16 sps:$4 sm:$0xff]   ;;  %v4033_v61 = vld [vmem:[#allocation7 + $0x88] ss:$16 sps:$4 sm:$0xff]   ;;  %v113_v62 = vpack.c.bf16 %v108_v57, %v107_v56 }
  0x70   :  { %339 = vmatprep.subr.bf16.mxu0 %v3242_v22  ;;  %412 = vmatprep.subr.bf16.mxu1 %v3244_v23  ;;  %v4035_v63 = vld [vmem:[#allocation7 + $0xa4] ss:$16 sps:$4 sm:$0xff]   ;;  %v4037_v0 = vld [vmem:[#allocation7 + $0xac] ss:$16 sps:$4 sm:$0xff]   ;;  %v4043_v2 = vld [vmem:[#allocation7 + $0xa0] ss:$16 sps:$4 sm:$0xff]  }
  0x71   :  { %v4045_v3 = vld [vmem:[#allocation7 + $0xa8] ss:$16 sps:$4 sm:$0xff]   ;;  %v4047_v6 = vld [vmem:[#allocation7 + $0xc4] ss:$16 sps:$4 sm:$0xff]   ;;  %v4049_v7 = vld [vmem:[#allocation7 + $0xcc] ss:$16 sps:$4 sm:$0xff]  }
  0x72   :  { %v110_v5 = vld [vmem:[#allocation3 + $0x38] sm:$0xff]  ;;  %v4057_v8 = vld [vmem:[#allocation7 + $0xc0] ss:$16 sps:$4 sm:$0xff]   ;;  %v4061_v11 = vld [vmem:[#allocation7 + $0xe4] ss:$16 sps:$4 sm:$0xff]   ;;  %v5169_v19 = vsub.s32 0, %v4119_v16 }
  0x73   :  { %340 = vmatpush1.bf16.msra.mxu0 %v3246_v24  ;;  %413 = vmatpush1.bf16.msra.mxu1 %v3247_v25  ;;  %v4059_v9 = vld [vmem:[#allocation7 + $0xc8] ss:$16 sps:$4 sm:$0xff]   ;;  %v114_v10 = vpack.c.bf16 %v110_v5, %v109_v4  ;;  %v4063_v12 = vld [vmem:[#allocation7 + $0xec] ss:$16 sps:$4 sm:$0xff]   ;;  %v4069_v13 = vld [vmem:[#allocation7 + $0xe0] ss:$16 sps:$4 sm:$0xff]  }
  0x74   :  { %341 = vmatprep.subr.bf16.mxu0 %v3248_v26  ;;  %414 = vmatprep.subr.bf16.mxu1 %v3250_v27  ;;  %v4071_v14 = vld [vmem:[#allocation7 + $0xe8] ss:$16 sps:$4 sm:$0xff]   ;;  %v147_v20 = vld [vmem:[%s5159_s3] sm:$0xf]  ;;  %v5167_v21 = vsub.s32 1, %v4119_v16 }
  0x75   :  { %v4130_v22 = vrot.slane %v147_v20, %v5168_v17  ;;  %v4138_v25 = vrot.slane %v147_v20, %v5166_v18  ;;  %v152_v26 = vrot.slane %v147_v20, %v5169_v19 }
  0x77   :  { %342 = vmatpush1.bf16.msra.mxu0 %v3252_v28  ;;  %415 = vmatpush1.bf16.msra.mxu1 %v3253_v29  ;;  %v156_v29 = vrot.slane %v147_v20, %v5167_v21 }
  0x78   :  { %343 = vmatprep.subr.bf16.mxu0 %v3254_v30  ;;  %416 = vmatprep.subr.bf16.mxu1 %v3256_v31 }
  0x7b   :  { %344 = vmatpush1.bf16.msra.mxu0 %v3258_v32  ;;  %417 = vmatpush1.bf16.msra.mxu1 %v3259_v33 }
  0x7c   :  { %667 = vmatprep.subr.bf16.mxu0 %v3977_v36  ;;  %708 = vmatprep.subr.bf16.mxu1 %v3979_v37 }
  0x7e   :  { %362 = vmatmul.mubr.bf16.vlgmr.msra.gmra.mrb[0].mxu0 %v111_v38  ;;  %435 = vmatmul.mubr.bf16.vlgmr.msra.gmra.mrb[0].mxu1 %v111_v38 }
  0x7f   :  { %668 = vmatpush1.bf16.msra.mxu0 %v3981_v39  ;;  %709 = vmatpush1.bf16.msra.mxu1 %v3983_v40 }
  0x80   :  { %669 = vmatprep.subr.bf16.mxu0 %v3987_v41  ;;  %710 = vmatprep.subr.bf16.mxu1 %v3989_v42 }
  0x81   :  { %371 = vmatprep.mubr.bf16.mxu0 %v5170_v1  ;;  %444 = vmatprep.mubr.bf16.mxu1 %v5170_v1 }
  0x83   :  { %670 = vmatpush1.bf16.msra.mxu0 %v3991_v43  ;;  %711 = vmatpush1.bf16.msra.mxu1 %v3993_v44 }
  0x84   :  { %671 = vmatprep.subr.bf16.mxu0 %v3997_v47  ;;  %712 = vmatprep.subr.bf16.mxu1 %v4001_v48 }
  0x86   :  { %372 = vmatmul.mubr.bf16.gmra.mrb[4].mxu0 %v112_v49  ;;  %445 = vmatmul.mubr.bf16.gmra.mrb[4].mxu1 %v112_v49 }
  0x87   :  { %672 = vmatpush1.bf16.msra.mxu0 %v4005_v50  ;;  %713 = vmatpush1.bf16.msra.mxu1 %v4007_v51 }
  0x88   :  { %673 = vmatprep.subr.bf16.mxu0 %v4011_v52  ;;  %714 = vmatprep.subr.bf16.mxu1 %v4015_v53 }
  0x89   :  { %381 = vmatprep.mubr.bf16.mxu0 %v5170_v1  ;;  %454 = vmatprep.mubr.bf16.mxu1 %v5170_v1 }
  0x8b   :  { %674 = vmatpush1.bf16.msra.mxu0 %v4017_v54  ;;  %715 = vmatpush1.bf16.msra.mxu1 %v4019_v55 }
  0x8c   :  { %675 = vmatprep.subr.bf16.mxu0 %v4025_v58  ;;  %716 = vmatprep.subr.bf16.mxu1 %v4027_v59 }
  0x8e   :  { %382 = vmatmul.mubr.bf16.gmra.mrb[8].mxu0 %v113_v62  ;;  %455 = vmatmul.mubr.bf16.gmra.mrb[8].mxu1 %v113_v62 }
  0x8f   :  { %676 = vmatpush1.bf16.msra.mxu0 %v4031_v60  ;;  %717 = vmatpush1.bf16.msra.mxu1 %v4033_v61 }
  0x90   :  { %677 = vmatprep.subr.bf16.mxu0 %v4035_v63  ;;  %718 = vmatprep.subr.bf16.mxu1 %v4037_v0 }
  0x91   :  { %391 = vmatprep.mubr.bf16.mxu0 %v5170_v1  ;;  %464 = vmatprep.mubr.bf16.mxu1 %v5170_v1 }
  0x93   :  { %678 = vmatpush1.bf16.msra.mxu0 %v4043_v2  ;;  %719 = vmatpush1.bf16.msra.mxu1 %v4045_v3 }
  0x94   :  { %679 = vmatprep.subr.bf16.mxu0 %v4047_v6  ;;  %720 = vmatprep.subr.bf16.mxu1 %v4049_v7 }
  0x96   :  { %392 = vmatmul.mubr.bf16.gmra.mrb[12].mxu0 %v114_v10  ;;  %465 = vmatmul.mubr.bf16.gmra.mrb[12].mxu1 %v114_v10 }
  0x97   :  { %680 = vmatpush1.bf16.msra.mxu0 %v4057_v8  ;;  %721 = vmatpush1.bf16.msra.mxu1 %v4059_v9 }
  0x98   :  { %681 = vmatprep.subr.bf16.mxu0 %v4061_v11  ;;  %722 = vmatprep.subr.bf16.mxu1 %v4063_v12 }
  0x99   :  { %699 = vmatprep.mubr.bf16.mxu0 %v5170_v1  ;;  %740 = vmatprep.mubr.bf16.mxu1 %v5170_v1 }
  0x9b   :  { %682 = vmatpush1.bf16.msra.mxu0 %v4069_v13  ;;  %723 = vmatpush1.bf16.msra.mxu1 %v4071_v14 }
  0x9c   :  { %778 = vmatprep.subr.bf16.mxu0 %v3977_v36  ;;  %819 = vmatprep.subr.bf16.mxu1 %v3979_v37 }
  0x9e   :  { %700 = vmatmul.mubr.bf16.vlgmr.msra.gmra.mrb[16].mxu0 %v5170_v1  ;;  %741 = vmatmul.mubr.bf16.vlgmr.msra.gmra.mrb[16].mxu1 %v5170_v1 }
  0x9f   :  { %779 = vmatpush1.bf16.msra.mxu0 %v3981_v39  ;;  %820 = vmatpush1.bf16.msra.mxu1 %v3983_v40 }
  0xa0   :  { %780 = vmatprep.subr.bf16.mxu0 %v3987_v41  ;;  %821 = vmatprep.subr.bf16.mxu1 %v3989_v42 }
  0xa1   :  { %810 = vmatprep.mubr.bf16.mxu0 %v5170_v1  ;;  %851 = vmatprep.mubr.bf16.mxu1 %v5170_v1 }
  0xa3   :  { %781 = vmatpush1.bf16.msra.mxu0 %v3991_v43  ;;  %822 = vmatpush1.bf16.msra.mxu1 %v3993_v44 }
  0xa4   :  { %782 = vmatprep.subr.bf16.mxu0 %v3997_v47  ;;  %823 = vmatprep.subr.bf16.mxu1 %v4001_v48 }
  0xa7   :  { %783 = vmatpush1.bf16.msra.mxu0 %v4005_v50  ;;  %824 = vmatpush1.bf16.msra.mxu1 %v4007_v51 }
  0xa8   :  { %784 = vmatprep.subr.bf16.mxu0 %v4011_v52  ;;  %825 = vmatprep.subr.bf16.mxu1 %v4015_v53 }
  0xab   :  { %785 = vmatpush1.bf16.msra.mxu0 %v4017_v54  ;;  %826 = vmatpush1.bf16.msra.mxu1 %v4019_v55 }
  0xac   :  { %786 = vmatprep.subr.bf16.mxu0 %v4025_v58  ;;  %827 = vmatprep.subr.bf16.mxu1 %v4027_v59 }
  0xaf   :  { %787 = vmatpush1.bf16.msra.mxu0 %v4031_v60  ;;  %828 = vmatpush1.bf16.msra.mxu1 %v4033_v61 }
  0xb0   :  { %788 = vmatprep.subr.bf16.mxu0 %v4035_v63  ;;  %829 = vmatprep.subr.bf16.mxu1 %v4037_v0 }
  0xb3   :  { %789 = vmatpush1.bf16.msra.mxu0 %v4043_v2  ;;  %830 = vmatpush1.bf16.msra.mxu1 %v4045_v3 }
  0xb4   :  { %790 = vmatprep.subr.bf16.mxu0 %v4047_v6  ;;  %831 = vmatprep.subr.bf16.mxu1 %v4049_v7 }
  0xb7   :  { %791 = vmatpush1.bf16.msra.mxu0 %v4057_v8  ;;  %832 = vmatpush1.bf16.msra.mxu1 %v4059_v9 }
  0xb8   :  { %792 = vmatprep.subr.bf16.mxu0 %v4061_v11  ;;  %833 = vmatprep.subr.bf16.mxu1 %v4063_v12 }
  0xbb   :  { %793 = vmatpush1.bf16.msra.mxu0 %v4069_v13  ;;  %834 = vmatpush1.bf16.msra.mxu1 %v4071_v14 }
  0xbc   :  { %889 = vmatprep.subr.bf16.mxu0 %v3977_v36  ;;  %930 = vmatprep.subr.bf16.mxu1 %v3979_v37 }
 0x151   :  { %v4132_v23 = vpop.f32.mrb[0].mxu0  ;;  %v4134_v24 = vpop.f32.mrb[0].mxu1 }
 0x152   :  { %v365_v27 = vpop.f32.mrb[1].mxu0  ;;  %v438_v28 = vpop.f32.mrb[1].mxu1 }
 0x153   :  { %v367_v30 = vpop.f32.mrb[2].mxu0  ;;  %v440_v31 = vpop.f32.mrb[2].mxu1 }
 0x154   :  { %v4144_v32 = vadd.f32 %v367_v30, %v152_v26  ;;  %v369_v33 = vpop.f32.mrb[3].mxu0  ;;  %v4147_v34 = vadd.f32 %v440_v31, %v4130_v22  ;;  %v442_v35 = vpop.f32.mrb[3].mxu1 }
 0x155   :  { %v4149_v38 = vadd.f32 %v369_v33, %v156_v29  ;;  %v4152_v45 = vadd.f32 %v442_v35, %v4138_v25 }
 0x159   :  { %v373_v46 = vpop.f32.mrb[4].mxu0  ;;  %v446_v49 = vpop.f32.mrb[4].mxu1 }
 0x15a   :  { %v4154_v56 = vadd.f32 %v373_v46, %v152_v26  ;;  %v375_v57 = vpop.f32.mrb[5].mxu0  ;;  %v4157_v62 = vadd.f32 %v446_v49, %v4130_v22  ;;  %v448_v4 = vpop.f32.mrb[5].mxu1 }
 0x15b   :  { %v4159_v5 = vadd.f32 %v375_v57, %v156_v29  ;;  %v377_v10 = vpop.f32.mrb[6].mxu0  ;;  %v4162_v15 = vadd.f32 %v448_v4, %v4138_v25  ;;  %v450_v20 = vpop.f32.mrb[6].mxu1 }
 0x15c   :  { %v4164_v30 = vadd.f32 %v377_v10, %v152_v26  ;;  %v379_v31 = vpop.f32.mrb[7].mxu0  ;;  %v4167_v33 = vadd.f32 %v450_v20, %v4130_v22  ;;  %v452_v35 = vpop.f32.mrb[7].mxu1 }
 0x15d   :  { %5175 = vst [vmem:[#allocation15_spill] sm:$0xff] %v4162_v15  ;;  %v4169_v46 = vadd.f32 %v379_v31, %v156_v29  ;;  %v4172_v49 = vadd.f32 %v452_v35, %v4138_v25 }
 0x15e   :  { %5176 = vst [vmem:[#allocation16_spill] sm:$0xff] %v4164_v30  ;;  %5177 = vst [vmem:[#allocation17_spill] sm:$0xff] %v4167_v33 }
 0x15f   :  { %5178 = vst [vmem:[#allocation18_spill] sm:$0xff] %v4169_v46  ;;  %5179 = vst [vmem:[#allocation19_spill] sm:$0xff] %v4172_v49 }
 0x161   :  { %v383_v18 = vpop.f32.mrb[8].mxu0  ;;  %v456_v57 = vpop.f32.mrb[8].mxu1 }
 0x162   :  { %v4174_v21 = vadd.f32 %v383_v18, %v152_v26  ;;  %v385_v17 = vpop.f32.mrb[9].mxu0  ;;  %v4177_v4 = vadd.f32 %v456_v57, %v4130_v22  ;;  %v458_v10 = vpop.f32.mrb[9].mxu1 }
 0x163   :  { %v4179_v19 = vadd.f32 %v385_v17, %v156_v29  ;;  %v387_v1 = vpop.f32.mrb[10].mxu0  ;;  %v4182_v20 = vadd.f32 %v458_v10, %v4138_v25  ;;  %v460_v31 = vpop.f32.mrb[10].mxu1 }
 0x164   :  { %5180 = vst [vmem:[#allocation20_spill] sm:$0xff] %v4174_v21  ;;  %5181 = vst [vmem:[#allocation21_spill] sm:$0xff] %v4177_v4  ;;  %v4184_v16 = vadd.f32 %v387_v1, %v152_v26  ;;  %v389_v35 = vpop.f32.mrb[11].mxu0  ;;  %v4187_v49 = vadd.f32 %v460_v31, %v4130_v22  ;;  %v462_v18 = vpop.f32.mrb[11].mxu1 }
 0x165   :  { %5182 = vst [vmem:[#allocation22_spill] sm:$0xff] %v4179_v19  ;;  %5183 = vst [vmem:[#allocation23_spill] sm:$0xff] %v4182_v20  ;;  %v4189_v21 = vadd.f32 %v389_v35, %v156_v29  ;;  %v4192_v57 = vadd.f32 %v462_v18, %v4138_v25 }
 0x166   :  { %5184 = vst [vmem:[#allocation24_spill] sm:$0xff] %v4184_v16  ;;  %5185 = vst [vmem:[#allocation25_spill] sm:$0xff] %v4187_v49 }
 0x167   :  { %5186 = vst [vmem:[#allocation26_spill] sm:$0xff] %v4189_v21  ;;  %5187 = vst [vmem:[#allocation27_spill] sm:$0xff] %v4192_v57 }
 0x169   :  { %v393_v4 = vpop.f32.mrb[12].mxu0  ;;  %v466_v17 = vpop.f32.mrb[12].mxu1 }
 0x16a   :  { %v4194_v19 = vadd.f32 %v393_v4, %v152_v26  ;;  %v395_v46 = vpop.f32.mrb[13].mxu0  ;;  %v4197_v10 = vadd.f32 %v466_v17, %v4130_v22  ;;  %v468_v1 = vpop.f32.mrb[13].mxu1 }
 0x16b   :  { %v4199_v16 = vadd.f32 %v395_v46, %v156_v29  ;;  %v397_v20 = vpop.f32.mrb[14].mxu0  ;;  %v4202_v31 = vadd.f32 %v468_v1, %v4138_v25  ;;  %v470_v35 = vpop.f32.mrb[14].mxu1  ;;  %v364_v46 = vadd.f32 %v4132_v23, %v152_v26  ;;  %v366_v1 = vadd.f32 %v365_v27, %v156_v29 }
 0x16c   :  { %5188 = vst [vmem:[#allocation28_spill] sm:$0xff] %v4194_v19  ;;  %5189 = vst [vmem:[#allocation29_spill] sm:$0xff] %v4197_v10  ;;  %v4204_v21 = vadd.f32 %v397_v20, %v152_v26  ;;  %v399_v18 = vpop.f32.mrb[15].mxu0  ;;  %v4207_v57 = vadd.f32 %v470_v35, %v4130_v22  ;;  %v472_v4 = vpop.f32.mrb[15].mxu1 }
 0x16d   :  { %5190 = vst [vmem:[#allocation30_spill] sm:$0xff] %v4199_v16  ;;  %5191 = vst [vmem:[#allocation31_spill] sm:$0xff] %v4202_v31  ;;  %v4209_v19 = vadd.f32 %v399_v18, %v156_v29  ;;  %v4212_v17 = vadd.f32 %v472_v4, %v4138_v25  ;;  %v437_v16 = vadd.f32 %v4134_v24, %v4130_v22 }
 0x16e   :  { %5192 = vst [vmem:[#allocation32_spill] sm:$0xff] %v4204_v21  ;;  %5193 = vst [vmem:[#allocation33_spill] sm:$0xff] %v4207_v57  ;;  %v439_v31 = vadd.f32 %v438_v28, %v4138_v25 }
 0x16f   :  { %5194 = vst [vmem:[#allocation34_spill] sm:$0xff] %v4209_v19  ;;  %5195 = vst [vmem:[#allocation35_spill] sm:$0xff] %v4212_v17 }
 0x171   :  { %v701_v20 = vpop.f32.mrb[16].mxu0  ;;  %v742_v21 = vpop.f32.mrb[16].mxu1 }
 0x172   :  { %v749_v10 = vadd.f32 %v701_v20, %v364_v46  ;;  %v751_v49 = vadd.f32 %v742_v21, %v437_v16  ;;  %v703_v35 = vpop.f32.mrb[17].mxu0  ;;  %v744_v57 = vpop.f32.mrb[17].mxu1 }
 0x173   :  { %v750_v33 = vadd.f32 %v703_v35, %v366_v1  ;;  %v752_v18 = vadd.f32 %v744_v57, %v439_v31  ;;  %v705_v19 = vpop.f32.mrb[18].mxu0  ;;  %v746_v30 = vpop.f32.mrb[18].mxu1 }
 0x174   :  { %v3088_v4 = vmul.f32 -1.442695, %v749_v10  ;;  %v706_v17 = vpop.f32.mrb[19].mxu0  ;;  %v747_v15 = vpop.f32.mrb[19].mxu1  ;;  %v3090_v22 = vmul.f32 -1.442695, %v751_v49 }
 0x175   :  { %v3089_v23 = vmul.f32 -1.442695, %v750_v33  ;;  %v5196_v17 = vmov 0  }
 0x176   :  { %3404 = vpow2.f32 %v3088_v4 }
 0x177   :  { %3406 = vpow2.f32 %v3089_v23 }
 0x178   :  { %3408 = vtanh.f32 %v752_v18 }
 0x179   :  { %3410 = vpow2.f32 %v3090_v22 }
 0x180   :  { %v3405_v24 = vpop.eup %3404 }
 0x181   :  { %v762_v26 = vadd.f32 1.0, %v3405_v24  ;;  %v3407_v25 = vpop.eup %3406 }
 0x182   :  { %v763_v16 = vadd.f32 1.0, %v3407_v25  ;;  %v3409_v21 = vpop.eup %3408 }
 0x183   :  { %3412 = vrcp.f32 %v762_v26  ;;  %v3411_v27 = vpop.eup %3410 }
 0x184   :  { %3414 = vrcp.f32 %v763_v16  ;;  %v764_v30 = vadd.f32 1.0, %v3411_v27 }
 0x186   :  { %3416 = vrcp.f32 %v764_v30 }
 0x18d   :  { %v3413_v28 = vpop.eup %3412 }
 0x18e   :  { %v773_v19 = vmul.f32 %v3413_v28, %v3409_v21  ;;  %v3415_v29 = vpop.eup %3414 }
 0x18f   :  { %v772_v57 = vmul.f32 0.0, %v3415_v29 }
 0x190   :  { %v3417_v33 = vpop.eup %3416 }
 0x191   :  { %v4218_v15 = vadd.f32 %v773_v19, %v772_v57 }
 0x193   :  { %3418 = vtanh.f32 %v4218_v15 }
 0x19d   :  { %v3419_v49 = vpop.eup %3418 }
 0x19e   :  { %v4221_v10 = vmul.f32 %v3419_v49, %v3417_v33 }
 0x1a0   :  { %v777_v31 = vpack.c.bf16 %v4221_v10, %v4221_v10 }
 0x1a2   :  { %811 = vmatmul.mubr.bf16.vlgmr.msra.gmra.mrb[20].mxu0 %v777_v31  ;;  %852 = vmatmul.mubr.bf16.vlgmr.msra.gmra.mrb[20].mxu1 %v777_v31 }
 0x1a3   :  { %890 = vmatpush1.bf16.msra.mxu0 %v3981_v39  ;;  %931 = vmatpush1.bf16.msra.mxu1 %v3983_v40 }
 0x1a4   :  { %891 = vmatprep.subr.bf16.mxu0 %v3987_v41  ;;  %932 = vmatprep.subr.bf16.mxu1 %v3989_v42 }
 0x1a5   :  { %921 = vmatprep.mubr.bf16.mxu0 %v5196_v17  ;;  %962 = vmatprep.mubr.bf16.mxu1 %v5196_v17 }
 0x1a7   :  { %892 = vmatpush1.bf16.msra.mxu0 %v3991_v43  ;;  %933 = vmatpush1.bf16.msra.mxu1 %v3993_v44 }
 0x1a8   :  { %893 = vmatprep.subr.bf16.mxu0 %v3997_v47  ;;  %934 = vmatprep.subr.bf16.mxu1 %v4001_v48 }
 0x1ab   :  { %894 = vmatpush1.bf16.msra.mxu0 %v4005_v50  ;;  %935 = vmatpush1.bf16.msra.mxu1 %v4007_v51 }
 0x1ac   :  { %895 = vmatprep.subr.bf16.mxu0 %v4011_v52  ;;  %936 = vmatprep.subr.bf16.mxu1 %v4015_v53 }
 0x1af   :  { %896 = vmatpush1.bf16.msra.mxu0 %v4017_v54  ;;  %937 = vmatpush1.bf16.msra.mxu1 %v4019_v55 }
 0x1b0   :  { %897 = vmatprep.subr.bf16.mxu0 %v4025_v58  ;;  %938 = vmatprep.subr.bf16.mxu1 %v4027_v59 }
 0x1b3   :  { %898 = vmatpush1.bf16.msra.mxu0 %v4031_v60  ;;  %939 = vmatpush1.bf16.msra.mxu1 %v4033_v61 }
 0x1b4   :  { %899 = vmatprep.subr.bf16.mxu0 %v4035_v63  ;;  %940 = vmatprep.subr.bf16.mxu1 %v4037_v0 }
 0x1b7   :  { %900 = vmatpush1.bf16.msra.mxu0 %v4043_v2  ;;  %941 = vmatpush1.bf16.msra.mxu1 %v4045_v3 }
 0x1b8   :  { %901 = vmatprep.subr.bf16.mxu0 %v4047_v6  ;;  %942 = vmatprep.subr.bf16.mxu1 %v4049_v7 }
 0x1bb   :  { %902 = vmatpush1.bf16.msra.mxu0 %v4057_v8  ;;  %943 = vmatpush1.bf16.msra.mxu1 %v4059_v9 }
 0x1bc   :  { %903 = vmatprep.subr.bf16.mxu0 %v4061_v11  ;;  %944 = vmatprep.subr.bf16.mxu1 %v4063_v12 }
 0x1bf   :  { %904 = vmatpush1.bf16.msra.mxu0 %v4069_v13  ;;  %945 = vmatpush1.bf16.msra.mxu1 %v4071_v14 }
 0x1c0   :  { %1000 = vmatprep.subr.bf16.mxu0 %v3977_v36  ;;  %1041 = vmatprep.subr.bf16.mxu1 %v3979_v37 }
 0x275   :  { %v812_v46 = vpop.f32.mrb[20].mxu0  ;;  %v853_v1 = vpop.f32.mrb[20].mxu1 }
 0x276   :  { %v860_v20 = vadd.f32 %v812_v46, %v4144_v32  ;;  %v862_v35 = vadd.f32 %v853_v1, %v4147_v34  ;;  %v814_v18 = vpop.f32.mrb[21].mxu0  ;;  %v855_v4 = vpop.f32.mrb[21].mxu1 }
 0x277   :  { %v861_v23 = vadd.f32 %v814_v18, %v4149_v38  ;;  %v863_v22 = vadd.f32 %v855_v4, %v4152_v45  ;;  %v816_v24 = vpop.f32.mrb[22].mxu0  ;;  %v857_v26 = vpop.f32.mrb[22].mxu1 }
 0x278   :  { %v3091_v25 = vmul.f32 -1.442695, %v860_v20  ;;  %v817_v16 = vpop.f32.mrb[23].mxu0  ;;  %v858_v21 = vpop.f32.mrb[23].mxu1  ;;  %v3093_v28 = vmul.f32 -1.442695, %v862_v35 }
 0x279   :  { %v3092_v27 = vmul.f32 -1.442695, %v861_v23  ;;  %v5197_v16 = vld [vmem:[#allocation15_spill] sm:$0xff] }
 0x27a   :  { %3420 = vpow2.f32 %v3091_v25 }
 0x27b   :  { %3422 = vpow2.f32 %v3092_v27 }
 0x27c   :  { %3424 = vtanh.f32 %v863_v22 }
 0x27d   :  { %3426 = vpow2.f32 %v3093_v28 }
 0x284   :  { %v3421_v19 = vpop.eup %3420 }
 0x285   :  { %v873_v29 = vadd.f32 1.0, %v3421_v19  ;;  %v3423_v32 = vpop.eup %3422 }
 0x286   :  { %v874_v34 = vadd.f32 1.0, %v3423_v32  ;;  %v3425_v38 = vpop.eup %3424 }
 0x287   :  { %3428 = vrcp.f32 %v873_v29  ;;  %v3427_v30 = vpop.eup %3426 }
 0x288   :  { %3430 = vrcp.f32 %v874_v34  ;;  %v875_v49 = vadd.f32 1.0, %v3427_v30 }
 0x28a   :  { %3432 = vrcp.f32 %v875_v49 }
 0x291   :  { %v3429_v45 = vpop.eup %3428 }
 0x292   :  { %v884_v57 = vmul.f32 %v3429_v45, %v3425_v38  ;;  %v3431_v33 = vpop.eup %3430 }
 0x293   :  { %v883_v31 = vmul.f32 %v3431_v33, %v4218_v15 }
 0x294   :  { %v3433_v1 = vpop.eup %3432 }
 0x295   :  { %v4264_v46 = vadd.f32 %v884_v57, %v883_v31 }
 0x297   :  { %3434 = vtanh.f32 %v4264_v46 }
 0x2a1   :  { %v3435_v20 = vpop.eup %3434 }
 0x2a2   :  { %v4267_v35 = vmul.f32 %v3435_v20, %v3433_v1 }
 0x2a4   :  { %v888_v18 = vpack.c.bf16 %v4267_v35, %v4267_v35 }
 0x2a6   :  { %922 = vmatmul.mubr.bf16.vlgmr.msra.gmra.mrb[24].mxu0 %v888_v18  ;;  %963 = vmatmul.mubr.bf16.vlgmr.msra.gmra.mrb[24].mxu1 %v888_v18 }
 0x2a7   :  { %1001 = vmatpush1.bf16.msra.mxu0 %v3981_v39  ;;  %1042 = vmatpush1.bf16.msra.mxu1 %v3983_v40 }
 0x2a8   :  { %1002 = vmatprep.subr.bf16.mxu0 %v3987_v41  ;;  %1043 = vmatprep.subr.bf16.mxu1 %v3989_v42 }
 0x2a9   :  { %1032 = vmatprep.mubr.bf16.mxu0 %v5196_v17  ;;  %1073 = vmatprep.mubr.bf16.mxu1 %v5196_v17 }
 0x2ab   :  { %1003 = vmatpush1.bf16.msra.mxu0 %v3991_v43  ;;  %1044 = vmatpush1.bf16.msra.mxu1 %v3993_v44 }
 0x2ac   :  { %1004 = vmatprep.subr.bf16.mxu0 %v3997_v47  ;;  %1045 = vmatprep.subr.bf16.mxu1 %v4001_v48 }
 0x2af   :  { %1005 = vmatpush1.bf16.msra.mxu0 %v4005_v50  ;;  %1046 = vmatpush1.bf16.msra.mxu1 %v4007_v51 }
 0x2b0   :  { %1006 = vmatprep.subr.bf16.mxu0 %v4011_v52  ;;  %1047 = vmatprep.subr.bf16.mxu1 %v4015_v53 }
 0x2b3   :  { %1007 = vmatpush1.bf16.msra.mxu0 %v4017_v54  ;;  %1048 = vmatpush1.bf16.msra.mxu1 %v4019_v55 }
 0x2b4   :  { %1008 = vmatprep.subr.bf16.mxu0 %v4025_v58  ;;  %1049 = vmatprep.subr.bf16.mxu1 %v4027_v59 }
 0x2b7   :  { %1009 = vmatpush1.bf16.msra.mxu0 %v4031_v60  ;;  %1050 = vmatpush1.bf16.msra.mxu1 %v4033_v61 }
 0x2b8   :  { %1010 = vmatprep.subr.bf16.mxu0 %v4035_v63  ;;  %1051 = vmatprep.subr.bf16.mxu1 %v4037_v0 }
 0x2bb   :  { %1011 = vmatpush1.bf16.msra.mxu0 %v4043_v2  ;;  %1052 = vmatpush1.bf16.msra.mxu1 %v4045_v3 }
 0x2bc   :  { %1012 = vmatprep.subr.bf16.mxu0 %v4047_v6  ;;  %1053 = vmatprep.subr.bf16.mxu1 %v4049_v7 }
 0x2bf   :  { %1013 = vmatpush1.bf16.msra.mxu0 %v4057_v8  ;;  %1054 = vmatpush1.bf16.msra.mxu1 %v4059_v9 }
 0x2c0   :  { %1014 = vmatprep.subr.bf16.mxu0 %v4061_v11  ;;  %1055 = vmatprep.subr.bf16.mxu1 %v4063_v12 }
 0x2c3   :  { %1015 = vmatpush1.bf16.msra.mxu0 %v4069_v13  ;;  %1056 = vmatpush1.bf16.msra.mxu1 %v4071_v14 }
 0x2c4   :  { %1111 = vmatprep.subr.bf16.mxu0 %v3977_v36  ;;  %1152 = vmatprep.subr.bf16.mxu1 %v3979_v37 }
 0x379   :  { %v923_v15 = vpop.f32.mrb[24].mxu0  ;;  %v964_v4 = vpop.f32.mrb[24].mxu1 }
 0x37a   :  { %v971_v23 = vadd.f32 %v923_v15, %v4154_v56  ;;  %v973_v22 = vadd.f32 %v964_v4, %v4157_v62  ;;  %v925_v24 = vpop.f32.mrb[25].mxu0  ;;  %v966_v26 = vpop.f32.mrb[25].mxu1 }
 0x37b   :  { %v972_v25 = vadd.f32 %v925_v24, %v4159_v5  ;;  %v974_v21 = vadd.f32 %v966_v26, %v5197_v16  ;;  %v927_v27 = vpop.f32.mrb[26].mxu0  ;;  %v968_v28 = vpop.f32.mrb[26].mxu1 }
 0x37c   :  { %v3094_v19 = vmul.f32 -1.442695, %v971_v23  ;;  %v928_v29 = vpop.f32.mrb[27].mxu0  ;;  %v969_v32 = vpop.f32.mrb[27].mxu1  ;;  %v3096_v37 = vmul.f32 -1.442695, %v973_v22 }
 0x37d   :  { %v3095_v36 = vmul.f32 -1.442695, %v972_v25 }
 0x37e   :  { %3436 = vpow2.f32 %v3094_v19 }
 0x37f   :  { %3438 = vpow2.f32 %v3095_v36 }
 0x380   :  { %3440 = vtanh.f32 %v974_v21 }
 0x381   :  { %3442 = vpow2.f32 %v3096_v37 }
 0x388   :  { %v3437_v34 = vpop.eup %3436 }
 0x389   :  { %v984_v38 = vadd.f32 1.0, %v3437_v34  ;;  %v3439_v56 = vpop.eup %3438 }
 0x38a   :  { %v985_v62 = vadd.f32 1.0, %v3439_v56  ;;  %v3441_v5 = vpop.eup %3440 }
 0x38b   :  { %3444 = vrcp.f32 %v984_v38  ;;  %v3443_v30 = vpop.eup %3442 }
 0x38c   :  { %3446 = vrcp.f32 %v985_v62  ;;  %v986_v49 = vadd.f32 1.0, %v3443_v30 }
 0x38e   :  { %3448 = vrcp.f32 %v986_v49  ;;  %v4370_v49 = vld [vmem:[#allocation7 + $0x8] ss:$16 sps:$4 sm:$0xff]  }
 0x395   :  { %v3445_v45 = vpop.eup %3444 }
 0x396   :  { %v995_v57 = vmul.f32 %v3445_v45, %v3441_v5  ;;  %v3447_v33 = vpop.eup %3446 }
 0x397   :  { %v994_v31 = vmul.f32 %v3447_v33, %v4264_v46  ;;  %v4367_v33 = vld [vmem:[#allocation7] ss:$16 sps:$4 sm:$0xff]  }
 0x398   :  { %v3449_v20 = vpop.eup %3448 }
 0x399   :  { %v4310_v1 = vadd.f32 %v995_v57, %v994_v31  ;;  %v4373_v31 = vld [vmem:[#allocation7 + $0x24] ss:$16 sps:$4 sm:$0xff]  }
 0x39b   :  { %3450 = vtanh.f32 %v4310_v1 }
 0x3a5   :  { %v3451_v18 = vpop.eup %3450 }
 0x3a6   :  { %v4313_v15 = vmul.f32 %v3451_v18, %v3449_v20  ;;  %v4381_v20 = vld [vmem:[#allocation7 + $0x20] ss:$16 sps:$4 sm:$0xff]   ;;  %v4384_v18 = vld [vmem:[#allocation7 + $0x28] ss:$16 sps:$4 sm:$0xff]  }
 0x3a8   :  { %v999_v4 = vpack.c.bf16 %v4313_v15, %v4313_v15 }
 0x3aa   :  { %1033 = vmatmul.mubr.bf16.vlgmr.msra.gmra.mrb[28].mxu0 %v999_v4  ;;  %1074 = vmatmul.mubr.bf16.vlgmr.msra.gmra.mrb[28].mxu1 %v999_v4  ;;  %v4387_v4 = vld [vmem:[#allocation7 + $0x44] ss:$16 sps:$4 sm:$0xff]  }
 0x3ab   :  { %1112 = vmatpush1.bf16.msra.mxu0 %v3981_v39  ;;  %1153 = vmatpush1.bf16.msra.mxu1 %v3983_v40  ;;  %v4349_v39 = vld [vmem:[#allocation7 + $0x4] ss:$16 sps:$4 sm:$0xff]   ;;  %v4352_v40 = vld [vmem:[#allocation7 + $0xc] ss:$16 sps:$4 sm:$0xff]  }
 0x3ac   :  { %1113 = vmatprep.subr.bf16.mxu0 %v3987_v41  ;;  %1154 = vmatprep.subr.bf16.mxu1 %v3989_v42 }
 0x3ad   :  { %1143 = vmatprep.mubr.bf16.mxu0 %v5196_v17  ;;  %1184 = vmatprep.mubr.bf16.mxu1 %v5196_v17 }
 0x3af   :  { %1114 = vmatpush1.bf16.msra.mxu0 %v3991_v43  ;;  %1155 = vmatpush1.bf16.msra.mxu1 %v3993_v44  ;;  %v5198_v43 = vld [vmem:[#allocation16_spill] sm:$0xff] }
 0x3b0   :  { %1115 = vmatprep.subr.bf16.mxu0 %v3997_v47  ;;  %1156 = vmatprep.subr.bf16.mxu1 %v4001_v48  ;;  %v5199_v47 = vld [vmem:[#allocation17_spill] sm:$0xff] }
 0x3b3   :  { %1116 = vmatpush1.bf16.msra.mxu0 %v4005_v50  ;;  %1157 = vmatpush1.bf16.msra.mxu1 %v4007_v51 }
 0x3b4   :  { %1117 = vmatprep.subr.bf16.mxu0 %v4011_v52  ;;  %1158 = vmatprep.subr.bf16.mxu1 %v4015_v53  ;;  %v5200_v52 = vld [vmem:[#allocation18_spill] sm:$0xff] }
 0x3b7   :  { %1118 = vmatpush1.bf16.msra.mxu0 %v4017_v54  ;;  %1159 = vmatpush1.bf16.msra.mxu1 %v4019_v55  ;;  %v5201_v54 = vld [vmem:[#allocation19_spill] sm:$0xff] }
 0x3b8   :  { %1119 = vmatprep.subr.bf16.mxu0 %v4025_v58  ;;  %1160 = vmatprep.subr.bf16.mxu1 %v4027_v59 }
 0x3bb   :  { %1120 = vmatpush1.bf16.msra.mxu0 %v4031_v60  ;;  %1161 = vmatpush1.bf16.msra.mxu1 %v4033_v61 }
 0x3bc   :  { %1121 = vmatprep.subr.bf16.mxu0 %v4035_v63  ;;  %1162 = vmatprep.subr.bf16.mxu1 %v4037_v0 }
 0x3bf   :  { %1122 = vmatpush1.bf16.msra.mxu0 %v4043_v2  ;;  %1163 = vmatpush1.bf16.msra.mxu1 %v4045_v3 }
 0x3c0   :  { %1123 = vmatprep.subr.bf16.mxu0 %v4047_v6  ;;  %1164 = vmatprep.subr.bf16.mxu1 %v4049_v7 }
 0x3c3   :  { %1124 = vmatpush1.bf16.msra.mxu0 %v4057_v8  ;;  %1165 = vmatpush1.bf16.msra.mxu1 %v4059_v9 }
 0x3c4   :  { %1125 = vmatprep.subr.bf16.mxu0 %v4061_v11  ;;  %1166 = vmatprep.subr.bf16.mxu1 %v4063_v12 }
 0x3c7   :  { %1126 = vmatpush1.bf16.msra.mxu0 %v4069_v13  ;;  %1167 = vmatpush1.bf16.msra.mxu1 %v4071_v14 }
 0x3c8   :  { %1222 = vmatprep.subr.bf16.mxu0 %v4349_v39  ;;  %1263 = vmatprep.subr.bf16.mxu1 %v4352_v40 }
 0x47d   :  { %v1034_v41 = vpop.f32.mrb[28].mxu0  ;;  %v1075_v42 = vpop.f32.mrb[28].mxu1 }
 0x47e   :  { %v1082_v44 = vadd.f32 %v1034_v41, %v5198_v43  ;;  %v1084_v48 = vadd.f32 %v1075_v42, %v5199_v47  ;;  %v1036_v50 = vpop.f32.mrb[29].mxu0  ;;  %v1077_v51 = vpop.f32.mrb[29].mxu1  ;;  %v4390_v41 = vld [vmem:[#allocation7 + $0x4c] ss:$16 sps:$4 sm:$0xff]   ;;  %v4393_v42 = vld [vmem:[#allocation7 + $0x40] ss:$16 sps:$4 sm:$0xff]  }
 0x47f   :  { %v1083_v53 = vadd.f32 %v1036_v50, %v5200_v52  ;;  %v1085_v55 = vadd.f32 %v1077_v51, %v5201_v54  ;;  %v1038_v46 = vpop.f32.mrb[30].mxu0  ;;  %v1079_v23 = vpop.f32.mrb[30].mxu1  ;;  %v4396_v43 = vld [vmem:[#allocation7 + $0x48] ss:$16 sps:$4 sm:$0xff]   ;;  %v4402_v47 = vld [vmem:[#allocation7 + $0x6c] ss:$16 sps:$4 sm:$0xff]  }
 0x480   :  { %v3097_v22 = vmul.f32 -1.442695, %v1082_v44  ;;  %v1039_v24 = vpop.f32.mrb[31].mxu0  ;;  %v1080_v26 = vpop.f32.mrb[31].mxu1  ;;  %v3099_v16 = vmul.f32 -1.442695, %v1084_v48 }
 0x481   :  { %v3098_v25 = vmul.f32 -1.442695, %v1083_v53  ;;  %v4399_v44 = vld [vmem:[#allocation7 + $0x64] ss:$16 sps:$4 sm:$0xff]   ;;  %v4405_v48 = vld [vmem:[#allocation7 + $0x60] ss:$16 sps:$4 sm:$0xff]  }
 0x482   :  { %3452 = vpow2.f32 %v3097_v22  ;;  %v4408_v50 = vld [vmem:[#allocation7 + $0x68] ss:$16 sps:$4 sm:$0xff]  }
 0x483   :  { %3454 = vpow2.f32 %v3098_v25 }
 0x484   :  { %3456 = vtanh.f32 %v1085_v55 }
 0x485   :  { %3458 = vpow2.f32 %v3099_v16 }
 0x48c   :  { %v3453_v21 = vpop.eup %3452 }
 0x48d   :  { %v1095_v27 = vadd.f32 1.0, %v3453_v21  ;;  %v3455_v28 = vpop.eup %3454 }
 0x48e   :  { %v1096_v19 = vadd.f32 1.0, %v3455_v28  ;;  %v3457_v29 = vpop.eup %3456 }
 0x48f   :  { %3460 = vrcp.f32 %v1095_v27  ;;  %v3459_v32 = vpop.eup %3458 }
 0x490   :  { %3462 = vrcp.f32 %v1096_v19  ;;  %v1097_v38 = vadd.f32 1.0, %v3459_v32 }
 0x492   :  { %3464 = vrcp.f32 %v1097_v38  ;;  %v4463_v38 = vld [vmem:[#allocation7 + $0x80] ss:$16 sps:$4 sm:$0xff]  }
 0x499   :  { %v3461_v36 = vpop.eup %3460 }
 0x49a   :  { %v1106_v37 = vmul.f32 %v3461_v36, %v3457_v29  ;;  %v3463_v34 = vpop.eup %3462 }
 0x49b   :  { %v1105_v56 = vmul.f32 %v3463_v34, %v4310_v1  ;;  %v4376_v1 = vld [vmem:[#allocation7 + $0x2c] ss:$16 sps:$4 sm:$0xff]  }
 0x49c   :  { %v3465_v5 = vpop.eup %3464  ;;  %v4460_v34 = vld [vmem:[#allocation7 + $0x8c] ss:$16 sps:$4 sm:$0xff]  }
 0x49d   :  { %v4360_v62 = vadd.f32 %v1106_v37, %v1105_v56  ;;  %v4457_v37 = vld [vmem:[#allocation7 + $0x84] ss:$16 sps:$4 sm:$0xff]   ;;  %v4466_v56 = vld [vmem:[#allocation7 + $0x88] ss:$16 sps:$4 sm:$0xff]  }
 0x49f   :  { %3466 = vtanh.f32 %v4360_v62 }
 0x4a9   :  { %v3467_v30 = vpop.eup %3466 }
 0x4aa   :  { %v4363_v45 = vmul.f32 %v3467_v30, %v3465_v5  ;;  %v4472_v5 = vld [vmem:[#allocation7 + $0xac] ss:$16 sps:$4 sm:$0xff]   ;;  %v4475_v30 = vld [vmem:[#allocation7 + $0xa0] ss:$16 sps:$4 sm:$0xff]  }
 0x4ac   :  { %v1110_v57 = vpack.c.bf16 %v4363_v45, %v4363_v45 }
 0x4ae   :  { %1144 = vmatmul.mubr.bf16.vlgmr.msra.gmra.mrb[32].mxu0 %v1110_v57  ;;  %1185 = vmatmul.mubr.bf16.vlgmr.msra.gmra.mrb[32].mxu1 %v1110_v57  ;;  %v4478_v57 = vld [vmem:[#allocation7 + $0xa8] ss:$16 sps:$4 sm:$0xff]  }
 0x4af   :  { %1223 = vmatpush1.bf16.msra.mxu0 %v4367_v33  ;;  %1264 = vmatpush1.bf16.msra.mxu1 %v4370_v49 }
 0x4b0   :  { %1224 = vmatprep.subr.bf16.mxu0 %v4373_v31  ;;  %1265 = vmatprep.subr.bf16.mxu1 %v4376_v1 }
 0x4b1   :  { %1254 = vmatprep.mubr.bf16.mxu0 %v5196_v17  ;;  %1295 = vmatprep.mubr.bf16.mxu1 %v5196_v17 }
 0x4b3   :  { %1225 = vmatpush1.bf16.msra.mxu0 %v4381_v20  ;;  %1266 = vmatpush1.bf16.msra.mxu1 %v4384_v18 }
 0x4b4   :  { %1226 = vmatprep.subr.bf16.mxu0 %v4387_v4  ;;  %1267 = vmatprep.subr.bf16.mxu1 %v4390_v41 }
 0x4b7   :  { %1227 = vmatpush1.bf16.msra.mxu0 %v4393_v42  ;;  %1268 = vmatpush1.bf16.msra.mxu1 %v4396_v43 }
 0x4b8   :  { %1228 = vmatprep.subr.bf16.mxu0 %v4399_v44  ;;  %1269 = vmatprep.subr.bf16.mxu1 %v4402_v47 }
 0x4bb   :  { %1229 = vmatpush1.bf16.msra.mxu0 %v4405_v48  ;;  %1270 = vmatpush1.bf16.msra.mxu1 %v4408_v50 }
 0x4bc   :  { %1230 = vmatprep.subr.bf16.mxu0 %v4025_v58  ;;  %1271 = vmatprep.subr.bf16.mxu1 %v4027_v59 }
 0x4bf   :  { %1231 = vmatpush1.bf16.msra.mxu0 %v4031_v60  ;;  %1272 = vmatpush1.bf16.msra.mxu1 %v4033_v61  ;;  %v5202_v60 = vld [vmem:[#allocation20_spill] sm:$0xff] }
 0x4c0   :  { %1232 = vmatprep.subr.bf16.mxu0 %v4035_v63  ;;  %1273 = vmatprep.subr.bf16.mxu1 %v4037_v0  ;;  %v5203_v63 = vld [vmem:[#allocation21_spill] sm:$0xff] }
 0x4c3   :  { %1233 = vmatpush1.bf16.msra.mxu0 %v4043_v2  ;;  %1274 = vmatpush1.bf16.msra.mxu1 %v4045_v3 }
 0x4c4   :  { %1234 = vmatprep.subr.bf16.mxu0 %v4047_v6  ;;  %1275 = vmatprep.subr.bf16.mxu1 %v4049_v7  ;;  %v5204_v6 = vld [vmem:[#allocation22_spill] sm:$0xff] }
 0x4c7   :  { %1235 = vmatpush1.bf16.msra.mxu0 %v4057_v8  ;;  %1276 = vmatpush1.bf16.msra.mxu1 %v4059_v9  ;;  %v5205_v8 = vld [vmem:[#allocation23_spill] sm:$0xff] }
 0x4c8   :  { %1236 = vmatprep.subr.bf16.mxu0 %v4061_v11  ;;  %1277 = vmatprep.subr.bf16.mxu1 %v4063_v12 }
 0x4cb   :  { %1237 = vmatpush1.bf16.msra.mxu0 %v4069_v13  ;;  %1278 = vmatpush1.bf16.msra.mxu1 %v4071_v14 }
 0x4cc   :  { %1333 = vmatprep.subr.bf16.mxu0 %v4349_v39  ;;  %1374 = vmatprep.subr.bf16.mxu1 %v4352_v40 }
 0x581   :  { %v1145_v58 = vpop.f32.mrb[32].mxu0  ;;  %v1186_v59 = vpop.f32.mrb[32].mxu1 }
 0x582   :  { %v1193_v61 = vadd.f32 %v1145_v58, %v5202_v60  ;;  %v1195_v0 = vadd.f32 %v1186_v59, %v5203_v63  ;;  %v1147_v2 = vpop.f32.mrb[33].mxu0  ;;  %v1188_v3 = vpop.f32.mrb[33].mxu1  ;;  %v4481_v58 = vld [vmem:[#allocation7 + $0xc4] ss:$16 sps:$4 sm:$0xff]   ;;  %v4484_v59 = vld [vmem:[#allocation7 + $0xcc] ss:$16 sps:$4 sm:$0xff]  }
 0x583   :  { %v1194_v7 = vadd.f32 %v1147_v2, %v5204_v6  ;;  %v1196_v9 = vadd.f32 %v1188_v3, %v5205_v8  ;;  %v1149_v11 = vpop.f32.mrb[34].mxu0  ;;  %v1190_v12 = vpop.f32.mrb[34].mxu1  ;;  %v4487_v60 = vld [vmem:[#allocation7 + $0xc0] ss:$16 sps:$4 sm:$0xff]   ;;  %v4493_v63 = vld [vmem:[#allocation7 + $0xe4] ss:$16 sps:$4 sm:$0xff]  }
 0x584   :  { %v3100_v13 = vmul.f32 -1.442695, %v1193_v61  ;;  %v1150_v14 = vpop.f32.mrb[35].mxu0  ;;  %v1191_v51 = vpop.f32.mrb[35].mxu1  ;;  %v3102_v53 = vmul.f32 -1.442695, %v1195_v0 }
 0x585   :  { %v3101_v52 = vmul.f32 -1.442695, %v1194_v7  ;;  %v4490_v61 = vld [vmem:[#allocation7 + $0xc8] ss:$16 sps:$4 sm:$0xff]   ;;  %v4496_v0 = vld [vmem:[#allocation7 + $0xec] ss:$16 sps:$4 sm:$0xff]  }
 0x586   :  { %3468 = vpow2.f32 %v3100_v13  ;;  %v4499_v2 = vld [vmem:[#allocation7 + $0xe0] ss:$16 sps:$4 sm:$0xff]   ;;  %v4502_v3 = vld [vmem:[#allocation7 + $0xe8] ss:$16 sps:$4 sm:$0xff]  }
 0x587   :  { %3470 = vpow2.f32 %v3101_v52  ;;  %v5206_v8 = vld [vmem:[#allocation24_spill] sm:$0xff]  ;;  %v5207_v11 = vld [vmem:[#allocation25_spill] sm:$0xff]  ;;  %v5208_v51 = vld [vmem:[#allocation26_spill] sm:$0xff] }
 0x588   :  { %3472 = vtanh.f32 %v1196_v9 }
 0x589   :  { %3474 = vpow2.f32 %v3102_v53  ;;  %v5209_v53 = vld [vmem:[#allocation27_spill] sm:$0xff] }
 0x590   :  { %v3469_v54 = vpop.eup %3468 }
 0x591   :  { %v1206_v55 = vadd.f32 1.0, %v3469_v54  ;;  %v3471_v46 = vpop.eup %3470 }
 0x592   :  { %v1207_v23 = vadd.f32 1.0, %v3471_v46  ;;  %v3473_v22 = vpop.eup %3472 }
 0x593   :  { %3476 = vrcp.f32 %v1206_v55  ;;  %v3475_v24 = vpop.eup %3474 }
 0x594   :  { %3478 = vrcp.f32 %v1207_v23  ;;  %v1208_v21 = vadd.f32 1.0, %v3475_v24 }
 0x596   :  { %3480 = vrcp.f32 %v1208_v21 }
 0x59d   :  { %v3477_v26 = vpop.eup %3476 }
 0x59e   :  { %v1217_v25 = vmul.f32 %v3477_v26, %v3473_v22  ;;  %v3479_v16 = vpop.eup %3478 }
 0x59f   :  { %v1216_v27 = vmul.f32 %v3479_v16, %v4360_v62  ;;  %v4469_v62 = vld [vmem:[#allocation7 + $0xa4] ss:$16 sps:$4 sm:$0xff]  }
 0x5a0   :  { %v3481_v19 = vpop.eup %3480 }
 0x5a1   :  { %v4434_v28 = vadd.f32 %v1217_v25, %v1216_v27 }
 0x5a3   :  { %3482 = vtanh.f32 %v4434_v28 }
 0x5ad   :  { %v3483_v29 = vpop.eup %3482 }
 0x5ae   :  { %v4437_v32 = vmul.f32 %v3483_v29, %v3481_v19 }
 0x5b0   :  { %v1221_v36 = vpack.c.bf16 %v4437_v32, %v4437_v32 }
 0x5b2   :  { %1255 = vmatmul.mubr.bf16.vlgmr.msra.gmra.mrb[36].mxu0 %v1221_v36  ;;  %1296 = vmatmul.mubr.bf16.vlgmr.msra.gmra.mrb[36].mxu1 %v1221_v36 }
 0x5b3   :  { %1334 = vmatpush1.bf16.msra.mxu0 %v4367_v33  ;;  %1375 = vmatpush1.bf16.msra.mxu1 %v4370_v49 }
 0x5b4   :  { %1335 = vmatprep.subr.bf16.mxu0 %v4373_v31  ;;  %1376 = vmatprep.subr.bf16.mxu1 %v4376_v1 }
 0x5b5   :  { %1365 = vmatprep.mubr.bf16.mxu0 %v5196_v17  ;;  %1406 = vmatprep.mubr.bf16.mxu1 %v5196_v17 }
 0x5b7   :  { %1336 = vmatpush1.bf16.msra.mxu0 %v4381_v20  ;;  %1377 = vmatpush1.bf16.msra.mxu1 %v4384_v18 }
 0x5b8   :  { %1337 = vmatprep.subr.bf16.mxu0 %v4387_v4  ;;  %1378 = vmatprep.subr.bf16.mxu1 %v4390_v41 }
 0x5bb   :  { %1338 = vmatpush1.bf16.msra.mxu0 %v4393_v42  ;;  %1379 = vmatpush1.bf16.msra.mxu1 %v4396_v43 }
 0x5bc   :  { %1339 = vmatprep.subr.bf16.mxu0 %v4399_v44  ;;  %1380 = vmatprep.subr.bf16.mxu1 %v4402_v47 }
 0x5bf   :  { %1340 = vmatpush1.bf16.msra.mxu0 %v4405_v48  ;;  %1381 = vmatpush1.bf16.msra.mxu1 %v4408_v50 }
 0x5c0   :  { %1341 = vmatprep.subr.bf16.mxu0 %v4457_v37  ;;  %1382 = vmatprep.subr.bf16.mxu1 %v4460_v34 }
 0x5c3   :  { %1342 = vmatpush1.bf16.msra.mxu0 %v4463_v38  ;;  %1383 = vmatpush1.bf16.msra.mxu1 %v4466_v56 }
 0x5c4   :  { %1343 = vmatprep.subr.bf16.mxu0 %v4469_v62  ;;  %1384 = vmatprep.subr.bf16.mxu1 %v4472_v5 }
 0x5c7   :  { %1344 = vmatpush1.bf16.msra.mxu0 %v4475_v30  ;;  %1385 = vmatpush1.bf16.msra.mxu1 %v4478_v57 }
 0x5c8   :  { %1345 = vmatprep.subr.bf16.mxu0 %v4481_v58  ;;  %1386 = vmatprep.subr.bf16.mxu1 %v4484_v59 }
 0x5cb   :  { %1346 = vmatpush1.bf16.msra.mxu0 %v4487_v60  ;;  %1387 = vmatpush1.bf16.msra.mxu1 %v4490_v61 }
 0x5cc   :  { %1347 = vmatprep.subr.bf16.mxu0 %v4493_v63  ;;  %1388 = vmatprep.subr.bf16.mxu1 %v4496_v0 }
 0x5cf   :  { %1348 = vmatpush1.bf16.msra.mxu0 %v4499_v2  ;;  %1389 = vmatpush1.bf16.msra.mxu1 %v4502_v3 }
 0x5d0   :  { %1444 = vmatprep.subr.bf16.mxu0 %v4349_v39  ;;  %1485 = vmatprep.subr.bf16.mxu1 %v4352_v40 }
 0x685   :  { %v1256_v6 = vpop.f32.mrb[36].mxu0  ;;  %v1297_v7 = vpop.f32.mrb[36].mxu1 }
 0x686   :  { %v1304_v9 = vadd.f32 %v1256_v6, %v5206_v8  ;;  %v1306_v12 = vadd.f32 %v1297_v7, %v5207_v11  ;;  %v1258_v13 = vpop.f32.mrb[37].mxu0  ;;  %v1299_v14 = vpop.f32.mrb[37].mxu1 }
 0x687   :  { %v1305_v52 = vadd.f32 %v1258_v13, %v5208_v51  ;;  %v1307_v54 = vadd.f32 %v1299_v14, %v5209_v53  ;;  %v1260_v55 = vpop.f32.mrb[38].mxu0  ;;  %v1301_v46 = vpop.f32.mrb[38].mxu1 }
 0x688   :  { %v3103_v23 = vmul.f32 -1.442695, %v1304_v9  ;;  %v1261_v22 = vpop.f32.mrb[39].mxu0  ;;  %v1302_v24 = vpop.f32.mrb[39].mxu1  ;;  %v3105_v40 = vmul.f32 -1.442695, %v1306_v12 }
 0x689   :  { %v3104_v39 = vmul.f32 -1.442695, %v1305_v52  ;;  %v3308_v46 = vld [vmem:[#allocation8] ss:$16 sps:$4 sm:$0xff]   ;;  %v3316_v24 = vld [vmem:[#allocation8 + $0x24] ss:$16 sps:$4 sm:$0xff]  }
 0x68a   :  { %3484 = vpow2.f32 %v3103_v23  ;;  %v3311_v23 = vld [vmem:[#allocation8 + $0x8] ss:$16 sps:$4 sm:$0xff]  }
 0x68b   :  { %3486 = vpow2.f32 %v3104_v39  ;;  %v3319_v39 = vld [vmem:[#allocation8 + $0x2c] ss:$16 sps:$4 sm:$0xff]  }
 0x68c   :  { %3488 = vtanh.f32 %v1307_v54 }
 0x68d   :  { %3490 = vpow2.f32 %v3105_v40  ;;  %v3314_v40 = vld [vmem:[#allocation8 + $0x20] ss:$16 sps:$4 sm:$0xff]  }
 0x694   :  { %v3485_v26 = vpop.eup %3484 }
 0x695   :  { %v1317_v25 = vadd.f32 1.0, %v3485_v26  ;;  %v3487_v16 = vpop.eup %3486  ;;  %v3317_v26 = vld [vmem:[#allocation8 + $0x28] ss:$16 sps:$4 sm:$0xff]  }
 0x696   :  { %v1318_v21 = vadd.f32 1.0, %v3487_v16  ;;  %v3489_v27 = vpop.eup %3488  ;;  %v3325_v16 = vld [vmem:[#allocation8 + $0x4c] ss:$16 sps:$4 sm:$0xff]  }
 0x697   :  { %3492 = vrcp.f32 %v1317_v25  ;;  %v3491_v19 = vpop.eup %3490  ;;  %v3322_v25 = vld [vmem:[#allocation8 + $0x44] ss:$16 sps:$4 sm:$0xff]  }
 0x698   :  { %3494 = vrcp.f32 %v1318_v21  ;;  %v1319_v7 = vadd.f32 1.0, %v3491_v19  ;;  %v3320_v21 = vld [vmem:[#allocation8 + $0x40] ss:$16 sps:$4 sm:$0xff]   ;;  %v3328_v19 = vld [vmem:[#allocation8 + $0x64] ss:$16 sps:$4 sm:$0xff]  }
 0x69a   :  { %3496 = vrcp.f32 %v1319_v7  ;;  %v3334_v7 = vld [vmem:[#allocation8 + $0x84] ss:$16 sps:$4 sm:$0xff]  }
 0x6a1   :  { %v3493_v29 = vpop.eup %3492 }
 0x6a2   :  { %v1328_v36 = vmul.f32 %v3493_v29, %v3489_v27  ;;  %v3495_v6 = vpop.eup %3494  ;;  %v3323_v27 = vld [vmem:[#allocation8 + $0x48] ss:$16 sps:$4 sm:$0xff]   ;;  %v3331_v29 = vld [vmem:[#allocation8 + $0x6c] ss:$16 sps:$4 sm:$0xff]  }
 0x6a3   :  { %v1327_v8 = vmul.f32 %v3495_v6, %v4434_v28  ;;  %v3329_v6 = vld [vmem:[#allocation8 + $0x68] ss:$16 sps:$4 sm:$0xff]  }
 0x6a4   :  { %v3497_v11 = vpop.eup %3496 }
 0x6a5   :  { %v4512_v9 = vadd.f32 %v1328_v36, %v1327_v8  ;;  %v3326_v36 = vld [vmem:[#allocation8 + $0x60] ss:$16 sps:$4 sm:$0xff]   ;;  %v3337_v8 = vld [vmem:[#allocation8 + $0x8c] ss:$16 sps:$4 sm:$0xff]  }
 0x6a7   :  { %3498 = vtanh.f32 %v4512_v9 }
 0x6b1   :  { %v3499_v12 = vpop.eup %3498 }
 0x6b2   :  { %v4515_v13 = vmul.f32 %v3499_v12, %v3497_v11  ;;  %v3335_v11 = vld [vmem:[#allocation8 + $0x88] ss:$16 sps:$4 sm:$0xff]   ;;  %v3340_v12 = vld [vmem:[#allocation8 + $0xa4] ss:$16 sps:$4 sm:$0xff]  }
 0x6b4   :  { %v1332_v14 = vpack.c.bf16 %v4515_v13, %v4515_v13 }
 0x6b6   :  { %1366 = vmatmul.mubr.bf16.vlgmr.msra.gmra.mrb[40].mxu0 %v1332_v14  ;;  %1407 = vmatmul.mubr.bf16.vlgmr.msra.gmra.mrb[40].mxu1 %v1332_v14  ;;  %v3343_v14 = vld [vmem:[#allocation8 + $0xac] ss:$16 sps:$4 sm:$0xff]  }
 0x6b7   :  { %1445 = vmatpush1.bf16.msra.mxu0 %v4367_v33  ;;  %1486 = vmatpush1.bf16.msra.mxu1 %v4370_v49  ;;  %v3310_v33 = vld [vmem:[#allocation8 + $0x4] ss:$16 sps:$4 sm:$0xff]   ;;  %v3313_v49 = vld [vmem:[#allocation8 + $0xc] ss:$16 sps:$4 sm:$0xff]  }
 0x6b8   :  { %1446 = vmatprep.subr.bf16.mxu0 %v4373_v31  ;;  %1487 = vmatprep.subr.bf16.mxu1 %v4376_v1 }
 0x6b9   :  { %1476 = vmatprep.mubr.bf16.mxu0 %v5196_v17  ;;  %1517 = vmatprep.mubr.bf16.mxu1 %v5196_v17 }
 0x6bb   :  { %1447 = vmatpush1.bf16.msra.mxu0 %v4381_v20  ;;  %1488 = vmatpush1.bf16.msra.mxu1 %v4384_v18  ;;  %v5210_v20 = vld [vmem:[#allocation28_spill] sm:$0xff] }
 0x6bc   :  { %1448 = vmatprep.subr.bf16.mxu0 %v4387_v4  ;;  %1489 = vmatprep.subr.bf16.mxu1 %v4390_v41  ;;  %v5211_v4 = vld [vmem:[#allocation29_spill] sm:$0xff] }
 0x6bf   :  { %1449 = vmatpush1.bf16.msra.mxu0 %v4393_v42  ;;  %1490 = vmatpush1.bf16.msra.mxu1 %v4396_v43 }
 0x6c0   :  { %1450 = vmatprep.subr.bf16.mxu0 %v4399_v44  ;;  %1491 = vmatprep.subr.bf16.mxu1 %v4402_v47  ;;  %v5212_v44 = vld [vmem:[#allocation30_spill] sm:$0xff] }
 0x6c3   :  { %1451 = vmatpush1.bf16.msra.mxu0 %v4405_v48  ;;  %1492 = vmatpush1.bf16.msra.mxu1 %v4408_v50  ;;  %v5213_v48 = vld [vmem:[#allocation31_spill] sm:$0xff] }
 0x6c4   :  { %1452 = vmatprep.subr.bf16.mxu0 %v4457_v37  ;;  %1493 = vmatprep.subr.bf16.mxu1 %v4460_v34 }
 0x6c7   :  { %1453 = vmatpush1.bf16.msra.mxu0 %v4463_v38  ;;  %1494 = vmatpush1.bf16.msra.mxu1 %v4466_v56 }
 0x6c8   :  { %1454 = vmatprep.subr.bf16.mxu0 %v4469_v62  ;;  %1495 = vmatprep.subr.bf16.mxu1 %v4472_v5 }
 0x6cb   :  { %1455 = vmatpush1.bf16.msra.mxu0 %v4475_v30  ;;  %1496 = vmatpush1.bf16.msra.mxu1 %v4478_v57 }
 0x6cc   :  { %1456 = vmatprep.subr.bf16.mxu0 %v4481_v58  ;;  %1497 = vmatprep.subr.bf16.mxu1 %v4484_v59 }
 0x6cf   :  { %1457 = vmatpush1.bf16.msra.mxu0 %v4487_v60  ;;  %1498 = vmatpush1.bf16.msra.mxu1 %v4490_v61 }
 0x6d0   :  { %1458 = vmatprep.subr.bf16.mxu0 %v4493_v63  ;;  %1499 = vmatprep.subr.bf16.mxu1 %v4496_v0 }
 0x6d3   :  { %1459 = vmatpush1.bf16.msra.mxu0 %v4499_v2  ;;  %1500 = vmatpush1.bf16.msra.mxu1 %v4502_v3 }
 0x6d4   :  { %1772 = vmatprep.subr.bf16.mxu0 %v3310_v33  ;;  %1845 = vmatprep.subr.bf16.mxu1 %v3313_v49  ;;  %v3338_v33 = vld [vmem:[#allocation8 + $0xa0] ss:$16 sps:$4 sm:$0xff]   ;;  %v3341_v49 = vld [vmem:[#allocation8 + $0xa8] ss:$16 sps:$4 sm:$0xff]  }
 0x789   :  { %v1367_v31 = vpop.f32.mrb[40].mxu0  ;;  %v1408_v1 = vpop.f32.mrb[40].mxu1 }
 0x78a   :  { %v1415_v18 = vadd.f32 %v1367_v31, %v5210_v20  ;;  %v1417_v41 = vadd.f32 %v1408_v1, %v5211_v4  ;;  %v1369_v42 = vpop.f32.mrb[41].mxu0  ;;  %v1410_v43 = vpop.f32.mrb[41].mxu1  ;;  %v3346_v31 = vld [vmem:[#allocation8 + $0xc4] ss:$16 sps:$4 sm:$0xff]   ;;  %v3349_v1 = vld [vmem:[#allocation8 + $0xcc] ss:$16 sps:$4 sm:$0xff]  }
 0x78b   :  { %v1416_v47 = vadd.f32 %v1369_v42, %v5212_v44  ;;  %v1418_v50 = vadd.f32 %v1410_v43, %v5213_v48  ;;  %v1371_v28 = vpop.f32.mrb[42].mxu0  ;;  %v1412_v37 = vpop.f32.mrb[42].mxu1  ;;  %v3344_v20 = vld [vmem:[#allocation8 + $0xc0] ss:$16 sps:$4 sm:$0xff]   ;;  %v3352_v4 = vld [vmem:[#allocation8 + $0xe4] ss:$16 sps:$4 sm:$0xff]   ;;  %v1554_v44 = vpack.c.bf16 %v4267_v35, %v4221_v10  ;;  %v1556_v48 = vpack.c.bf16 %v4515_v13, %v4437_v32 }
 0x78c   :  { %v3106_v34 = vmul.f32 -1.442695, %v1415_v18  ;;  %v1372_v38 = vpop.f32.mrb[43].mxu0  ;;  %v1413_v56 = vpop.f32.mrb[43].mxu1  ;;  %v3108_v5 = vmul.f32 -1.442695, %v1417_v41 }
 0x78d   :  { %v3107_v62 = vmul.f32 -1.442695, %v1416_v47  ;;  %v3347_v18 = vld [vmem:[#allocation8 + $0xc8] ss:$16 sps:$4 sm:$0xff]   ;;  %v3355_v41 = vld [vmem:[#allocation8 + $0xec] ss:$16 sps:$4 sm:$0xff]   ;;  %v1555_v47 = vpack.c.bf16 %v4363_v45, %v4313_v15 }
 0x78e   :  { %3500 = vpow2.f32 %v3106_v34  ;;  %v3350_v42 = vld [vmem:[#allocation8 + $0xe0] ss:$16 sps:$4 sm:$0xff]   ;;  %v3353_v43 = vld [vmem:[#allocation8 + $0xe8] ss:$16 sps:$4 sm:$0xff]   ;;  %v4577_v10 = vld [vmem:[#allocation10 + $0x4] ss:$16 sps:$4 sm:$0xff]  }
 0x78f   :  { %3502 = vpow2.f32 %v3107_v62  ;;  %v4579_v35 = vld [vmem:[#allocation10 + $0xc] ss:$16 sps:$4 sm:$0xff]   ;;  %v4581_v15 = vld [vmem:[#allocation10] ss:$16 sps:$4 sm:$0xff]   ;;  %v4583_v45 = vld [vmem:[#allocation10 + $0x8] ss:$16 sps:$4 sm:$0xff]  }
 0x790   :  { %3504 = vtanh.f32 %v1418_v50  ;;  %v4589_v32 = vld [vmem:[#allocation10 + $0x24] ss:$16 sps:$4 sm:$0xff]   ;;  %v4591_v13 = vld [vmem:[#allocation10 + $0x2c] ss:$16 sps:$4 sm:$0xff]   ;;  %v4593_v50 = vld [vmem:[#allocation10 + $0x20] ss:$16 sps:$4 sm:$0xff]  }
 0x791   :  { %3506 = vpow2.f32 %v3108_v5  ;;  %v4595_v28 = vld [vmem:[#allocation10 + $0x28] ss:$16 sps:$4 sm:$0xff]   ;;  %v4601_v37 = vld [vmem:[#allocation10 + $0x44] ss:$16 sps:$4 sm:$0xff]   ;;  %v4603_v34 = vld [vmem:[#allocation10 + $0x4c] ss:$16 sps:$4 sm:$0xff]  }
 0x792   :  { %v4605_v38 = vld [vmem:[#allocation10 + $0x40] ss:$16 sps:$4 sm:$0xff]   ;;  %v4607_v56 = vld [vmem:[#allocation10 + $0x48] ss:$16 sps:$4 sm:$0xff]   ;;  %v4613_v62 = vld [vmem:[#allocation10 + $0x64] ss:$16 sps:$4 sm:$0xff]  }
 0x793   :  { %v4615_v5 = vld [vmem:[#allocation10 + $0x6c] ss:$16 sps:$4 sm:$0xff]  }
 0x798   :  { %v3501_v30 = vpop.eup %3500 }
 0x799   :  { %v1428_v57 = vadd.f32 1.0, %v3501_v30  ;;  %v3503_v58 = vpop.eup %3502  ;;  %v4617_v30 = vld [vmem:[#allocation10 + $0x60] ss:$16 sps:$4 sm:$0xff]  }
 0x79a   :  { %v1429_v59 = vadd.f32 1.0, %v3503_v58  ;;  %v3505_v60 = vpop.eup %3504  ;;  %v4625_v58 = vld [vmem:[#allocation10 + $0x84] ss:$16 sps:$4 sm:$0xff]  }
 0x79b   :  { %3508 = vrcp.f32 %v1428_v57  ;;  %v3507_v61 = vpop.eup %3506  ;;  %v4619_v57 = vld [vmem:[#allocation10 + $0x68] ss:$16 sps:$4 sm:$0xff]  }
 0x79c   :  { %3510 = vrcp.f32 %v1429_v59  ;;  %v1430_v3 = vadd.f32 1.0, %v3507_v61  ;;  %v4627_v59 = vld [vmem:[#allocation10 + $0x8c] ss:$16 sps:$4 sm:$0xff]   ;;  %v4631_v61 = vld [vmem:[#allocation10 + $0x88] ss:$16 sps:$4 sm:$0xff]  }
 0x79e   :  { %3512 = vrcp.f32 %v1430_v3  ;;  %v4643_v3 = vld [vmem:[#allocation10 + $0xa8] ss:$16 sps:$4 sm:$0xff]  }
 0x7a5   :  { %v3509_v63 = vpop.eup %3508 }
 0x7a6   :  { %v1439_v0 = vmul.f32 %v3509_v63, %v3505_v60  ;;  %v3511_v2 = vpop.eup %3510  ;;  %v4629_v60 = vld [vmem:[#allocation10 + $0x80] ss:$16 sps:$4 sm:$0xff]   ;;  %v4637_v63 = vld [vmem:[#allocation10 + $0xa4] ss:$16 sps:$4 sm:$0xff]  }
 0x7a7   :  { %v1438_v51 = vmul.f32 %v3511_v2, %v4512_v9  ;;  %v3332_v9 = vld [vmem:[#allocation8 + $0x80] ss:$16 sps:$4 sm:$0xff]  }
 0x7a8   :  { %v3513_v53 = vpop.eup %3512  ;;  %v4641_v2 = vld [vmem:[#allocation10 + $0xa0] ss:$16 sps:$4 sm:$0xff]  }
 0x7a9   :  { %v4556_v52 = vadd.f32 %v1439_v0, %v1438_v51  ;;  %v4639_v0 = vld [vmem:[#allocation10 + $0xac] ss:$16 sps:$4 sm:$0xff]   ;;  %v4649_v51 = vld [vmem:[#allocation10 + $0xc4] ss:$16 sps:$4 sm:$0xff]  }
 0x7ab   :  { %3514 = vtanh.f32 %v4556_v52 }
 0x7b5   :  { %v3515_v54 = vpop.eup %3514 }
 0x7b6   :  { %v4559_v55 = vmul.f32 %v3515_v54, %v3513_v53  ;;  %v4651_v53 = vld [vmem:[#allocation10 + $0xcc] ss:$16 sps:$4 sm:$0xff]   ;;  %v4653_v54 = vld [vmem:[#allocation10 + $0xc0] ss:$16 sps:$4 sm:$0xff]  }
 0x7b8   :  { %v1443_v22 = vpack.c.bf16 %v4559_v55, %v4559_v55 }
 0x7ba   :  { %1477 = vmatmul.mubr.bf16.vlgmr.msra.gmra.mrb[44].mxu0 %v1443_v22  ;;  %1518 = vmatmul.mubr.bf16.vlgmr.msra.gmra.mrb[44].mxu1 %v1443_v22  ;;  %v4663_v22 = vld [vmem:[#allocation10 + $0xec] ss:$16 sps:$4 sm:$0xff]  }
 0x7bb   :  { %1773 = vmatpush1.bf16.msra.mxu0 %v3308_v46  ;;  %1846 = vmatpush1.bf16.msra.mxu1 %v3311_v23  ;;  %v4655_v46 = vld [vmem:[#allocation10 + $0xc8] ss:$16 sps:$4 sm:$0xff]   ;;  %v4661_v23 = vld [vmem:[#allocation10 + $0xe4] ss:$16 sps:$4 sm:$0xff]  }
 0x7bc   :  { %1774 = vmatprep.subr.bf16.mxu0 %v3316_v24  ;;  %1847 = vmatprep.subr.bf16.mxu1 %v3319_v39  ;;  %v4665_v24 = vld [vmem:[#allocation10 + $0xe0] ss:$16 sps:$4 sm:$0xff]   ;;  %v4667_v39 = vld [vmem:[#allocation10 + $0xe8] ss:$16 sps:$4 sm:$0xff]  }
 0x7bd   :  { %1804 = vmatprep.mubr.bf16.mxu0 %v5196_v17  ;;  %1877 = vmatprep.mubr.bf16.mxu1 %v5196_v17 }
 0x7bf   :  { %1775 = vmatpush1.bf16.msra.mxu0 %v3314_v40  ;;  %1848 = vmatpush1.bf16.msra.mxu1 %v3317_v26 }
 0x7c0   :  { %1776 = vmatprep.subr.bf16.mxu0 %v3322_v25  ;;  %1849 = vmatprep.subr.bf16.mxu1 %v3325_v16  ;;  %v5214_v25 = vld [vmem:[#allocation32_spill] sm:$0xff] }
 0x7c3   :  { %1777 = vmatpush1.bf16.msra.mxu0 %v3320_v21  ;;  %1850 = vmatpush1.bf16.msra.mxu1 %v3323_v27  ;;  %v5215_v21 = vld [vmem:[#allocation33_spill] sm:$0xff] }
 0x7c4   :  { %1778 = vmatprep.subr.bf16.mxu0 %v3328_v19  ;;  %1851 = vmatprep.subr.bf16.mxu1 %v3331_v29 }
 0x7c7   :  { %1779 = vmatpush1.bf16.msra.mxu0 %v3326_v36  ;;  %1852 = vmatpush1.bf16.msra.mxu1 %v3329_v6  ;;  %v5216_v36 = vld [vmem:[#allocation34_spill] sm:$0xff] }
 0x7c8   :  { %1780 = vmatprep.subr.bf16.mxu0 %v3334_v7  ;;  %1853 = vmatprep.subr.bf16.mxu1 %v3337_v8  ;;  %v5217_v7 = vld [vmem:[#allocation35_spill] sm:$0xff] }
 0x7cb   :  { %1781 = vmatpush1.bf16.msra.mxu0 %v3332_v9  ;;  %1854 = vmatpush1.bf16.msra.mxu1 %v3335_v11 }
 0x7cc   :  { %1782 = vmatprep.subr.bf16.mxu0 %v3340_v12  ;;  %1855 = vmatprep.subr.bf16.mxu1 %v3343_v14 }
 0x7cf   :  { %1783 = vmatpush1.bf16.msra.mxu0 %v3338_v33  ;;  %1856 = vmatpush1.bf16.msra.mxu1 %v3341_v49 }
 0x7d0   :  { %1784 = vmatprep.subr.bf16.mxu0 %v3346_v31  ;;  %1857 = vmatprep.subr.bf16.mxu1 %v3349_v1 }
 0x7d3   :  { %1785 = vmatpush1.bf16.msra.mxu0 %v3344_v20  ;;  %1858 = vmatpush1.bf16.msra.mxu1 %v3347_v18 }
 0x7d4   :  { %1786 = vmatprep.subr.bf16.mxu0 %v3352_v4  ;;  %1859 = vmatprep.subr.bf16.mxu1 %v3355_v41 }
 0x7d7   :  { %1787 = vmatpush1.bf16.msra.mxu0 %v3350_v42  ;;  %1860 = vmatpush1.bf16.msra.mxu1 %v3353_v43 }
 0x7d8   :  { %2110 = vmatprep.subr.bf16.mxu0 %v4577_v10  ;;  %2151 = vmatprep.subr.bf16.mxu1 %v4579_v35 }
 0x7da   :  { %1805 = vmatmul.mubr.bf16.vlgmr.msra.gmra.mrb[48].mxu0 %v1554_v44  ;;  %1878 = vmatmul.mubr.bf16.vlgmr.msra.gmra.mrb[48].mxu1 %v1554_v44 }
 0x7db   :  { %1814 = vmatprep.mubr.bf16.mxu0 %v5196_v17  ;;  %1887 = vmatprep.mubr.bf16.mxu1 %v5196_v17 }
 0x7dc   :  { %2111 = vmatpush1.bf16.msra.mxu0 %v4581_v15  ;;  %2152 = vmatpush1.bf16.msra.mxu1 %v4583_v45 }
 0x7dd   :  { %2112 = vmatprep.subr.bf16.mxu0 %v4589_v32  ;;  %2153 = vmatprep.subr.bf16.mxu1 %v4591_v13 }
 0x7e0   :  { %2113 = vmatpush1.bf16.msra.mxu0 %v4593_v50  ;;  %2154 = vmatpush1.bf16.msra.mxu1 %v4595_v28 }
 0x7e1   :  { %2114 = vmatprep.subr.bf16.mxu0 %v4601_v37  ;;  %2155 = vmatprep.subr.bf16.mxu1 %v4603_v34 }
 0x7e2   :  { %1815 = vmatmul.mubr.bf16.gmra.mrb[52].mxu0 %v1555_v47  ;;  %1888 = vmatmul.mubr.bf16.gmra.mrb[52].mxu1 %v1555_v47 }
 0x7e3   :  { %1824 = vmatprep.mubr.bf16.mxu0 %v5196_v17  ;;  %1897 = vmatprep.mubr.bf16.mxu1 %v5196_v17 }
 0x7e4   :  { %2115 = vmatpush1.bf16.msra.mxu0 %v4605_v38  ;;  %2156 = vmatpush1.bf16.msra.mxu1 %v4607_v56 }
 0x7e5   :  { %2116 = vmatprep.subr.bf16.mxu0 %v4613_v62  ;;  %2157 = vmatprep.subr.bf16.mxu1 %v4615_v5 }
 0x7e8   :  { %2117 = vmatpush1.bf16.msra.mxu0 %v4617_v30  ;;  %2158 = vmatpush1.bf16.msra.mxu1 %v4619_v57 }
 0x7e9   :  { %2118 = vmatprep.subr.bf16.mxu0 %v4625_v58  ;;  %2159 = vmatprep.subr.bf16.mxu1 %v4627_v59 }
 0x7ea   :  { %1825 = vmatmul.mubr.bf16.gmra.mrb[56].mxu0 %v1556_v48  ;;  %1898 = vmatmul.mubr.bf16.gmra.mrb[56].mxu1 %v1556_v48 }
 0x7eb   :  { %1834 = vmatprep.mubr.bf16.mxu0 %v5196_v17  ;;  %1907 = vmatprep.mubr.bf16.mxu1 %v5196_v17 }
 0x7ec   :  { %2119 = vmatpush1.bf16.msra.mxu0 %v4629_v60  ;;  %2160 = vmatpush1.bf16.msra.mxu1 %v4631_v61 }
 0x7ed   :  { %2120 = vmatprep.subr.bf16.mxu0 %v4637_v63  ;;  %2161 = vmatprep.subr.bf16.mxu1 %v4639_v0 }
 0x7f0   :  { %2121 = vmatpush1.bf16.msra.mxu0 %v4641_v2  ;;  %2162 = vmatpush1.bf16.msra.mxu1 %v4643_v3 }
 0x7f1   :  { %2122 = vmatprep.subr.bf16.mxu0 %v4649_v51  ;;  %2163 = vmatprep.subr.bf16.mxu1 %v4651_v53 }
 0x7f4   :  { %2123 = vmatpush1.bf16.msra.mxu0 %v4653_v54  ;;  %2164 = vmatpush1.bf16.msra.mxu1 %v4655_v46 }
 0x7f5   :  { %2124 = vmatprep.subr.bf16.mxu0 %v4661_v23  ;;  %2165 = vmatprep.subr.bf16.mxu1 %v4663_v22 }
 0x7f8   :  { %2125 = vmatpush1.bf16.msra.mxu0 %v4665_v24  ;;  %2166 = vmatpush1.bf16.msra.mxu1 %v4667_v39 }
 0x7f9   :  { %2221 = vmatprep.subr.bf16.mxu0 %v4577_v10  ;;  %2262 = vmatprep.subr.bf16.mxu1 %v4579_v35 }
 0x88d   :  { %v1478_v40 = vpop.f32.mrb[44].mxu0  ;;  %v1519_v26 = vpop.f32.mrb[44].mxu1 }
 0x88e   :  { %v1526_v16 = vadd.f32 %v1478_v40, %v5214_v25  ;;  %v1528_v27 = vadd.f32 %v1519_v26, %v5215_v21  ;;  %v1480_v19 = vpop.f32.mrb[45].mxu0  ;;  %v1521_v29 = vpop.f32.mrb[45].mxu1 }
 0x88f   :  { %v1527_v6 = vadd.f32 %v1480_v19, %v5216_v36  ;;  %v1529_v8 = vadd.f32 %v1521_v29, %v5217_v7  ;;  %v1482_v9 = vpop.f32.mrb[46].mxu0  ;;  %v1523_v11 = vpop.f32.mrb[46].mxu1 }
 0x890   :  { %v3109_v12 = vmul.f32 -1.442695, %v1526_v16  ;;  %v1483_v14 = vpop.f32.mrb[47].mxu0  ;;  %v1524_v33 = vpop.f32.mrb[47].mxu1  ;;  %v3111_v31 = vmul.f32 -1.442695, %v1528_v27 }
 0x891   :  { %v3110_v49 = vmul.f32 -1.442695, %v1527_v6 }
 0x892   :  { %3516 = vpow2.f32 %v3109_v12 }
 0x893   :  { %3518 = vpow2.f32 %v3110_v49 }
 0x894   :  { %3520 = vtanh.f32 %v1529_v8 }
 0x895   :  { %3522 = vpow2.f32 %v3111_v31 }
 0x89c   :  { %v3517_v1 = vpop.eup %3516 }
 0x89d   :  { %v1539_v20 = vadd.f32 1.0, %v3517_v1  ;;  %v3519_v18 = vpop.eup %3518 }
 0x89e   :  { %v1540_v4 = vadd.f32 1.0, %v3519_v18  ;;  %v3521_v41 = vpop.eup %3520 }
 0x89f   :  { %3524 = vrcp.f32 %v1539_v20  ;;  %v3523_v42 = vpop.eup %3522 }
 0x8a0   :  { %3526 = vrcp.f32 %v1540_v4  ;;  %v1541_v48 = vadd.f32 1.0, %v3523_v42 }
 0x8a2   :  { %3528 = vrcp.f32 %v1541_v48 }
 0x8a9   :  { %v3525_v43 = vpop.eup %3524 }
 0x8aa   :  { %v1550_v44 = vmul.f32 %v3525_v43, %v3521_v41  ;;  %v3527_v47 = vpop.eup %3526 }
 0x8ab   :  { %v1549_v40 = vmul.f32 %v3527_v47, %v4556_v52 }
 0x8ac   :  { %v3529_v49 = vpop.eup %3528 }
 0x8ad   :  { %v4680_v26 = vpop.f32.mrb[48].mxu0  ;;  %v4682_v25 = vpop.f32.mrb[48].mxu1  ;;  %v1551_v16 = vadd.f32 %v1550_v44, %v1549_v40 }
 0x8ae   :  { %v4684_v21 = vpop.f32.mrb[49].mxu0  ;;  %v4686_v27 = vpop.f32.mrb[49].mxu1 }
 0x8af   :  { %v4688_v19 = vpop.f32.mrb[50].mxu0  ;;  %v4690_v29 = vpop.f32.mrb[50].mxu1  ;;  %3530 = vtanh.f32 %v1551_v16 }
 0x8b0   :  { %v4692_v36 = vpop.f32.mrb[51].mxu0  ;;  %v4694_v6 = vpop.f32.mrb[51].mxu1 }
 0x8b5   :  { %v4696_v52 = vpop.f32.mrb[52].mxu0  ;;  %v4698_v7 = vpop.f32.mrb[52].mxu1 }
 0x8b6   :  { %5218 = vst [vmem:[#allocation15_spill] sm:$0xff] %v4698_v7  ;;  %v4700_v8 = vpop.f32.mrb[53].mxu0  ;;  %v4702_v9 = vpop.f32.mrb[53].mxu1 }
 0x8b7   :  { %5219 = vst [vmem:[#allocation16_spill] sm:$0xff] %v4700_v8  ;;  %5220 = vst [vmem:[#allocation17_spill] sm:$0xff] %v4702_v9  ;;  %v4704_v11 = vpop.f32.mrb[54].mxu0  ;;  %v4706_v12 = vpop.f32.mrb[54].mxu1 }
 0x8b8   :  { %5221 = vst [vmem:[#allocation18_spill] sm:$0xff] %v4704_v11  ;;  %5222 = vst [vmem:[#allocation19_spill] sm:$0xff] %v4706_v12  ;;  %v4708_v14 = vpop.f32.mrb[55].mxu0  ;;  %v4710_v33 = vpop.f32.mrb[55].mxu1 }
 0x8b9   :  { %5223 = vst [vmem:[#allocation20_spill] sm:$0xff] %v4708_v14  ;;  %5224 = vst [vmem:[#allocation21_spill] sm:$0xff] %v4710_v33  ;;  %v3531_v31 = vpop.eup %3530 }
 0x8ba   :  { %v1553_v1 = vmul.f32 %v3531_v31, %v3529_v49 }
 0x8bc   :  { %v1557_v4 = vpack.c.bf16 %v1553_v1, %v4559_v55  ;;  %v1590_v55 = vld [vmem:[%s5162_s6] sm:$0xf] }
 0x8bd   :  { %v4712_v20 = vpop.f32.mrb[56].mxu0  ;;  %v4714_v18 = vpop.f32.mrb[56].mxu1 }
 0x8be   :  { %5225 = vst [vmem:[#allocation22_spill] sm:$0xff] %v4712_v20  ;;  %5226 = vst [vmem:[#allocation23_spill] sm:$0xff] %v4714_v18  ;;  %v4717_v41 = vpop.f32.mrb[57].mxu0  ;;  %v4719_v42 = vpop.f32.mrb[57].mxu1  ;;  %1835 = vmatmul.mubr.bf16.gmra.mrb[60].mxu0 %v1557_v4  ;;  %1908 = vmatmul.mubr.bf16.gmra.mrb[60].mxu1 %v1557_v4 }
 0x8bf   :  { %5227 = vst [vmem:[#allocation24_spill] sm:$0xff] %v4717_v41  ;;  %5228 = vst [vmem:[#allocation25_spill] sm:$0xff] %v4719_v42  ;;  %v4721_v43 = vpop.f32.mrb[58].mxu0  ;;  %v4723_v44 = vpop.f32.mrb[58].mxu1  ;;  %2142 = vmatprep.mubr.bf16.mxu0 %v5196_v17  ;;  %2183 = vmatprep.mubr.bf16.mxu1 %v5196_v17 }
 0x8c0   :  { %5229 = vst [vmem:[#allocation26_spill] sm:$0xff] %v4721_v43  ;;  %5230 = vst [vmem:[#allocation27_spill] sm:$0xff] %v4723_v44  ;;  %v4725_v47 = vpop.f32.mrb[59].mxu0  ;;  %v4727_v48 = vpop.f32.mrb[59].mxu1 }
 0x8c1   :  { %5231 = vst [vmem:[#allocation28_spill] sm:$0xff] %v4725_v47  ;;  %5232 = vst [vmem:[#allocation29_spill] sm:$0xff] %v4727_v48  ;;  %v5239_v48 = vld [vmem:[#allocation14_spill] sm:$0xff] }
 0x8c2   :  { %v5240_v47 = vsub.s32 0, %v5239_v48  ;;  %v5241_v43 = vsub.s32 2, %v5239_v48 }
 0x8c4   :  { %v4784_v44 = vrot.slane %v1590_v55, %v5240_v47  ;;  %v4788_v42 = vrot.slane %v1590_v55, %v5241_v43 }
 0x8c6   :  { %2143 = vmatmul.mubr.bf16.vlgmr.msra.gmra.mrb[64].mxu0 %v5196_v17  ;;  %2184 = vmatmul.mubr.bf16.vlgmr.msra.gmra.mrb[64].mxu1 %v5196_v17  ;;  %v1807_v47 = vadd.f32 %v4680_v26, %v4784_v44 }
 0x8c7   :  { %2222 = vmatpush1.bf16.msra.mxu0 %v4581_v15  ;;  %2263 = vmatpush1.bf16.msra.mxu1 %v4583_v45 }
 0x8c8   :  { %2223 = vmatprep.subr.bf16.mxu0 %v4589_v32  ;;  %2264 = vmatprep.subr.bf16.mxu1 %v4591_v13 }
 0x8c9   :  { %2253 = vmatprep.mubr.bf16.mxu0 %v5196_v17  ;;  %2294 = vmatprep.mubr.bf16.mxu1 %v5196_v17 }
 0x8cb   :  { %2224 = vmatpush1.bf16.msra.mxu0 %v4593_v50  ;;  %2265 = vmatpush1.bf16.msra.mxu1 %v4595_v28 }
 0x8cc   :  { %2225 = vmatprep.subr.bf16.mxu0 %v4601_v37  ;;  %2266 = vmatprep.subr.bf16.mxu1 %v4603_v34 }
 0x8cf   :  { %2226 = vmatpush1.bf16.msra.mxu0 %v4605_v38  ;;  %2267 = vmatpush1.bf16.msra.mxu1 %v4607_v56 }
 0x8d0   :  { %2227 = vmatprep.subr.bf16.mxu0 %v4613_v62  ;;  %2268 = vmatprep.subr.bf16.mxu1 %v4615_v5 }
 0x8d3   :  { %2228 = vmatpush1.bf16.msra.mxu0 %v4617_v30  ;;  %2269 = vmatpush1.bf16.msra.mxu1 %v4619_v57 }
 0x8d4   :  { %2229 = vmatprep.subr.bf16.mxu0 %v4625_v58  ;;  %2270 = vmatprep.subr.bf16.mxu1 %v4627_v59 }
 0x8d7   :  { %2230 = vmatpush1.bf16.msra.mxu0 %v4629_v60  ;;  %2271 = vmatpush1.bf16.msra.mxu1 %v4631_v61 }
 0x8d8   :  { %2231 = vmatprep.subr.bf16.mxu0 %v4637_v63  ;;  %2272 = vmatprep.subr.bf16.mxu1 %v4639_v0 }
 0x8db   :  { %2232 = vmatpush1.bf16.msra.mxu0 %v4641_v2  ;;  %2273 = vmatpush1.bf16.msra.mxu1 %v4643_v3 }
 0x8dc   :  { %2233 = vmatprep.subr.bf16.mxu0 %v4649_v51  ;;  %2274 = vmatprep.subr.bf16.mxu1 %v4651_v53 }
 0x8df   :  { %2234 = vmatpush1.bf16.msra.mxu0 %v4653_v54  ;;  %2275 = vmatpush1.bf16.msra.mxu1 %v4655_v46 }
 0x8e0   :  { %2235 = vmatprep.subr.bf16.mxu0 %v4661_v23  ;;  %2276 = vmatprep.subr.bf16.mxu1 %v4663_v22 }
 0x8e3   :  { %2236 = vmatpush1.bf16.msra.mxu0 %v4665_v24  ;;  %2277 = vmatpush1.bf16.msra.mxu1 %v4667_v39 }
 0x8e4   :  { %2332 = vmatprep.subr.bf16.mxu0 %v4577_v10  ;;  %2373 = vmatprep.subr.bf16.mxu1 %v4579_v35 }
 0x991   :  { %v4770_v40 = vpop.f32.mrb[60].mxu0  ;;  %v4772_v16 = vpop.f32.mrb[60].mxu1 }
 0x992   :  { %5233 = vst [vmem:[#allocation30_spill] sm:$0xff] %v4770_v40  ;;  %5234 = vst [vmem:[#allocation31_spill] sm:$0xff] %v4772_v16  ;;  %v4774_v49 = vpop.f32.mrb[61].mxu0  ;;  %v4776_v31 = vpop.f32.mrb[61].mxu1 }
 0x993   :  { %5235 = vst [vmem:[#allocation32_spill] sm:$0xff] %v4774_v49  ;;  %5236 = vst [vmem:[#allocation33_spill] sm:$0xff] %v4776_v31  ;;  %v4778_v1 = vpop.f32.mrb[62].mxu0  ;;  %v4780_v4 = vpop.f32.mrb[62].mxu1  ;;  %v5244_v49 = vsub.s32 1, %v5239_v48 }
 0x994   :  { %5237 = vst [vmem:[#allocation34_spill] sm:$0xff] %v4778_v1  ;;  %5238 = vst [vmem:[#allocation35_spill] sm:$0xff] %v4780_v4  ;;  %v4790_v41 = vpop.f32.mrb[63].mxu0  ;;  %v4792_v40 = vpop.f32.mrb[63].mxu1  ;;  %v5245_v1 = vsub.s32 3, %v5239_v48  ;;  %v1880_v4 = vadd.f32 %v4682_v25, %v4788_v42 }
 0x995   :  { %5242 = vst [vmem:[#allocation14_spill] sm:$0xff] %v4790_v41  ;;  %5243 = vst [vmem:[#allocation36_spill] sm:$0xff] %v4792_v40  ;;  %v4796_v16 = vrot.slane %v1590_v55, %v5244_v49 }
 0x996   :  { %v4800_v31 = vrot.slane %v1590_v55, %v5245_v1 }
 0x997   :  { %v1809_v43 = vadd.f32 %v4684_v21, %v4796_v16 }
 0x998   :  { %v1882_v40 = vadd.f32 %v4686_v27, %v4800_v31 }
 0x999   :  { %v2144_v41 = vpop.f32.mrb[64].mxu0  ;;  %v2185_v18 = vpop.f32.mrb[64].mxu1 }
 0x99a   :  { %v2192_v49 = vadd.f32 %v2144_v41, %v1807_v47  ;;  %v2194_v20 = vadd.f32 %v2185_v18, %v1880_v4  ;;  %v2146_v33 = vpop.f32.mrb[65].mxu0  ;;  %v2187_v48 = vpop.f32.mrb[65].mxu1 }
 0x99b   :  { %v2193_v55 = vadd.f32 %v2146_v33, %v1809_v43  ;;  %v2195_v1 = vadd.f32 %v2187_v48, %v1882_v40  ;;  %v2148_v14 = vpop.f32.mrb[66].mxu0  ;;  %v2189_v12 = vpop.f32.mrb[66].mxu1  ;;  %v1813_v48 = vadd.f32 %v4692_v36, %v4796_v16 }
 0x99c   :  { %v3176_v26 = vmul.f32 -1.442695, %v2192_v49  ;;  %v2149_v11 = vpop.f32.mrb[67].mxu0  ;;  %v2190_v9 = vpop.f32.mrb[67].mxu1  ;;  %v3178_v21 = vmul.f32 -1.442695, %v2194_v20  ;;  %v1884_v49 = vadd.f32 %v4690_v29, %v4788_v42 }
 0x99d   :  { %v3177_v25 = vmul.f32 -1.442695, %v2193_v55  ;;  %v1886_v55 = vadd.f32 %v4694_v6, %v4800_v31 }
 0x99e   :  { %3532 = vpow2.f32 %v3176_v26 }
 0x99f   :  { %3534 = vpow2.f32 %v3177_v25 }
 0x9a0   :  { %3536 = vtanh.f32 %v2195_v1 }
 0x9a1   :  { %3538 = vpow2.f32 %v3178_v21 }
 0x9a8   :  { %v3533_v8 = vpop.eup %3532 }
 0x9a9   :  { %v2205_v7 = vadd.f32 1.0, %v3533_v8  ;;  %v3535_v27 = vpop.eup %3534 }
 0x9aa   :  { %v2206_v18 = vadd.f32 1.0, %v3535_v27  ;;  %v3537_v41 = vpop.eup %3536 }
 0x9ab   :  { %3540 = vrcp.f32 %v2205_v7  ;;  %v3539_v33 = vpop.eup %3538  ;;  %v1811_v7 = vadd.f32 %v4688_v19, %v4784_v44 }
 0x9ac   :  { %3542 = vrcp.f32 %v2206_v18  ;;  %v2207_v4 = vadd.f32 1.0, %v3539_v33 }
 0x9ae   :  { %3544 = vrcp.f32 %v2207_v4 }
 0x9b5   :  { %v3541_v40 = vpop.eup %3540 }
 0x9b6   :  { %v2216_v14 = vmul.f32 %v3541_v40, %v3537_v41  ;;  %v3543_v12 = vpop.eup %3542 }
 0x9b7   :  { %v2215_v11 = vmul.f32 0.0, %v3543_v12 }
 0x9b8   :  { %v3545_v20 = vpop.eup %3544 }
 0x9b9   :  { %v4810_v9 = vadd.f32 %v2216_v14, %v2215_v11 }
 0x9bb   :  { %3546 = vtanh.f32 %v4810_v9 }
 0x9c5   :  { %v3547_v8 = vpop.eup %3546 }
 0x9c6   :  { %v2219_v47 = vmul.f32 %v3547_v8, %v3545_v20 }
 0x9c8   :  { %v2220_v43 = vpack.c.bf16 %v2219_v47, %v2219_v47 }
 0x9ca   :  { %2254 = vmatmul.mubr.bf16.vlgmr.msra.gmra.mrb[68].mxu0 %v2220_v43  ;;  %2295 = vmatmul.mubr.bf16.vlgmr.msra.gmra.mrb[68].mxu1 %v2220_v43 }
 0x9cb   :  { %2333 = vmatpush1.bf16.msra.mxu0 %v4581_v15  ;;  %2374 = vmatpush1.bf16.msra.mxu1 %v4583_v45 }
 0x9cc   :  { %2334 = vmatprep.subr.bf16.mxu0 %v4589_v32  ;;  %2375 = vmatprep.subr.bf16.mxu1 %v4591_v13 }
 0x9cd   :  { %2364 = vmatprep.mubr.bf16.mxu0 %v5196_v17  ;;  %2405 = vmatprep.mubr.bf16.mxu1 %v5196_v17 }
 0x9cf   :  { %2335 = vmatpush1.bf16.msra.mxu0 %v4593_v50  ;;  %2376 = vmatpush1.bf16.msra.mxu1 %v4595_v28 }
 0x9d0   :  { %2336 = vmatprep.subr.bf16.mxu0 %v4601_v37  ;;  %2377 = vmatprep.subr.bf16.mxu1 %v4603_v34 }
 0x9d3   :  { %2337 = vmatpush1.bf16.msra.mxu0 %v4605_v38  ;;  %2378 = vmatpush1.bf16.msra.mxu1 %v4607_v56 }
 0x9d4   :  { %2338 = vmatprep.subr.bf16.mxu0 %v4613_v62  ;;  %2379 = vmatprep.subr.bf16.mxu1 %v4615_v5 }
 0x9d7   :  { %2339 = vmatpush1.bf16.msra.mxu0 %v4617_v30  ;;  %2380 = vmatpush1.bf16.msra.mxu1 %v4619_v57 }
 0x9d8   :  { %2340 = vmatprep.subr.bf16.mxu0 %v4625_v58  ;;  %2381 = vmatprep.subr.bf16.mxu1 %v4627_v59 }
 0x9db   :  { %2341 = vmatpush1.bf16.msra.mxu0 %v4629_v60  ;;  %2382 = vmatpush1.bf16.msra.mxu1 %v4631_v61 }
 0x9dc   :  { %2342 = vmatprep.subr.bf16.mxu0 %v4637_v63  ;;  %2383 = vmatprep.subr.bf16.mxu1 %v4639_v0 }
 0x9df   :  { %2343 = vmatpush1.bf16.msra.mxu0 %v4641_v2  ;;  %2384 = vmatpush1.bf16.msra.mxu1 %v4643_v3 }
 0x9e0   :  { %2344 = vmatprep.subr.bf16.mxu0 %v4649_v51  ;;  %2385 = vmatprep.subr.bf16.mxu1 %v4651_v53 }
 0x9e3   :  { %2345 = vmatpush1.bf16.msra.mxu0 %v4653_v54  ;;  %2386 = vmatpush1.bf16.msra.mxu1 %v4655_v46 }
 0x9e4   :  { %2346 = vmatprep.subr.bf16.mxu0 %v4661_v23  ;;  %2387 = vmatprep.subr.bf16.mxu1 %v4663_v22 }
 0x9e7   :  { %2347 = vmatpush1.bf16.msra.mxu0 %v4665_v24  ;;  %2388 = vmatpush1.bf16.msra.mxu1 %v4667_v39 }
 0x9e8   :  { %2443 = vmatprep.subr.bf16.mxu0 %v4577_v10  ;;  %2484 = vmatprep.subr.bf16.mxu1 %v4579_v35 }
 0xa9d   :  { %v2255_v1 = vpop.f32.mrb[68].mxu0  ;;  %v2296_v26 = vpop.f32.mrb[68].mxu1 }
 0xa9e   :  { %v2303_v25 = vadd.f32 %v2255_v1, %v1811_v7  ;;  %v2305_v21 = vadd.f32 %v2296_v26, %v1884_v49  ;;  %v2257_v27 = vpop.f32.mrb[69].mxu0  ;;  %v2298_v18 = vpop.f32.mrb[69].mxu1 }
 0xa9f   :  { %v2304_v41 = vadd.f32 %v2257_v27, %v1813_v48  ;;  %v2306_v33 = vadd.f32 %v2298_v18, %v1886_v55  ;;  %v2259_v40 = vpop.f32.mrb[70].mxu0  ;;  %v2300_v14 = vpop.f32.mrb[70].mxu1 }
 0xaa0   :  { %v3179_v19 = vmul.f32 -1.442695, %v2303_v25  ;;  %v2260_v12 = vpop.f32.mrb[71].mxu0  ;;  %v2301_v4 = vpop.f32.mrb[71].mxu1  ;;  %v3181_v36 = vmul.f32 -1.442695, %v2305_v21 }
 0xaa1   :  { %v3180_v29 = vmul.f32 -1.442695, %v2304_v41  ;;  %v5246_v41 = vld [vmem:[#allocation15_spill] sm:$0xff]  ;;  %v5247_v40 = vld [vmem:[#allocation16_spill] sm:$0xff] }
 0xaa2   :  { %3548 = vpow2.f32 %v3179_v19  ;;  %v1819_v14 = vadd.f32 %v5247_v40, %v4796_v16  ;;  %v5248_v19 = vld [vmem:[#allocation17_spill] sm:$0xff] }
 0xaa3   :  { %3550 = vpow2.f32 %v3180_v29  ;;  %v1892_v12 = vadd.f32 %v5248_v19, %v4800_v31 }
 0xaa4   :  { %3552 = vtanh.f32 %v2306_v33  ;;  %v1890_v33 = vadd.f32 %v5246_v41, %v4788_v42 }
 0xaa5   :  { %3554 = vpow2.f32 %v3181_v36 }
 0xaac   :  { %v3549_v11 = vpop.eup %3548 }
 0xaad   :  { %v2316_v20 = vadd.f32 1.0, %v3549_v11  ;;  %v3551_v6 = vpop.eup %3550 }
 0xaae   :  { %v2317_v8 = vadd.f32 1.0, %v3551_v6  ;;  %v3553_v47 = vpop.eup %3552 }
 0xaaf   :  { %3556 = vrcp.f32 %v2316_v20  ;;  %v3555_v43 = vpop.eup %3554 }
 0xab0   :  { %3558 = vrcp.f32 %v2317_v8  ;;  %v2318_v55 = vadd.f32 1.0, %v3555_v43 }
 0xab2   :  { %3560 = vrcp.f32 %v2318_v55 }
 0xab9   :  { %v3557_v7 = vpop.eup %3556 }
 0xaba   :  { %v2327_v49 = vmul.f32 %v3557_v7, %v3553_v47  ;;  %v3559_v48 = vpop.eup %3558 }
 0xabb   :  { %v2326_v1 = vmul.f32 %v3559_v48, %v4810_v9  ;;  %v1817_v9 = vadd.f32 %v4696_v52, %v4784_v44 }
 0xabc   :  { %v3561_v25 = vpop.eup %3560 }
 0xabd   :  { %v4856_v26 = vadd.f32 %v2327_v49, %v2326_v1 }
 0xabf   :  { %3562 = vtanh.f32 %v4856_v26 }
 0xac9   :  { %v3563_v21 = vpop.eup %3562 }
 0xaca   :  { %v2330_v27 = vmul.f32 %v3563_v21, %v3561_v25 }
 0xacc   :  { %v2331_v18 = vpack.c.bf16 %v2330_v27, %v2330_v27 }
 0xace   :  { %2365 = vmatmul.mubr.bf16.vlgmr.msra.gmra.mrb[72].mxu0 %v2331_v18  ;;  %2406 = vmatmul.mubr.bf16.vlgmr.msra.gmra.mrb[72].mxu1 %v2331_v18 }
 0xacf   :  { %2444 = vmatpush1.bf16.msra.mxu0 %v4581_v15  ;;  %2485 = vmatpush1.bf16.msra.mxu1 %v4583_v45 }
 0xad0   :  { %2445 = vmatprep.subr.bf16.mxu0 %v4589_v32  ;;  %2486 = vmatprep.subr.bf16.mxu1 %v4591_v13 }
 0xad1   :  { %2475 = vmatprep.mubr.bf16.mxu0 %v5196_v17  ;;  %2516 = vmatprep.mubr.bf16.mxu1 %v5196_v17 }
 0xad3   :  { %2446 = vmatpush1.bf16.msra.mxu0 %v4593_v50  ;;  %2487 = vmatpush1.bf16.msra.mxu1 %v4595_v28 }
 0xad4   :  { %2447 = vmatprep.subr.bf16.mxu0 %v4601_v37  ;;  %2488 = vmatprep.subr.bf16.mxu1 %v4603_v34 }
 0xad7   :  { %2448 = vmatpush1.bf16.msra.mxu0 %v4605_v38  ;;  %2489 = vmatpush1.bf16.msra.mxu1 %v4607_v56 }
 0xad8   :  { %2449 = vmatprep.subr.bf16.mxu0 %v4613_v62  ;;  %2490 = vmatprep.subr.bf16.mxu1 %v4615_v5 }
 0xadb   :  { %2450 = vmatpush1.bf16.msra.mxu0 %v4617_v30  ;;  %2491 = vmatpush1.bf16.msra.mxu1 %v4619_v57 }
 0xadc   :  { %2451 = vmatprep.subr.bf16.mxu0 %v4625_v58  ;;  %2492 = vmatprep.subr.bf16.mxu1 %v4627_v59 }
 0xadf   :  { %2452 = vmatpush1.bf16.msra.mxu0 %v4629_v60  ;;  %2493 = vmatpush1.bf16.msra.mxu1 %v4631_v61 }
 0xae0   :  { %2453 = vmatprep.subr.bf16.mxu0 %v4637_v63  ;;  %2494 = vmatprep.subr.bf16.mxu1 %v4639_v0 }
 0xae3   :  { %2454 = vmatpush1.bf16.msra.mxu0 %v4641_v2  ;;  %2495 = vmatpush1.bf16.msra.mxu1 %v4643_v3 }
 0xae4   :  { %2455 = vmatprep.subr.bf16.mxu0 %v4649_v51  ;;  %2496 = vmatprep.subr.bf16.mxu1 %v4651_v53 }
 0xae7   :  { %2456 = vmatpush1.bf16.msra.mxu0 %v4653_v54  ;;  %2497 = vmatpush1.bf16.msra.mxu1 %v4655_v46 }
 0xae8   :  { %2457 = vmatprep.subr.bf16.mxu0 %v4661_v23  ;;  %2498 = vmatprep.subr.bf16.mxu1 %v4663_v22 }
 0xaeb   :  { %2458 = vmatpush1.bf16.msra.mxu0 %v4665_v24  ;;  %2499 = vmatpush1.bf16.msra.mxu1 %v4667_v39 }
 0xaec   :  { %2554 = vmatprep.subr.bf16.mxu0 %v4577_v10  ;;  %2595 = vmatprep.subr.bf16.mxu1 %v4579_v35 }
 0xba1   :  { %v2366_v4 = vpop.f32.mrb[72].mxu0  ;;  %v2407_v29 = vpop.f32.mrb[72].mxu1 }
 0xba2   :  { %v2414_v36 = vadd.f32 %v2366_v4, %v1817_v9  ;;  %v2416_v11 = vadd.f32 %v2407_v29, %v1890_v33  ;;  %v2368_v20 = vpop.f32.mrb[73].mxu0  ;;  %v2409_v6 = vpop.f32.mrb[73].mxu1 }
 0xba3   :  { %v2415_v8 = vadd.f32 %v2368_v20, %v1819_v14  ;;  %v2417_v47 = vadd.f32 %v2409_v6, %v1892_v12  ;;  %v2370_v43 = vpop.f32.mrb[74].mxu0  ;;  %v2411_v7 = vpop.f32.mrb[74].mxu1 }
 0xba4   :  { %v3182_v52 = vmul.f32 -1.442695, %v2414_v36  ;;  %v2371_v49 = vpop.f32.mrb[75].mxu0  ;;  %v2412_v48 = vpop.f32.mrb[75].mxu1  ;;  %v3184_v1 = vmul.f32 -1.442695, %v2416_v11 }
 0xba5   :  { %v3183_v55 = vmul.f32 -1.442695, %v2415_v8  ;;  %v5250_v8 = vld [vmem:[#allocation19_spill] sm:$0xff]  ;;  %v5251_v43 = vld [vmem:[#allocation20_spill] sm:$0xff] }
 0xba6   :  { %3564 = vpow2.f32 %v3182_v52  ;;  %v1823_v7 = vadd.f32 %v5251_v43, %v4796_v16  ;;  %v5252_v52 = vld [vmem:[#allocation21_spill] sm:$0xff] }
 0xba7   :  { %3566 = vpow2.f32 %v3183_v55  ;;  %v1896_v49 = vadd.f32 %v5252_v52, %v4800_v31 }
 0xba8   :  { %3568 = vtanh.f32 %v2417_v47  ;;  %v1894_v47 = vadd.f32 %v5250_v8, %v4788_v42 }
 0xba9   :  { %3570 = vpow2.f32 %v3184_v1 }
 0xbb0   :  { %v3565_v25 = vpop.eup %3564 }
 0xbb1   :  { %v2427_v21 = vadd.f32 1.0, %v3565_v25  ;;  %v3567_v27 = vpop.eup %3566 }
 0xbb2   :  { %v2428_v18 = vadd.f32 1.0, %v3567_v27  ;;  %v3569_v9 = vpop.eup %3568 }
 0xbb3   :  { %3572 = vrcp.f32 %v2427_v21  ;;  %v3571_v41 = vpop.eup %3570 }
 0xbb4   :  { %3574 = vrcp.f32 %v2428_v18  ;;  %v2429_v19 = vadd.f32 1.0, %v3571_v41 }
 0xbb6   :  { %3576 = vrcp.f32 %v2429_v19 }
 0xbbd   :  { %v3573_v33 = vpop.eup %3572 }
 0xbbe   :  { %v2438_v40 = vmul.f32 %v3573_v33, %v3569_v9  ;;  %v3575_v14 = vpop.eup %3574 }
 0xbbf   :  { %v2437_v12 = vmul.f32 %v3575_v14, %v4856_v26  ;;  %v5249_v26 = vld [vmem:[#allocation18_spill] sm:$0xff] }
 0xbc0   :  { %v3577_v29 = vpop.eup %3576  ;;  %v1821_v6 = vadd.f32 %v5249_v26, %v4784_v44 }
 0xbc1   :  { %v4902_v4 = vadd.f32 %v2438_v40, %v2437_v12 }
 0xbc3   :  { %3578 = vtanh.f32 %v4902_v4 }
 0xbcd   :  { %v3579_v36 = vpop.eup %3578 }
 0xbce   :  { %v2441_v11 = vmul.f32 %v3579_v36, %v3577_v29 }
 0xbd0   :  { %v2442_v20 = vpack.c.bf16 %v2441_v11, %v2441_v11 }
 0xbd2   :  { %2476 = vmatmul.mubr.bf16.vlgmr.msra.gmra.mrb[76].mxu0 %v2442_v20  ;;  %2517 = vmatmul.mubr.bf16.vlgmr.msra.gmra.mrb[76].mxu1 %v2442_v20 }
 0xbd3   :  { %2555 = vmatpush1.bf16.msra.mxu0 %v4581_v15  ;;  %2596 = vmatpush1.bf16.msra.mxu1 %v4583_v45 }
 0xbd4   :  { %2556 = vmatprep.subr.bf16.mxu0 %v4589_v32  ;;  %2597 = vmatprep.subr.bf16.mxu1 %v4591_v13 }
 0xbd5   :  { %2586 = vmatprep.mubr.bf16.mxu0 %v5196_v17  ;;  %2627 = vmatprep.mubr.bf16.mxu1 %v5196_v17 }
 0xbd7   :  { %2557 = vmatpush1.bf16.msra.mxu0 %v4593_v50  ;;  %2598 = vmatpush1.bf16.msra.mxu1 %v4595_v28 }
 0xbd8   :  { %2558 = vmatprep.subr.bf16.mxu0 %v4601_v37  ;;  %2599 = vmatprep.subr.bf16.mxu1 %v4603_v34 }
 0xbdb   :  { %2559 = vmatpush1.bf16.msra.mxu0 %v4605_v38  ;;  %2600 = vmatpush1.bf16.msra.mxu1 %v4607_v56 }
 0xbdc   :  { %2560 = vmatprep.subr.bf16.mxu0 %v4613_v62  ;;  %2601 = vmatprep.subr.bf16.mxu1 %v4615_v5 }
 0xbdf   :  { %2561 = vmatpush1.bf16.msra.mxu0 %v4617_v30  ;;  %2602 = vmatpush1.bf16.msra.mxu1 %v4619_v57 }
 0xbe0   :  { %2562 = vmatprep.subr.bf16.mxu0 %v4625_v58  ;;  %2603 = vmatprep.subr.bf16.mxu1 %v4627_v59 }
 0xbe3   :  { %2563 = vmatpush1.bf16.msra.mxu0 %v4629_v60  ;;  %2604 = vmatpush1.bf16.msra.mxu1 %v4631_v61 }
 0xbe4   :  { %2564 = vmatprep.subr.bf16.mxu0 %v4637_v63  ;;  %2605 = vmatprep.subr.bf16.mxu1 %v4639_v0 }
 0xbe7   :  { %2565 = vmatpush1.bf16.msra.mxu0 %v4641_v2  ;;  %2606 = vmatpush1.bf16.msra.mxu1 %v4643_v3 }
 0xbe8   :  { %2566 = vmatprep.subr.bf16.mxu0 %v4649_v51  ;;  %2607 = vmatprep.subr.bf16.mxu1 %v4651_v53 }
 0xbeb   :  { %2567 = vmatpush1.bf16.msra.mxu0 %v4653_v54  ;;  %2608 = vmatpush1.bf16.msra.mxu1 %v4655_v46 }
 0xbec   :  { %2568 = vmatprep.subr.bf16.mxu0 %v4661_v23  ;;  %2609 = vmatprep.subr.bf16.mxu1 %v4663_v22 }
 0xbef   :  { %2569 = vmatpush1.bf16.msra.mxu0 %v4665_v24  ;;  %2610 = vmatpush1.bf16.msra.mxu1 %v4667_v39 }
 0xbf0   :  { %2665 = vmatprep.subr.bf16.mxu0 %v4577_v10  ;;  %2706 = vmatprep.subr.bf16.mxu1 %v4579_v35 }
 0xca5   :  { %v2477_v48 = vpop.f32.mrb[76].mxu0  ;;  %v2518_v55 = vpop.f32.mrb[76].mxu1 }
 0xca6   :  { %v2525_v1 = vadd.f32 %v2477_v48, %v1821_v6  ;;  %v2527_v25 = vadd.f32 %v2518_v55, %v1894_v47  ;;  %v2479_v21 = vpop.f32.mrb[77].mxu0  ;;  %v2520_v27 = vpop.f32.mrb[77].mxu1 }
 0xca7   :  { %v2526_v18 = vadd.f32 %v2479_v21, %v1823_v7  ;;  %v2528_v9 = vadd.f32 %v2520_v27, %v1896_v49  ;;  %v2481_v41 = vpop.f32.mrb[78].mxu0  ;;  %v2522_v33 = vpop.f32.mrb[78].mxu1 }
 0xca8   :  { %v3185_v40 = vmul.f32 -1.442695, %v2525_v1  ;;  %v2482_v14 = vpop.f32.mrb[79].mxu0  ;;  %v2523_v19 = vpop.f32.mrb[79].mxu1  ;;  %v3187_v29 = vmul.f32 -1.442695, %v2527_v25 }
 0xca9   :  { %v3186_v12 = vmul.f32 -1.442695, %v2526_v18  ;;  %v4997_v14 = vld [vmem:[#allocation10] ss:$16 sps:$4 sm:$0xff]   ;;  %v5000_v19 = vld [vmem:[#allocation10 + $0x8] ss:$16 sps:$4 sm:$0xff]  }
 0xcaa   :  { %3580 = vpow2.f32 %v3185_v40 }
 0xcab   :  { %3582 = vpow2.f32 %v3186_v12  ;;  %v5003_v12 = vld [vmem:[#allocation10 + $0x24] ss:$16 sps:$4 sm:$0xff]  }
 0xcac   :  { %3584 = vtanh.f32 %v2528_v9 }
 0xcad   :  { %3586 = vpow2.f32 %v3187_v29  ;;  %v5006_v29 = vld [vmem:[#allocation10 + $0x2c] ss:$16 sps:$4 sm:$0xff]  }
 0xcb4   :  { %v3581_v36 = vpop.eup %3580 }
 0xcb5   :  { %v2538_v11 = vadd.f32 1.0, %v3581_v36  ;;  %v3583_v20 = vpop.eup %3582  ;;  %v5011_v36 = vld [vmem:[#allocation10 + $0x20] ss:$16 sps:$4 sm:$0xff]  }
 0xcb6   :  { %v2539_v26 = vadd.f32 1.0, %v3583_v20  ;;  %v3585_v6 = vpop.eup %3584  ;;  %v5017_v20 = vld [vmem:[#allocation10 + $0x44] ss:$16 sps:$4 sm:$0xff]  }
 0xcb7   :  { %3588 = vrcp.f32 %v2538_v11  ;;  %v3587_v8 = vpop.eup %3586  ;;  %v5014_v11 = vld [vmem:[#allocation10 + $0x28] ss:$16 sps:$4 sm:$0xff]  }
 0xcb8   :  { %3590 = vrcp.f32 %v2539_v26  ;;  %v2540_v52 = vadd.f32 1.0, %v3587_v8  ;;  %v5020_v26 = vld [vmem:[#allocation10 + $0x4c] ss:$16 sps:$4 sm:$0xff]   ;;  %v5026_v8 = vld [vmem:[#allocation10 + $0x48] ss:$16 sps:$4 sm:$0xff]  }
 0xcba   :  { %3592 = vrcp.f32 %v2540_v52  ;;  %v5038_v52 = vld [vmem:[#allocation10 + $0x68] ss:$16 sps:$4 sm:$0xff]  }
 0xcc1   :  { %v3589_v47 = vpop.eup %3588 }
 0xcc2   :  { %v2549_v43 = vmul.f32 %v3589_v47, %v3585_v6  ;;  %v3591_v7 = vpop.eup %3590  ;;  %v5023_v6 = vld [vmem:[#allocation10 + $0x40] ss:$16 sps:$4 sm:$0xff]   ;;  %v5029_v47 = vld [vmem:[#allocation10 + $0x64] ss:$16 sps:$4 sm:$0xff]  }
 0xcc3   :  { %v2548_v49 = vmul.f32 %v3591_v7, %v4902_v4  ;;  %v5035_v7 = vld [vmem:[#allocation10 + $0x60] ss:$16 sps:$4 sm:$0xff]  }
 0xcc4   :  { %v3593_v55 = vpop.eup %3592 }
 0xcc5   :  { %v4948_v48 = vadd.f32 %v2549_v43, %v2548_v49  ;;  %v5032_v43 = vld [vmem:[#allocation10 + $0x6c] ss:$16 sps:$4 sm:$0xff]   ;;  %v5041_v49 = vld [vmem:[#allocation10 + $0x84] ss:$16 sps:$4 sm:$0xff]  }
 0xcc7   :  { %3594 = vtanh.f32 %v4948_v48 }
 0xcd1   :  { %v3595_v1 = vpop.eup %3594 }
 0xcd2   :  { %v2552_v25 = vmul.f32 %v3595_v1, %v3593_v55  ;;  %v5047_v55 = vld [vmem:[#allocation10 + $0x80] ss:$16 sps:$4 sm:$0xff]   ;;  %v5050_v1 = vld [vmem:[#allocation10 + $0x88] ss:$16 sps:$4 sm:$0xff]  }
 0xcd4   :  { %v2553_v21 = vpack.c.bf16 %v2552_v25, %v2552_v25  ;;  %v5053_v25 = vld [vmem:[#allocation10 + $0xa4] ss:$16 sps:$4 sm:$0xff]  }
 0xcd6   :  { %2587 = vmatmul.mubr.bf16.vlgmr.msra.gmra.mrb[80].mxu0 %v2553_v21  ;;  %2628 = vmatmul.mubr.bf16.vlgmr.msra.gmra.mrb[80].mxu1 %v2553_v21  ;;  %v5056_v21 = vld [vmem:[#allocation10 + $0xac] ss:$16 sps:$4 sm:$0xff]  }
 0xcd7   :  { %2666 = vmatpush1.bf16.msra.mxu0 %v4581_v15  ;;  %2707 = vmatpush1.bf16.msra.mxu1 %v4583_v45  ;;  %v5253_v15 = vld [vmem:[#allocation22_spill] sm:$0xff] }
 0xcd8   :  { %2667 = vmatprep.subr.bf16.mxu0 %v4589_v32  ;;  %2708 = vmatprep.subr.bf16.mxu1 %v4591_v13  ;;  %v1827_v45 = vadd.f32 %v5253_v15, %v4784_v44  ;;  %v5254_v32 = vld [vmem:[#allocation23_spill] sm:$0xff]  ;;  %v5059_v15 = vld [vmem:[#allocation10 + $0xa0] ss:$16 sps:$4 sm:$0xff]  }
 0xcd9   :  { %2697 = vmatprep.mubr.bf16.mxu0 %v5196_v17  ;;  %2738 = vmatprep.mubr.bf16.mxu1 %v5196_v17  ;;  %v1900_v13 = vadd.f32 %v5254_v32, %v4788_v42  ;;  %v5065_v32 = vld [vmem:[#allocation10 + $0xc4] ss:$16 sps:$4 sm:$0xff]  }
 0xcdb   :  { %2668 = vmatpush1.bf16.msra.mxu0 %v4593_v50  ;;  %2709 = vmatpush1.bf16.msra.mxu1 %v4595_v28  ;;  %v5255_v50 = vld [vmem:[#allocation24_spill] sm:$0xff] }
 0xcdc   :  { %2669 = vmatprep.subr.bf16.mxu0 %v4601_v37  ;;  %2710 = vmatprep.subr.bf16.mxu1 %v4603_v34  ;;  %v1829_v28 = vadd.f32 %v5255_v50, %v4796_v16  ;;  %v5256_v37 = vld [vmem:[#allocation25_spill] sm:$0xff]  ;;  %v5071_v50 = vld [vmem:[#allocation10 + $0xc0] ss:$16 sps:$4 sm:$0xff]  }
 0xcdd   :  { %v1902_v34 = vadd.f32 %v5256_v37, %v4800_v31  ;;  %v5077_v37 = vld [vmem:[#allocation10 + $0xe4] ss:$16 sps:$4 sm:$0xff]  }
 0xcdf   :  { %2670 = vmatpush1.bf16.msra.mxu0 %v4605_v38  ;;  %2711 = vmatpush1.bf16.msra.mxu1 %v4607_v56 }
 0xce0   :  { %2671 = vmatprep.subr.bf16.mxu0 %v4613_v62  ;;  %2712 = vmatprep.subr.bf16.mxu1 %v4615_v5 }
 0xce3   :  { %2672 = vmatpush1.bf16.msra.mxu0 %v4617_v30  ;;  %2713 = vmatpush1.bf16.msra.mxu1 %v4619_v57 }
 0xce4   :  { %2673 = vmatprep.subr.bf16.mxu0 %v4625_v58  ;;  %2714 = vmatprep.subr.bf16.mxu1 %v4627_v59 }
 0xce7   :  { %2674 = vmatpush1.bf16.msra.mxu0 %v4629_v60  ;;  %2715 = vmatpush1.bf16.msra.mxu1 %v4631_v61 }
 0xce8   :  { %2675 = vmatprep.subr.bf16.mxu0 %v4637_v63  ;;  %2716 = vmatprep.subr.bf16.mxu1 %v4639_v0 }
 0xceb   :  { %2676 = vmatpush1.bf16.msra.mxu0 %v4641_v2  ;;  %2717 = vmatpush1.bf16.msra.mxu1 %v4643_v3 }
 0xcec   :  { %2677 = vmatprep.subr.bf16.mxu0 %v4649_v51  ;;  %2718 = vmatprep.subr.bf16.mxu1 %v4651_v53 }
 0xcef   :  { %2678 = vmatpush1.bf16.msra.mxu0 %v4653_v54  ;;  %2719 = vmatpush1.bf16.msra.mxu1 %v4655_v46 }
 0xcf0   :  { %2679 = vmatprep.subr.bf16.mxu0 %v4661_v23  ;;  %2720 = vmatprep.subr.bf16.mxu1 %v4663_v22 }
 0xcf3   :  { %2680 = vmatpush1.bf16.msra.mxu0 %v4665_v24  ;;  %2721 = vmatpush1.bf16.msra.mxu1 %v4667_v39 }
 0xcf4   :  { %2776 = vmatprep.subr.bf16.mxu0 %v4577_v10  ;;  %2817 = vmatprep.subr.bf16.mxu1 %v4579_v35 }
 0xda9   :  { %v2588_v38 = vpop.f32.mrb[80].mxu0  ;;  %v2629_v56 = vpop.f32.mrb[80].mxu1 }
 0xdaa   :  { %v2636_v62 = vadd.f32 %v2588_v38, %v1827_v45  ;;  %v2638_v5 = vadd.f32 %v2629_v56, %v1900_v13  ;;  %v2590_v30 = vpop.f32.mrb[81].mxu0  ;;  %v2631_v10 = vpop.f32.mrb[81].mxu1  ;;  %v5062_v45 = vld [vmem:[#allocation10 + $0xa8] ss:$16 sps:$4 sm:$0xff]   ;;  %v5068_v13 = vld [vmem:[#allocation10 + $0xcc] ss:$16 sps:$4 sm:$0xff]  }
 0xdab   :  { %v2637_v57 = vadd.f32 %v2590_v30, %v1829_v28  ;;  %v2639_v35 = vadd.f32 %v2631_v10, %v1902_v34  ;;  %v2592_v58 = vpop.f32.mrb[82].mxu0  ;;  %v2633_v59 = vpop.f32.mrb[82].mxu1  ;;  %v5074_v28 = vld [vmem:[#allocation10 + $0xc8] ss:$16 sps:$4 sm:$0xff]   ;;  %v5080_v34 = vld [vmem:[#allocation10 + $0xec] ss:$16 sps:$4 sm:$0xff]  }
 0xdac   :  { %v3188_v60 = vmul.f32 -1.442695, %v2636_v62  ;;  %v2593_v61 = vpop.f32.mrb[83].mxu0  ;;  %v2634_v63 = vpop.f32.mrb[83].mxu1  ;;  %v3190_v2 = vmul.f32 -1.442695, %v2638_v5 }
 0xdad   :  { %v3189_v0 = vmul.f32 -1.442695, %v2637_v57  ;;  %v5083_v38 = vld [vmem:[#allocation10 + $0xe0] ss:$16 sps:$4 sm:$0xff]   ;;  %v5086_v56 = vld [vmem:[#allocation10 + $0xe8] ss:$16 sps:$4 sm:$0xff]  }
 0xdae   :  { %3596 = vpow2.f32 %v3188_v60  ;;  %v3722_v62 = vld [vmem:[#allocation10 + $0x4] ss:$16 sps:$4 sm:$0xff]   ;;  %v3723_v5 = vld [vmem:[#allocation10 + $0xc] ss:$16 sps:$4 sm:$0xff]  }
 0xdaf   :  { %3598 = vpow2.f32 %v3189_v0  ;;  %v5257_v30 = vld [vmem:[#allocation26_spill] sm:$0xff]  ;;  %v5258_v57 = vld [vmem:[#allocation27_spill] sm:$0xff]  ;;  %v5259_v58 = vld [vmem:[#allocation28_spill] sm:$0xff] }
 0xdb0   :  { %3600 = vtanh.f32 %v2639_v35  ;;  %v1831_v10 = vadd.f32 %v5257_v30, %v4784_v44  ;;  %v1904_v35 = vadd.f32 %v5258_v57, %v4788_v42  ;;  %v1833_v59 = vadd.f32 %v5259_v58, %v4796_v16  ;;  %v5260_v60 = vld [vmem:[#allocation29_spill] sm:$0xff] }
 0xdb1   :  { %3602 = vpow2.f32 %v3190_v2  ;;  %v1906_v61 = vadd.f32 %v5260_v60, %v4800_v31 }
 0xdb8   :  { %v3597_v3 = vpop.eup %3596 }
 0xdb9   :  { %v2649_v51 = vadd.f32 1.0, %v3597_v3  ;;  %v3599_v53 = vpop.eup %3598 }
 0xdba   :  { %v2650_v54 = vadd.f32 1.0, %v3599_v53  ;;  %v3601_v46 = vpop.eup %3600 }
 0xdbb   :  { %3604 = vrcp.f32 %v2649_v51  ;;  %v3603_v23 = vpop.eup %3602 }
 0xdbc   :  { %3606 = vrcp.f32 %v2650_v54  ;;  %v2651_v4 = vadd.f32 1.0, %v3603_v23 }
 0xdbe   :  { %3608 = vrcp.f32 %v2651_v4 }
 0xdc5   :  { %v3605_v22 = vpop.eup %3604 }
 0xdc6   :  { %v2660_v24 = vmul.f32 %v3605_v22, %v3601_v46  ;;  %v3607_v39 = vpop.eup %3606 }
 0xdc7   :  { %v2659_v27 = vmul.f32 %v3607_v39, %v4948_v48  ;;  %v5044_v48 = vld [vmem:[#allocation10 + $0x8c] ss:$16 sps:$4 sm:$0xff]  }
 0xdc8   :  { %v3609_v9 = vpop.eup %3608 }
 0xdc9   :  { %v4994_v18 = vadd.f32 %v2660_v24, %v2659_v27 }
 0xdcb   :  { %3610 = vtanh.f32 %v4994_v18 }
 0xdd5   :  { %v3611_v41 = vpop.eup %3610 }
 0xdd6   :  { %v2663_v33 = vmul.f32 %v3611_v41, %v3609_v9 }
 0xdd8   :  { %v2664_v40 = vpack.c.bf16 %v2663_v33, %v2663_v33 }
 0xdda   :  { %2698 = vmatmul.mubr.bf16.vlgmr.msra.gmra.mrb[84].mxu0 %v2664_v40  ;;  %2739 = vmatmul.mubr.bf16.vlgmr.msra.gmra.mrb[84].mxu1 %v2664_v40 }
 0xddb   :  { %2777 = vmatpush1.bf16.msra.mxu0 %v4997_v14  ;;  %2818 = vmatpush1.bf16.msra.mxu1 %v5000_v19 }
 0xddc   :  { %2778 = vmatprep.subr.bf16.mxu0 %v5003_v12  ;;  %2819 = vmatprep.subr.bf16.mxu1 %v5006_v29 }
 0xddd   :  { %2808 = vmatprep.mubr.bf16.mxu0 %v5196_v17  ;;  %2849 = vmatprep.mubr.bf16.mxu1 %v5196_v17 }
 0xddf   :  { %2779 = vmatpush1.bf16.msra.mxu0 %v5011_v36  ;;  %2820 = vmatpush1.bf16.msra.mxu1 %v5014_v11 }
 0xde0   :  { %2780 = vmatprep.subr.bf16.mxu0 %v5017_v20  ;;  %2821 = vmatprep.subr.bf16.mxu1 %v5020_v26 }
 0xde3   :  { %2781 = vmatpush1.bf16.msra.mxu0 %v5023_v6  ;;  %2822 = vmatpush1.bf16.msra.mxu1 %v5026_v8 }
 0xde4   :  { %2782 = vmatprep.subr.bf16.mxu0 %v5029_v47  ;;  %2823 = vmatprep.subr.bf16.mxu1 %v5032_v43 }
 0xde7   :  { %2783 = vmatpush1.bf16.msra.mxu0 %v5035_v7  ;;  %2824 = vmatpush1.bf16.msra.mxu1 %v5038_v52 }
 0xde8   :  { %2784 = vmatprep.subr.bf16.mxu0 %v5041_v49  ;;  %2825 = vmatprep.subr.bf16.mxu1 %v5044_v48 }
 0xdeb   :  { %2785 = vmatpush1.bf16.msra.mxu0 %v5047_v55  ;;  %2826 = vmatpush1.bf16.msra.mxu1 %v5050_v1 }
 0xdec   :  { %2786 = vmatprep.subr.bf16.mxu0 %v5053_v25  ;;  %2827 = vmatprep.subr.bf16.mxu1 %v5056_v21 }
 0xdef   :  { %2787 = vmatpush1.bf16.msra.mxu0 %v5059_v15  ;;  %2828 = vmatpush1.bf16.msra.mxu1 %v5062_v45 }
 0xdf0   :  { %2788 = vmatprep.subr.bf16.mxu0 %v5065_v32  ;;  %2829 = vmatprep.subr.bf16.mxu1 %v5068_v13 }
 0xdf3   :  { %2789 = vmatpush1.bf16.msra.mxu0 %v5071_v50  ;;  %2830 = vmatpush1.bf16.msra.mxu1 %v5074_v28 }
 0xdf4   :  { %2790 = vmatprep.subr.bf16.mxu0 %v5077_v37  ;;  %2831 = vmatprep.subr.bf16.mxu1 %v5080_v34 }
 0xdf7   :  { %2791 = vmatpush1.bf16.msra.mxu0 %v5083_v38  ;;  %2832 = vmatpush1.bf16.msra.mxu1 %v5086_v56 }
 0xdf8   :  { %2887 = vmatprep.subr.bf16.mxu0 %v3722_v62  ;;  %2928 = vmatprep.subr.bf16.mxu1 %v3723_v5 }
 0xead   :  { %v2699_v63 = vpop.f32.mrb[84].mxu0  ;;  %v2740_v0 = vpop.f32.mrb[84].mxu1 }
 0xeae   :  { %v2747_v2 = vadd.f32 %v2699_v63, %v1831_v10  ;;  %v2749_v3 = vadd.f32 %v2740_v0, %v1904_v35  ;;  %v2701_v51 = vpop.f32.mrb[85].mxu0  ;;  %v2742_v53 = vpop.f32.mrb[85].mxu1 }
 0xeaf   :  { %v2748_v54 = vadd.f32 %v2701_v51, %v1833_v59  ;;  %v2750_v46 = vadd.f32 %v2742_v53, %v1906_v61  ;;  %v2703_v23 = vpop.f32.mrb[86].mxu0  ;;  %v2744_v22 = vpop.f32.mrb[86].mxu1 }
 0xeb0   :  { %v3191_v24 = vmul.f32 -1.442695, %v2747_v2  ;;  %v2704_v39 = vpop.f32.mrb[87].mxu0  ;;  %v2745_v4 = vpop.f32.mrb[87].mxu1  ;;  %v3193_v9 = vmul.f32 -1.442695, %v2749_v3 }
 0xeb1   :  { %v3192_v27 = vmul.f32 -1.442695, %v2748_v54  ;;  %v5266_v4 = vld [vmem:[#allocation35_spill] sm:$0xff] }
 0xeb2   :  { %3612 = vpow2.f32 %v3191_v24  ;;  %v5265_v24 = vld [vmem:[#allocation34_spill] sm:$0xff] }
 0xeb3   :  { %3614 = vpow2.f32 %v3192_v27  ;;  %v1841_v39 = vadd.f32 %v5265_v24, %v4784_v44  ;;  %v1914_v27 = vadd.f32 %v5266_v4, %v4788_v42 }
 0xeb4   :  { %3616 = vtanh.f32 %v2750_v46 }
 0xeb5   :  { %3618 = vpow2.f32 %v3193_v9  ;;  %v5267_v9 = vld [vmem:[#allocation14_spill] sm:$0xff] }
 0xebc   :  { %v3613_v41 = vpop.eup %3612 }
 0xebd   :  { %v2760_v33 = vadd.f32 1.0, %v3613_v41  ;;  %v3615_v40 = vpop.eup %3614  ;;  %v1843_v41 = vadd.f32 %v5267_v9, %v4796_v16 }
 0xebe   :  { %v2761_v62 = vadd.f32 1.0, %v3615_v40  ;;  %v3617_v5 = vpop.eup %3616 }
 0xebf   :  { %3620 = vrcp.f32 %v2760_v33  ;;  %v3619_v30 = vpop.eup %3618  ;;  %v5268_v33 = vld [vmem:[#allocation36_spill] sm:$0xff] }
 0xec0   :  { %3622 = vrcp.f32 %v2761_v62  ;;  %v2762_v58 = vadd.f32 1.0, %v3619_v30  ;;  %v1916_v40 = vadd.f32 %v5268_v33, %v4800_v31 }
 0xec2   :  { %3624 = vrcp.f32 %v2762_v58 }
 0xec9   :  { %v3621_v10 = vpop.eup %3620 }
 0xeca   :  { %v2771_v57 = vmul.f32 %v3621_v10, %v3617_v5  ;;  %v3623_v35 = vpop.eup %3622 }
 0xecb   :  { %v2770_v59 = vmul.f32 %v3623_v35, %v4994_v18 }
 0xecc   :  { %v3625_v61 = vpop.eup %3624 }
 0xecd   :  { %v5098_v60 = vadd.f32 %v2771_v57, %v2770_v59 }
 0xecf   :  { %3626 = vtanh.f32 %v5098_v60 }
 0xed9   :  { %v3627_v63 = vpop.eup %3626 }
 0xeda   :  { %v2774_v0 = vmul.f32 %v3627_v63, %v3625_v61 }
 0xedc   :  { %v2775_v2 = vpack.c.bf16 %v2774_v0, %v2774_v0 }
 0xede   :  { %2809 = vmatmul.mubr.bf16.vlgmr.msra.gmra.mrb[88].mxu0 %v2775_v2  ;;  %2850 = vmatmul.mubr.bf16.vlgmr.msra.gmra.mrb[88].mxu1 %v2775_v2 }
 0xedf   :  { %2888 = vmatpush1.bf16.msra.mxu0 %v4997_v14  ;;  %2929 = vmatpush1.bf16.msra.mxu1 %v5000_v19  ;;  %v5262_v14 = vld [vmem:[#allocation31_spill] sm:$0xff] }
 0xee0   :  { %2889 = vmatprep.subr.bf16.mxu0 %v5003_v12  ;;  %2930 = vmatprep.subr.bf16.mxu1 %v5006_v29  ;;  %v1910_v19 = vadd.f32 %v5262_v14, %v4788_v42  ;;  %v5263_v12 = vld [vmem:[#allocation32_spill] sm:$0xff] }
 0xee1   :  { %2919 = vmatprep.mubr.bf16.mxu0 %v5196_v17  ;;  %2960 = vmatprep.mubr.bf16.mxu1 %v5196_v17  ;;  %v5261_v17 = vld [vmem:[#allocation30_spill] sm:$0xff]  ;;  %v1839_v29 = vadd.f32 %v5263_v12, %v4796_v16 }
 0xee2   :  { %v1837_v18 = vadd.f32 %v5261_v17, %v4784_v44 }
 0xee3   :  { %2890 = vmatpush1.bf16.msra.mxu0 %v5011_v36  ;;  %2931 = vmatpush1.bf16.msra.mxu1 %v5014_v11  ;;  %v5264_v36 = vld [vmem:[#allocation33_spill] sm:$0xff] }
 0xee4   :  { %2891 = vmatprep.subr.bf16.mxu0 %v5017_v20  ;;  %2932 = vmatprep.subr.bf16.mxu1 %v5020_v26  ;;  %v1912_v11 = vadd.f32 %v5264_v36, %v4800_v31 }
 0xee7   :  { %2892 = vmatpush1.bf16.msra.mxu0 %v5023_v6  ;;  %2933 = vmatpush1.bf16.msra.mxu1 %v5026_v8 }
 0xee8   :  { %2893 = vmatprep.subr.bf16.mxu0 %v5029_v47  ;;  %2934 = vmatprep.subr.bf16.mxu1 %v5032_v43 }
 0xeeb   :  { %2894 = vmatpush1.bf16.msra.mxu0 %v5035_v7  ;;  %2935 = vmatpush1.bf16.msra.mxu1 %v5038_v52 }
 0xeec   :  { %2895 = vmatprep.subr.bf16.mxu0 %v5041_v49  ;;  %2936 = vmatprep.subr.bf16.mxu1 %v5044_v48 }
 0xeef   :  { %2896 = vmatpush1.bf16.msra.mxu0 %v5047_v55  ;;  %2937 = vmatpush1.bf16.msra.mxu1 %v5050_v1 }
 0xef0   :  { %2897 = vmatprep.subr.bf16.mxu0 %v5053_v25  ;;  %2938 = vmatprep.subr.bf16.mxu1 %v5056_v21 }
 0xef3   :  { %2898 = vmatpush1.bf16.msra.mxu0 %v5059_v15  ;;  %2939 = vmatpush1.bf16.msra.mxu1 %v5062_v45 }
 0xef4   :  { %2899 = vmatprep.subr.bf16.mxu0 %v5065_v32  ;;  %2940 = vmatprep.subr.bf16.mxu1 %v5068_v13 }
 0xef7   :  { %2900 = vmatpush1.bf16.msra.mxu0 %v5071_v50  ;;  %2941 = vmatpush1.bf16.msra.mxu1 %v5074_v28 }
 0xef8   :  { %2901 = vmatprep.subr.bf16.mxu0 %v5077_v37  ;;  %2942 = vmatprep.subr.bf16.mxu1 %v5080_v34 }
 0xefb   :  { %2902 = vmatpush1.bf16.msra.mxu0 %v5083_v38  ;;  %2943 = vmatpush1.bf16.msra.mxu1 %v5086_v56 }
 0xfb1   :  { %v2810_v20 = vpop.f32.mrb[88].mxu0  ;;  %v2851_v26 = vpop.f32.mrb[88].mxu1 }
 0xfb2   :  { %v2858_v6 = vadd.f32 %v2810_v20, %v1837_v18  ;;  %v2860_v8 = vadd.f32 %v2851_v26, %v1910_v19  ;;  %v2812_v47 = vpop.f32.mrb[89].mxu0  ;;  %v2853_v43 = vpop.f32.mrb[89].mxu1 }
 0xfb3   :  { %v2859_v7 = vadd.f32 %v2812_v47, %v1839_v29  ;;  %v2861_v52 = vadd.f32 %v2853_v43, %v1912_v11  ;;  %v2814_v49 = vpop.f32.mrb[90].mxu0  ;;  %v2855_v48 = vpop.f32.mrb[90].mxu1  ;;  %v3200_v47 = vld [vmem:[%s5163_s7] ss:$0 sm:$0xff] }
 0xfb4   :  { %v3194_v55 = vmul.f32 -1.442695, %v2858_v6  ;;  %v2815_v1 = vpop.f32.mrb[91].mxu0  ;;  %v2856_v25 = vpop.f32.mrb[91].mxu1  ;;  %v3196_v15 = vmul.f32 -1.442695, %v2860_v8 }
 0xfb5   :  { %v3195_v21 = vmul.f32 -1.442695, %v2859_v7 }
 0xfb6   :  { %3628 = vpow2.f32 %v3194_v55 }
 0xfb7   :  { %3630 = vpow2.f32 %v3195_v21 }
 0xfb8   :  { %3632 = vtanh.f32 %v2861_v52  ;;  %v3201_v52 = vld [vmem:[#allocation2] ss:$0 sm:$0xff] }
 0xfb9   :  { %3634 = vpow2.f32 %v3196_v15 }
 0xfc0   :  { %v3629_v45 = vpop.eup %3628 }
 0xfc1   :  { %v2871_v32 = vadd.f32 1.0, %v3629_v45  ;;  %v3631_v13 = vpop.eup %3630 }
 0xfc2   :  { %v2872_v50 = vadd.f32 1.0, %v3631_v13  ;;  %v3633_v28 = vpop.eup %3632 }
 0xfc3   :  { %3636 = vrcp.f32 %v2871_v32  ;;  %v3635_v37 = vpop.eup %3634 }
 0xfc4   :  { %3638 = vrcp.f32 %v2872_v50  ;;  %v2873_v3 = vadd.f32 1.0, %v3635_v37 }
 0xfc6   :  { %3640 = vrcp.f32 %v2873_v3 }
 0xfcd   :  { %v3637_v34 = vpop.eup %3636 }
 0xfce   :  { %v2882_v38 = vmul.f32 %v3637_v34, %v3633_v28  ;;  %v3639_v56 = vpop.eup %3638 }
 0xfcf   :  { %v2881_v51 = vmul.f32 %v3639_v56, %v5098_v60 }
 0xfd0   :  { %v3641_v54 = vpop.eup %3640 }
 0xfd1   :  { %v2883_v53 = vadd.f32 %v2882_v38, %v2881_v51 }
 0xfd3   :  { %3642 = vtanh.f32 %v2883_v53 }
 0xfdd   :  { %v3643_v46 = vpop.eup %3642 }
 0xfde   :  { %v2885_v23 = vmul.f32 %v3643_v46, %v3641_v54 }
 0xfe0   :  { %v2886_v22 = vpack.c.bf16 %v2885_v23, %v2885_v23 }
 0xfe2   :  { %2920 = vmatmul.mubr.bf16.vlgmr.msra.gmra.mrb[92].mxu0 %v2886_v22  ;;  %2961 = vmatmul.mubr.bf16.vlgmr.msra.gmra.mrb[92].mxu1 %v2886_v22 }
0x10b5   :  { %v2921_v62 = vpop.f32.mrb[92].mxu0  ;;  %v2962_v5 = vpop.f32.mrb[92].mxu1 }
0x10b6   :  { %v2969_v30 = vadd.f32 %v2921_v62, %v1841_v39  ;;  %v2971_v10 = vadd.f32 %v2962_v5, %v1914_v27  ;;  %v2923_v57 = vpop.f32.mrb[93].mxu0  ;;  %v2964_v35 = vpop.f32.mrb[93].mxu1 }
0x10b7   :  { %v2970_v58 = vadd.f32 %v2923_v57, %v1843_v41  ;;  %v2972_v59 = vadd.f32 %v2964_v35, %v1916_v40  ;;  %v2925_v60 = vpop.f32.mrb[94].mxu0  ;;  %v2966_v61 = vpop.f32.mrb[94].mxu1 }
0x10b8   :  { %v3197_v44 = vmul.f32 -1.442695, %v2969_v30  ;;  %v2926_v63 = vpop.f32.mrb[95].mxu0  ;;  %v2967_v0 = vpop.f32.mrb[95].mxu1  ;;  %v3199_v16 = vmul.f32 -1.442695, %v2971_v10 }
0x10b9   :  { %v3198_v42 = vmul.f32 -1.442695, %v2970_v58 }
0x10ba   :  { %3644 = vpow2.f32 %v3197_v44 }
0x10bb   :  { %3646 = vpow2.f32 %v3198_v42 }
0x10bc   :  { %3648 = vtanh.f32 %v2972_v59 }
0x10bd   :  { %3650 = vpow2.f32 %v3199_v16 }
0x10c4   :  { %v3645_v2 = vpop.eup %3644 }
0x10c5   :  { %v2982_v17 = vadd.f32 1.0, %v3645_v2  ;;  %v3647_v31 = vpop.eup %3646 }
0x10c6   :  { %v2983_v18 = vadd.f32 1.0, %v3647_v31  ;;  %v3649_v14 = vpop.eup %3648 }
0x10c7   :  { %3652 = vrcp.f32 %v2982_v17  ;;  %v3651_v19 = vpop.eup %3650 }
0x10c8   :  { %3654 = vrcp.f32 %v2983_v18  ;;  %v2984_v11 = vadd.f32 1.0, %v3651_v19 }
0x10ca   :  { %3656 = vrcp.f32 %v2984_v11 }
0x10d1   :  { %v3653_v12 = vpop.eup %3652 }
0x10d2   :  { %v2993_v29 = vmul.f32 %v3653_v12, %v3649_v14  ;;  %v3655_v36 = vpop.eup %3654 }
0x10d3   :  { %v2992_v20 = vmul.f32 %v3655_v36, %v2883_v53 }
0x10d4   :  { %v3657_v6 = vpop.eup %3656 }
0x10d5   :  { %v2994_v26 = vadd.f32 %v2993_v29, %v2992_v20 }
0x10d7   :  { %3658 = vtanh.f32 %v2994_v26 }
0x10e1   :  { %v3659_v8 = vpop.eup %3658 }
0x10e2   :  { %v2996_v43 = vmul.f32 %v3659_v8, %v3657_v6 }
0x10e4   :  { %v3004_v7 = vmul.f32 %v3200_v47, %v2996_v43 }
0x10e6   :  { %3005 = vadd.xlane.f32.xlu0 %v3004_v7 }
0x1173   :  { %v3006_v49 = vpop.xlane.xlu0 %3005 }
0x1174   :  { %v3014_v48 = vadd.f32 %v3201_v52, %v3006_v49 }
0x1176   :  { %3016 = vst.msk [vmem:[%s5165_s9] sm:$0xff] %vm3015_vm0, %v3014_v48 }
0x1177   :  { %3021 = vsyncpa [#allocation4], 1 }
0x1178   :  { %3022 = vsyncpa [#allocation6], 1 }
0x1179   :  { %3023 = vsyncpa [#allocation9], 1 }

</bundles_post_ra>
